<compile_context>
chip_gen: v5e
topology: v5e:2x2
jax: 0.10.0
libtpu: 0.0.40
codegen_flags: <defaults>
</compile_context>

<pallas_src>
import functools

import jax
import jax.numpy as jnp
import numpy as np
from jax.experimental import pallas as pl
from jax.experimental.pallas import tpu as pltpu

# ---------------------------------------------------------------------------
# Model hyper-parameters (small, consistent with the module)
# ---------------------------------------------------------------------------
BATCH = 2
NUM_AGENTS = 4
NUM_TIMESTEPS = 8
NUM_STATES = 8           # config.num_states
HIDDEN = 32              # config.hidden_dim
NUM_HEADS = 4            # config.num_heads
FFN_DIM = 2048           # PyTorch TransformerEncoderLayer default dim_feedforward
NUM_TYPE_EMB = 6
LN_EPS = 1e-5
NEG_INF = -1e9


# ---------------------------------------------------------------------------
# Pallas kernel: stacked-agent projection + masking + 1-layer pre-norm
# transformer encoder (block-diagonal attention) + per-agent temporal
# max-pool + type-embedding add.
# ---------------------------------------------------------------------------
def _encoder_kernel(num_heads, T,
                    x_ref, mask_ref, temb_ref, abias_ref,
                    wp_ref, wqkv_ref, bqkv_ref, wo_ref, biasH_ref,
                    w1_ref, bf1_ref, w2_ref,
                    out_ref):
    x = x_ref[0]                    # (NT, S)   rows = agents-of-this-step x T
    mask = mask_ref[0]              # (NT, 1)
    abias = abias_ref[...]          # (NT, NT)  0 on same-agent block, -1e9 off
    NT = x.shape[0]
    H = wp_ref.shape[1]
    hd = H // num_heads
    n_per = NT // T
    scale = 1.0 / float(np.sqrt(hd))

    # packed (1, H) vectors
    bp  = biasH_ref[0:1, :]
    g1  = biasH_ref[1:2, :]
    be1 = biasH_ref[2:3, :]
    bo  = biasH_ref[3:4, :]
    g2  = biasH_ref[4:5, :]
    be2 = biasH_ref[5:6, :]
    bf2 = biasH_ref[6:7, :]

    def layernorm(z, g, b):
        mu = jnp.mean(z, axis=-1, keepdims=True)
        var = jnp.mean((z - mu) ** 2, axis=-1, keepdims=True)
        return (z - mu) * jax.lax.rsqrt(var + LN_EPS) * g + b

    # agent_projection + valid-mask gating
    h = jnp.dot(x, wp_ref[...], preferred_element_type=jnp.float32) + bp
    h = h * mask                                            # (NT, H)

    # --- pre-norm self-attention block: h = h + MHA(LN1(h)) ---
    hn = layernorm(h, g1, be1)
    qkv = jnp.dot(hn, wqkv_ref[...],
                  preferred_element_type=jnp.float32) + bqkv_ref[...]   # (NT, 3H)

    wo = wo_ref[...]
    attn = jnp.zeros((NT, H), jnp.float32)
    for hh in range(num_heads):                             # static unroll, 4 heads
        qh = qkv[:, hh * hd:(hh + 1) * hd] * scale          # (NT, hd)
        kh = qkv[:, H + hh * hd:H + (hh + 1) * hd]
        vh = qkv[:, 2 * H + hh * hd:2 * H + (hh + 1) * hd]
        s = jnp.dot(qh, kh.T, preferred_element_type=jnp.float32)       # (NT, NT)
        s = s + abias                                       # block-diag masking
        s = s - jnp.max(s, axis=-1, keepdims=True)
        p = jnp.exp(s)
        p = p * pl.reciprocal(jnp.sum(p, axis=-1, keepdims=True), approx=True)
        oh = jnp.dot(p, vh, preferred_element_type=jnp.float32)         # (NT, hd)
        # fold the output projection per head (avoids lane concatenate)
        attn = attn + jnp.dot(oh, wo[hh * hd:(hh + 1) * hd, :],
                              preferred_element_type=jnp.float32)
    h = h + attn + bo

    # --- pre-norm FFN block: h = h + W2 relu(W1 LN2(h)) ---
    # bf16 MXU inputs, f32 accumulation; elementwise math stays f32.
    hn2 = layernorm(h, g2, be2)
    f = jnp.dot(hn2.astype(w1_ref.dtype), w1_ref[...],
                preferred_element_type=jnp.float32) + bf1_ref[...]
    f = jnp.maximum(f, 0.0)
    f = jnp.dot(f.astype(w2_ref.dtype), w2_ref[...],
                preferred_element_type=jnp.float32) + bf2
    h = h + f                                               # (NT, H)

    # per-agent temporal max-pool + agent-type embedding add; single store
    pooled = jnp.concatenate(
        [jnp.max(h[a * T:(a + 1) * T, :], axis=0, keepdims=True)
         for a in range(n_per)],
        axis=0)                                             # (n_per, H)
    out_ref[0] = pooled + temb_ref[0]


# ---------------------------------------------------------------------------
# Wrapper
# ---------------------------------------------------------------------------
def motion_predictor_forward(params, agent_states, agent_types, valid_mask):
    """agent_states: (B, A, T, S) f32; agent_types: (B, A) int32;
    valid_mask: (B, A, T) f32.  Returns agent_embeddings (B, A, H)."""
    B, A, T, S = agent_states.shape
    H = params["wp"].shape[1]
    N = B * A
    G = 2 if (N % 2 == 0 and N >= 2) else 1   # 2 steps -> both v7x TensorCores
    NP = N // G                               # agents per grid step
    NT = NP * T                               # stacked rows per grid step

    x = agent_states.reshape(G, NT, S).astype(jnp.float32)
    mask = valid_mask.reshape(G, NT, 1).astype(jnp.float32)
    # glue: embedding-table gather done outside the kernel
    type_emb = params["type_table"][agent_types.reshape(N)].reshape(G, NP, H)

    # block-diagonal additive attention mask: rows attend only within their agent
    abias = jnp.asarray(
        np.where(np.kron(np.eye(NP), np.ones((T, T))) > 0.0, 0.0, NEG_INF),
        dtype=jnp.float32)                                  # (NT, NT)

    # fused QKV weight/bias, packed (1,H) vectors, bf16 FFN weights
    wqkv = jnp.concatenate([params["wq"], params["wk"], params["wv"]], axis=1)
    bqkv = jnp.concatenate([params["bq"], params["bk"], params["bv"]], axis=1)
    biasH = jnp.concatenate([params["bp"], params["g1"], params["be1"],
                             params["bo"], params["g2"], params["be2"],
                             params["bf2"]], axis=0)        # (7, H)
    w1 = params["w1"].astype(jnp.bfloat16)
    w2 = params["w2"].astype(jnp.bfloat16)
    wp, wo, bf1 = params["wp"], params["wo"], params["bf1"]

    # constant index maps -> weights stay resident in VMEM across grid steps
    full = lambda a: pl.BlockSpec(a.shape, lambda i: (0,) * a.ndim)

    out = pl.pallas_call(
        functools.partial(_encoder_kernel, NUM_HEADS, T),
        grid=(G,),
        in_specs=[
            pl.BlockSpec((1, NT, S), lambda i: (i, 0, 0)),
            pl.BlockSpec((1, NT, 1), lambda i: (i, 0, 0)),
            pl.BlockSpec((1, NP, H), lambda i: (i, 0, 0)),
            full(abias), full(wp), full(wqkv), full(bqkv), full(wo),
            full(biasH), full(w1), full(bf1), full(w2),
        ],
        out_specs=pl.BlockSpec((1, NP, H), lambda i: (i, 0, 0)),
        out_shape=jax.ShapeDtypeStruct((G, NP, H), jnp.float32),
        compiler_params=pltpu.CompilerParams(
            dimension_semantics=("parallel",)),
    )(x, mask, type_emb, abias, wp, wqkv, bqkv, wo, biasH, w1, bf1, w2)

    return out.reshape(B, A, H)


# ---------------------------------------------------------------------------
# Pure-JAX reference (mirrors the PyTorch forward semantics, eval mode)
# ---------------------------------------------------------------------------
def reference_forward(params, agent_states, agent_types, valid_mask):
    B, A, T, S = agent_states.shape
    H = params["wp"].shape[1]
    hd = H // NUM_HEADS

    def ln(z, g, b):
        mu = jnp.mean(z, -1, keepdims=True)
        var = jnp.mean((z - mu) ** 2, -1, keepdims=True)
        return (z - mu) / jnp.sqrt(var + LN_EPS) * g + b

    h = agent_states @ params["wp"] + params["bp"]
    h = h * valid_mask[..., None]
    h = h.reshape(B * A, T, H)

    hn = ln(h, params["g1"], params["be1"])
    q = (hn @ params["wq"] + params["bq"]).reshape(B * A, T, NUM_HEADS, hd)
    k = (hn @ params["wk"] + params["bk"]).reshape(B * A, T, NUM_HEADS, hd)
    v = (hn @ params["wv"] + params["bv"]).reshape(B * A, T, NUM_HEADS, hd)
    s = jnp.einsum("nqhd,nkhd->nhqk", q, k) / jnp.sqrt(float(hd))
    p = jax.nn.softmax(s, axis=-1)
    attn = jnp.einsum("nhqk,nkhd->nqhd", p, v).reshape(B * A, T, H)
    attn = attn @ params["wo"] + params["bo"]
    h = h + attn

    hn2 = ln(h, params["g2"], params["be2"])
    f = jnp.maximum(hn2 @ params["w1"] + params["bf1"], 0.0)
    f = f @ params["w2"] + params["bf2"]
    h = h + f

    pooled = jnp.max(h, axis=1).reshape(B, A, H)
    type_emb = params["type_table"][agent_types]
    return pooled + type_emb


# ---------------------------------------------------------------------------
# Deterministic parameter construction
# ---------------------------------------------------------------------------
def init_params(key):
    keys = jax.random.split(key, 20)
    def g(k, shape, scale):
        return (jax.random.normal(k, shape, jnp.float32) * scale)
    H, S, F = HIDDEN, NUM_STATES, FFN_DIM
    params = {
        "wp": g(keys[0], (S, H), 0.2),
        "bp": g(keys[1], (1, H), 0.02),
        "g1": jnp.ones((1, H), jnp.float32),
        "be1": jnp.zeros((1, H), jnp.float32),
        "wq": g(keys[2], (H, H), 0.1),
        "bq": g(keys[3], (1, H), 0.02),
        "wk": g(keys[4], (H, H), 0.1),
        "bk": g(keys[5], (1, H), 0.02),
        "wv": g(keys[6], (H, H), 0.1),
        "bv": g(keys[7], (1, H), 0.02),
        "wo": g(keys[8], (H, H), 0.1),
        "bo": g(keys[9], (1, H), 0.02),
        "g2": jnp.ones((1, H), jnp.float32),
        "be2": jnp.zeros((1, H), jnp.float32),
        "w1": g(keys[10], (H, F), 0.05),
        "bf1": g(keys[11], (1, F), 0.02),
        "w2": g(keys[12], (F, H), 0.02),
        "bf2": g(keys[13], (1, H), 0.02),
        "type_table": g(keys[14], (NUM_TYPE_EMB, H), 0.3),  # xavier-like
    }
    return params


if __name__ == "__main__":
    key = jax.random.PRNGKey(0)
    kp, k1, k2, k3 = jax.random.split(key, 4)
    params = init_params(kp)

    agent_states = jax.random.normal(
        k1, (BATCH, NUM_AGENTS, NUM_TIMESTEPS, NUM_STATES), jnp.float32)
    agent_types = jax.random.randint(
        k2, (BATCH, NUM_AGENTS), 0, NUM_TYPE_EMB, jnp.int32)
    valid_mask = (jax.random.uniform(
        k3, (BATCH, NUM_AGENTS, NUM_TIMESTEPS)) < 0.8).astype(jnp.float32)

    out = motion_predictor_forward(params, agent_states, agent_types, valid_mask)
    out = jax.block_until_ready(out)

    ref = reference_forward(params, agent_states, agent_types, valid_mask)
    ref = jax.block_until_ready(ref)

    np.testing.assert_allclose(np.asarray(out), np.asarray(ref),
                               rtol=2e-2, atol=2e-2)
    print("KERNEL_OK")
</pallas_src>

<mosaic_0001>
module attributes {stable_mosaic.version = 11 : i64} {
  func.func @_encoder_kernel(%arg0: i32, %arg1: memref<1x32x8xf32, #tpu.memory_space<vmem>>, %arg2: memref<1x32x1xf32, #tpu.memory_space<vmem>>, %arg3: memref<1x4x32xf32, #tpu.memory_space<vmem>>, %arg4: memref<32x32xf32, #tpu.memory_space<vmem>>, %arg5: memref<8x32xf32, #tpu.memory_space<vmem>>, %arg6: memref<32x96xf32, #tpu.memory_space<vmem>>, %arg7: memref<1x96xf32, #tpu.memory_space<vmem>>, %arg8: memref<32x32xf32, #tpu.memory_space<vmem>>, %arg9: memref<7x32xf32, #tpu.memory_space<vmem>>, %arg10: memref<32x2048xbf16, #tpu.memory_space<vmem>>, %arg11: memref<1x2048xf32, #tpu.memory_space<vmem>>, %arg12: memref<2048x32xbf16, #tpu.memory_space<vmem>>, %arg13: memref<1x4x32xf32, #tpu.memory_space<vmem>>) attributes {dimension_semantics = [#tpu.dimension_semantics<parallel>], iteration_bounds = array<i64: 2>, scalar_prefetch = 0 : i64, scratch_operands = 0 : i64, tpu.core_type = #tpu.core_type<tc>, window_params = [{transform_indices = @transform_0, window_bounds = array<i64: 1, 32, 8>}, {transform_indices = @transform_1, window_bounds = array<i64: 1, 32, 1>}, {transform_indices = @transform_2, window_bounds = array<i64: 1, 4, 32>}, {pipeline_mode = #tpu.pipeline_mode<synchronous>, transform_indices = @transform_3, window_bounds = array<i64: 32, 32>}, {pipeline_mode = #tpu.pipeline_mode<synchronous>, transform_indices = @transform_4, window_bounds = array<i64: 8, 32>}, {pipeline_mode = #tpu.pipeline_mode<synchronous>, transform_indices = @transform_5, window_bounds = array<i64: 32, 96>}, {pipeline_mode = #tpu.pipeline_mode<synchronous>, transform_indices = @transform_6, window_bounds = array<i64: 1, 96>}, {pipeline_mode = #tpu.pipeline_mode<synchronous>, transform_indices = @transform_7, window_bounds = array<i64: 32, 32>}, {pipeline_mode = #tpu.pipeline_mode<synchronous>, transform_indices = @transform_8, window_bounds = array<i64: 7, 32>}, {pipeline_mode = #tpu.pipeline_mode<synchronous>, transform_indices = @transform_9, window_bounds = array<i64: 32, 2048>}, {pipeline_mode = #tpu.pipeline_mode<synchronous>, transform_indices = @transform_10, window_bounds = array<i64: 1, 2048>}, {pipeline_mode = #tpu.pipeline_mode<synchronous>, transform_indices = @transform_11, window_bounds = array<i64: 2048, 32>}, {transform_indices = @transform_12, window_bounds = array<i64: 1, 4, 32>}]} {
    %c0 = arith.constant 0 : index
    %c0_0 = arith.constant 0 : index
    %c0_1 = arith.constant 0 : index
    %0 = vector.load %arg1[%c0, %c0_0, %c0_1] : memref<1x32x8xf32, #tpu.memory_space<vmem>>, vector<1x32x8xf32>
    %1 = vector.shape_cast %0 : vector<1x32x8xf32> to vector<32x8xf32>
    %c0_2 = arith.constant 0 : index
    %c0_3 = arith.constant 0 : index
    %c0_4 = arith.constant 0 : index
    %2 = vector.load %arg2[%c0_2, %c0_3, %c0_4] : memref<1x32x1xf32, #tpu.memory_space<vmem>>, vector<1x32x1xf32>
    %3 = vector.shape_cast %2 : vector<1x32x1xf32> to vector<32x1xf32>
    %c0_5 = arith.constant 0 : index
    %c0_6 = arith.constant 0 : index
    %4 = vector.load %arg4[%c0_5, %c0_6] : memref<32x32xf32, #tpu.memory_space<vmem>>, vector<32x32xf32>
    %c0_7 = arith.constant 0 : index
    %c0_8 = arith.constant 0 : index
    %5 = vector.load %arg9[%c0_7, %c0_8] : memref<7x32xf32, #tpu.memory_space<vmem>>, vector<1x32xf32>
    %c1 = arith.constant 1 : index
    %c0_9 = arith.constant 0 : index
    %6 = vector.load %arg9[%c1, %c0_9] : memref<7x32xf32, #tpu.memory_space<vmem>>, vector<1x32xf32>
    %c2 = arith.constant 2 : index
    %c0_10 = arith.constant 0 : index
    %7 = vector.load %arg9[%c2, %c0_10] : memref<7x32xf32, #tpu.memory_space<vmem>>, vector<1x32xf32>
    %c3 = arith.constant 3 : index
    %c0_11 = arith.constant 0 : index
    %8 = vector.load %arg9[%c3, %c0_11] : memref<7x32xf32, #tpu.memory_space<vmem>>, vector<1x32xf32>
    %c4 = arith.constant 4 : index
    %c0_12 = arith.constant 0 : index
    %9 = vector.load %arg9[%c4, %c0_12] : memref<7x32xf32, #tpu.memory_space<vmem>>, vector<1x32xf32>
    %c5 = arith.constant 5 : index
    %c0_13 = arith.constant 0 : index
    %10 = vector.load %arg9[%c5, %c0_13] : memref<7x32xf32, #tpu.memory_space<vmem>>, vector<1x32xf32>
    %c6 = arith.constant 6 : index
    %c0_14 = arith.constant 0 : index
    %11 = vector.load %arg9[%c6, %c0_14] : memref<7x32xf32, #tpu.memory_space<vmem>>, vector<1x32xf32>
    %c0_15 = arith.constant 0 : index
    %c0_16 = arith.constant 0 : index
    %12 = vector.load %arg5[%c0_15, %c0_16] : memref<8x32xf32, #tpu.memory_space<vmem>>, vector<8x32xf32>
    %cst = arith.constant dense<0.000000e+00> : vector<32x32xf32>
    %13 = tpu.matmul %1, %12, %cst {dimension_numbers = #tpu.dot_dimension_numbers<[1], [0], [0], [1], [0, 0, 1, 1], [], []>} : vector<32x8xf32>, vector<8x32xf32>, vector<32x32xf32> -> vector<32x32xf32>
    %14 = vector.broadcast %5 : vector<1x32xf32> to vector<32x32xf32>
    %15 = arith.addf %13, %14 : vector<32x32xf32>
    %16 = vector.broadcast %3 : vector<32x1xf32> to vector<32x32xf32>
    %17 = arith.mulf %15, %16 : vector<32x32xf32>
    %cst_17 = arith.constant dense<0.000000e+00> : vector<32xf32>
    %18 = vector.multi_reduction <add>, %17, %cst_17 [1] : vector<32x32xf32> to vector<32xf32>
    %19 = vector.shape_cast %18 : vector<32xf32> to vector<32x1xf32>
    %cst_18 = arith.constant 3.200000e+01 : f32
    %20 = vector.broadcast %cst_18 : f32 to vector<32x1xf32>
    %21 = arith.divf %19, %20 : vector<32x1xf32>
    %22 = vector.broadcast %21 : vector<32x1xf32> to vector<32x32xf32>
    %23 = arith.subf %17, %22 : vector<32x32xf32>
    %24 = arith.mulf %23, %23 : vector<32x32xf32>
    %cst_19 = arith.constant dense<0.000000e+00> : vector<32xf32>
    %25 = vector.multi_reduction <add>, %24, %cst_19 [1] : vector<32x32xf32> to vector<32xf32>
    %26 = vector.shape_cast %25 : vector<32xf32> to vector<32x1xf32>
    %cst_20 = arith.constant 3.200000e+01 : f32
    %27 = vector.broadcast %cst_20 : f32 to vector<32x1xf32>
    %28 = arith.divf %26, %27 : vector<32x1xf32>
    %29 = vector.broadcast %21 : vector<32x1xf32> to vector<32x32xf32>
    %30 = arith.subf %17, %29 : vector<32x32xf32>
    %cst_21 = arith.constant 9.99999974E-6 : f32
    %31 = vector.broadcast %cst_21 : f32 to vector<32x1xf32>
    %32 = arith.addf %28, %31 : vector<32x1xf32>
    %33 = math.rsqrt %32 : vector<32x1xf32>
    %34 = vector.broadcast %33 : vector<32x1xf32> to vector<32x32xf32>
    %35 = arith.mulf %30, %34 : vector<32x32xf32>
    %36 = vector.broadcast %6 : vector<1x32xf32> to vector<32x32xf32>
    %37 = arith.mulf %35, %36 : vector<32x32xf32>
    %38 = vector.broadcast %7 : vector<1x32xf32> to vector<32x32xf32>
    %39 = arith.addf %37, %38 : vector<32x32xf32>
    %c0_22 = arith.constant 0 : index
    %c0_23 = arith.constant 0 : index
    %40 = vector.load %arg6[%c0_22, %c0_23] : memref<32x96xf32, #tpu.memory_space<vmem>>, vector<32x96xf32>
    %cst_24 = arith.constant dense<0.000000e+00> : vector<32x96xf32>
    %41 = tpu.matmul %39, %40, %cst_24 {dimension_numbers = #tpu.dot_dimension_numbers<[1], [0], [0], [1], [0, 0, 1, 1], [], []>} : vector<32x32xf32>, vector<32x96xf32>, vector<32x96xf32> -> vector<32x96xf32>
    %c0_25 = arith.constant 0 : index
    %c0_26 = arith.constant 0 : index
    %42 = vector.load %arg7[%c0_25, %c0_26] : memref<1x96xf32, #tpu.memory_space<vmem>>, vector<1x96xf32>
    %43 = vector.broadcast %42 : vector<1x96xf32> to vector<32x96xf32>
    %44 = arith.addf %41, %43 : vector<32x96xf32>
    %c0_27 = arith.constant 0 : index
    %c0_28 = arith.constant 0 : index
    %45 = vector.load %arg8[%c0_27, %c0_28] : memref<32x32xf32, #tpu.memory_space<vmem>>, vector<32x32xf32>
    %cst_29 = arith.constant 0.000000e+00 : f32
    %46 = vector.broadcast %cst_29 : f32 to vector<32x32xf32>
    %47 = vector.extract_strided_slice %44 {offsets = [0, 0], sizes = [32, 8], strides = [1, 1]} : vector<32x96xf32> to vector<32x8xf32>
    %cst_30 = arith.constant 0.353553385 : f32
    %48 = vector.broadcast %cst_30 : f32 to vector<32x8xf32>
    %49 = arith.mulf %47, %48 : vector<32x8xf32>
    %50 = vector.extract_strided_slice %44 {offsets = [0, 32], sizes = [32, 8], strides = [1, 1]} : vector<32x96xf32> to vector<32x8xf32>
    %51 = vector.extract_strided_slice %44 {offsets = [0, 64], sizes = [32, 8], strides = [1, 1]} : vector<32x96xf32> to vector<32x8xf32>
    %52 = tpu.transpose %50, [1, 0] : vector<32x8xf32> -> vector<8x32xf32>
    %cst_31 = arith.constant dense<0.000000e+00> : vector<32x32xf32>
    %53 = tpu.matmul %49, %52, %cst_31 {dimension_numbers = #tpu.dot_dimension_numbers<[1], [0], [0], [1], [0, 0, 1, 1], [], []>} : vector<32x8xf32>, vector<8x32xf32>, vector<32x32xf32> -> vector<32x32xf32>
    %54 = arith.addf %53, %4 : vector<32x32xf32>
    %cst_32 = arith.constant dense<0xFF800000> : vector<32xf32>
    %55 = vector.multi_reduction <maximumf>, %54, %cst_32 [1] : vector<32x32xf32> to vector<32xf32>
    %56 = vector.shape_cast %55 : vector<32xf32> to vector<32x1xf32>
    %57 = vector.broadcast %56 : vector<32x1xf32> to vector<32x32xf32>
    %58 = arith.subf %54, %57 : vector<32x32xf32>
    %59 = math.exp %58 : vector<32x32xf32>
    %cst_33 = arith.constant dense<0.000000e+00> : vector<32xf32>
    %60 = vector.multi_reduction <add>, %59, %cst_33 [1] : vector<32x32xf32> to vector<32xf32>
    %61 = vector.shape_cast %60 : vector<32xf32> to vector<32x1xf32>
    %62 = tpu.reciprocal %61 {approx = true} : vector<32x1xf32> -> vector<32x1xf32>
    %63 = vector.broadcast %62 : vector<32x1xf32> to vector<32x32xf32>
    %64 = arith.mulf %59, %63 : vector<32x32xf32>
    %cst_34 = arith.constant dense<0.000000e+00> : vector<32x8xf32>
    %65 = tpu.matmul %64, %51, %cst_34 {dimension_numbers = #tpu.dot_dimension_numbers<[1], [0], [0], [1], [0, 0, 1, 1], [], []>} : vector<32x32xf32>, vector<32x8xf32>, vector<32x8xf32> -> vector<32x8xf32>
    %66 = vector.extract_strided_slice %45 {offsets = [0, 0], sizes = [8, 32], strides = [1, 1]} : vector<32x32xf32> to vector<8x32xf32>
    %cst_35 = arith.constant dense<0.000000e+00> : vector<32x32xf32>
    %67 = tpu.matmul %65, %66, %cst_35 {dimension_numbers = #tpu.dot_dimension_numbers<[1], [0], [0], [1], [0, 0, 1, 1], [], []>} : vector<32x8xf32>, vector<8x32xf32>, vector<32x32xf32> -> vector<32x32xf32>
    %68 = arith.addf %46, %67 : vector<32x32xf32>
    %69 = vector.extract_strided_slice %44 {offsets = [0, 8], sizes = [32, 8], strides = [1, 1]} : vector<32x96xf32> to vector<32x8xf32>
    %cst_36 = arith.constant 0.353553385 : f32
    %70 = vector.broadcast %cst_36 : f32 to vector<32x8xf32>
    %71 = arith.mulf %69, %70 : vector<32x8xf32>
    %72 = vector.extract_strided_slice %44 {offsets = [0, 40], sizes = [32, 8], strides = [1, 1]} : vector<32x96xf32> to vector<32x8xf32>
    %73 = vector.extract_strided_slice %44 {offsets = [0, 72], sizes = [32, 8], strides = [1, 1]} : vector<32x96xf32> to vector<32x8xf32>
    %74 = tpu.transpose %72, [1, 0] : vector<32x8xf32> -> vector<8x32xf32>
    %cst_37 = arith.constant dense<0.000000e+00> : vector<32x32xf32>
    %75 = tpu.matmul %71, %74, %cst_37 {dimension_numbers = #tpu.dot_dimension_numbers<[1], [0], [0], [1], [0, 0, 1, 1], [], []>} : vector<32x8xf32>, vector<8x32xf32>, vector<32x32xf32> -> vector<32x32xf32>
    %76 = arith.addf %75, %4 : vector<32x32xf32>
    %cst_38 = arith.constant dense<0xFF800000> : vector<32xf32>
    %77 = vector.multi_reduction <maximumf>, %76, %cst_38 [1] : vector<32x32xf32> to vector<32xf32>
    %78 = vector.shape_cast %77 : vector<32xf32> to vector<32x1xf32>
    %79 = vector.broadcast %78 : vector<32x1xf32> to vector<32x32xf32>
    %80 = arith.subf %76, %79 : vector<32x32xf32>
    %81 = math.exp %80 : vector<32x32xf32>
    %cst_39 = arith.constant dense<0.000000e+00> : vector<32xf32>
    %82 = vector.multi_reduction <add>, %81, %cst_39 [1] : vector<32x32xf32> to vector<32xf32>
    %83 = vector.shape_cast %82 : vector<32xf32> to vector<32x1xf32>
    %84 = tpu.reciprocal %83 {approx = true} : vector<32x1xf32> -> vector<32x1xf32>
    %85 = vector.broadcast %84 : vector<32x1xf32> to vector<32x32xf32>
    %86 = arith.mulf %81, %85 : vector<32x32xf32>
    %cst_40 = arith.constant dense<0.000000e+00> : vector<32x8xf32>
    %87 = tpu.matmul %86, %73, %cst_40 {dimension_numbers = #tpu.dot_dimension_numbers<[1], [0], [0], [1], [0, 0, 1, 1], [], []>} : vector<32x32xf32>, vector<32x8xf32>, vector<32x8xf32> -> vector<32x8xf32>
    %88 = vector.extract_strided_slice %45 {offsets = [8, 0], sizes = [8, 32], strides = [1, 1]} : vector<32x32xf32> to vector<8x32xf32>
    %cst_41 = arith.constant dense<0.000000e+00> : vector<32x32xf32>
    %89 = tpu.matmul %87, %88, %cst_41 {dimension_numbers = #tpu.dot_dimension_numbers<[1], [0], [0], [1], [0, 0, 1, 1], [], []>} : vector<32x8xf32>, vector<8x32xf32>, vector<32x32xf32> -> vector<32x32xf32>
    %90 = arith.addf %68, %89 : vector<32x32xf32>
    %91 = vector.extract_strided_slice %44 {offsets = [0, 16], sizes = [32, 8], strides = [1, 1]} : vector<32x96xf32> to vector<32x8xf32>
    %cst_42 = arith.constant 0.353553385 : f32
    %92 = vector.broadcast %cst_42 : f32 to vector<32x8xf32>
    %93 = arith.mulf %91, %92 : vector<32x8xf32>
    %94 = vector.extract_strided_slice %44 {offsets = [0, 48], sizes = [32, 8], strides = [1, 1]} : vector<32x96xf32> to vector<32x8xf32>
    %95 = vector.extract_strided_slice %44 {offsets = [0, 80], sizes = [32, 8], strides = [1, 1]} : vector<32x96xf32> to vector<32x8xf32>
    %96 = tpu.transpose %94, [1, 0] : vector<32x8xf32> -> vector<8x32xf32>
    %cst_43 = arith.constant dense<0.000000e+00> : vector<32x32xf32>
    %97 = tpu.matmul %93, %96, %cst_43 {dimension_numbers = #tpu.dot_dimension_numbers<[1], [0], [0], [1], [0, 0, 1, 1], [], []>} : vector<32x8xf32>, vector<8x32xf32>, vector<32x32xf32> -> vector<32x32xf32>
    %98 = arith.addf %97, %4 : vector<32x32xf32>
    %cst_44 = arith.constant dense<0xFF800000> : vector<32xf32>
    %99 = vector.multi_reduction <maximumf>, %98, %cst_44 [1] : vector<32x32xf32> to vector<32xf32>
    %100 = vector.shape_cast %99 : vector<32xf32> to vector<32x1xf32>
    %101 = vector.broadcast %100 : vector<32x1xf32> to vector<32x32xf32>
    %102 = arith.subf %98, %101 : vector<32x32xf32>
    %103 = math.exp %102 : vector<32x32xf32>
    %cst_45 = arith.constant dense<0.000000e+00> : vector<32xf32>
    %104 = vector.multi_reduction <add>, %103, %cst_45 [1] : vector<32x32xf32> to vector<32xf32>
    %105 = vector.shape_cast %104 : vector<32xf32> to vector<32x1xf32>
    %106 = tpu.reciprocal %105 {approx = true} : vector<32x1xf32> -> vector<32x1xf32>
    %107 = vector.broadcast %106 : vector<32x1xf32> to vector<32x32xf32>
    %108 = arith.mulf %103, %107 : vector<32x32xf32>
    %cst_46 = arith.constant dense<0.000000e+00> : vector<32x8xf32>
    %109 = tpu.matmul %108, %95, %cst_46 {dimension_numbers = #tpu.dot_dimension_numbers<[1], [0], [0], [1], [0, 0, 1, 1], [], []>} : vector<32x32xf32>, vector<32x8xf32>, vector<32x8xf32> -> vector<32x8xf32>
    %110 = vector.extract_strided_slice %45 {offsets = [16, 0], sizes = [8, 32], strides = [1, 1]} : vector<32x32xf32> to vector<8x32xf32>
    %cst_47 = arith.constant dense<0.000000e+00> : vector<32x32xf32>
    %111 = tpu.matmul %109, %110, %cst_47 {dimension_numbers = #tpu.dot_dimension_numbers<[1], [0], [0], [1], [0, 0, 1, 1], [], []>} : vector<32x8xf32>, vector<8x32xf32>, vector<32x32xf32> -> vector<32x32xf32>
    %112 = arith.addf %90, %111 : vector<32x32xf32>
    %113 = vector.extract_strided_slice %44 {offsets = [0, 24], sizes = [32, 8], strides = [1, 1]} : vector<32x96xf32> to vector<32x8xf32>
    %cst_48 = arith.constant 0.353553385 : f32
    %114 = vector.broadcast %cst_48 : f32 to vector<32x8xf32>
    %115 = arith.mulf %113, %114 : vector<32x8xf32>
    %116 = vector.extract_strided_slice %44 {offsets = [0, 56], sizes = [32, 8], strides = [1, 1]} : vector<32x96xf32> to vector<32x8xf32>
    %117 = vector.extract_strided_slice %44 {offsets = [0, 88], sizes = [32, 8], strides = [1, 1]} : vector<32x96xf32> to vector<32x8xf32>
    %118 = tpu.transpose %116, [1, 0] : vector<32x8xf32> -> vector<8x32xf32>
    %cst_49 = arith.constant dense<0.000000e+00> : vector<32x32xf32>
    %119 = tpu.matmul %115, %118, %cst_49 {dimension_numbers = #tpu.dot_dimension_numbers<[1], [0], [0], [1], [0, 0, 1, 1], [], []>} : vector<32x8xf32>, vector<8x32xf32>, vector<32x32xf32> -> vector<32x32xf32>
    %120 = arith.addf %119, %4 : vector<32x32xf32>
    %cst_50 = arith.constant dense<0xFF800000> : vector<32xf32>
    %121 = vector.multi_reduction <maximumf>, %120, %cst_50 [1] : vector<32x32xf32> to vector<32xf32>
    %122 = vector.shape_cast %121 : vector<32xf32> to vector<32x1xf32>
    %123 = vector.broadcast %122 : vector<32x1xf32> to vector<32x32xf32>
    %124 = arith.subf %120, %123 : vector<32x32xf32>
    %125 = math.exp %124 : vector<32x32xf32>
    %cst_51 = arith.constant dense<0.000000e+00> : vector<32xf32>
    %126 = vector.multi_reduction <add>, %125, %cst_51 [1] : vector<32x32xf32> to vector<32xf32>
    %127 = vector.shape_cast %126 : vector<32xf32> to vector<32x1xf32>
    %128 = tpu.reciprocal %127 {approx = true} : vector<32x1xf32> -> vector<32x1xf32>
    %129 = vector.broadcast %128 : vector<32x1xf32> to vector<32x32xf32>
    %130 = arith.mulf %125, %129 : vector<32x32xf32>
    %cst_52 = arith.constant dense<0.000000e+00> : vector<32x8xf32>
    %131 = tpu.matmul %130, %117, %cst_52 {dimension_numbers = #tpu.dot_dimension_numbers<[1], [0], [0], [1], [0, 0, 1, 1], [], []>} : vector<32x32xf32>, vector<32x8xf32>, vector<32x8xf32> -> vector<32x8xf32>
    %132 = vector.extract_strided_slice %45 {offsets = [24, 0], sizes = [8, 32], strides = [1, 1]} : vector<32x32xf32> to vector<8x32xf32>
    %cst_53 = arith.constant dense<0.000000e+00> : vector<32x32xf32>
    %133 = tpu.matmul %131, %132, %cst_53 {dimension_numbers = #tpu.dot_dimension_numbers<[1], [0], [0], [1], [0, 0, 1, 1], [], []>} : vector<32x8xf32>, vector<8x32xf32>, vector<32x32xf32> -> vector<32x32xf32>
    %134 = arith.addf %112, %133 : vector<32x32xf32>
    %135 = arith.addf %17, %134 : vector<32x32xf32>
    %136 = vector.broadcast %8 : vector<1x32xf32> to vector<32x32xf32>
    %137 = arith.addf %135, %136 : vector<32x32xf32>
    %cst_54 = arith.constant dense<0.000000e+00> : vector<32xf32>
    %138 = vector.multi_reduction <add>, %137, %cst_54 [1] : vector<32x32xf32> to vector<32xf32>
    %139 = vector.shape_cast %138 : vector<32xf32> to vector<32x1xf32>
    %cst_55 = arith.constant 3.200000e+01 : f32
    %140 = vector.broadcast %cst_55 : f32 to vector<32x1xf32>
    %141 = arith.divf %139, %140 : vector<32x1xf32>
    %142 = vector.broadcast %141 : vector<32x1xf32> to vector<32x32xf32>
    %143 = arith.subf %137, %142 : vector<32x32xf32>
    %144 = arith.mulf %143, %143 : vector<32x32xf32>
    %cst_56 = arith.constant dense<0.000000e+00> : vector<32xf32>
    %145 = vector.multi_reduction <add>, %144, %cst_56 [1] : vector<32x32xf32> to vector<32xf32>
    %146 = vector.shape_cast %145 : vector<32xf32> to vector<32x1xf32>
    %cst_57 = arith.constant 3.200000e+01 : f32
    %147 = vector.broadcast %cst_57 : f32 to vector<32x1xf32>
    %148 = arith.divf %146, %147 : vector<32x1xf32>
    %149 = vector.broadcast %141 : vector<32x1xf32> to vector<32x32xf32>
    %150 = arith.subf %137, %149 : vector<32x32xf32>
    %cst_58 = arith.constant 9.99999974E-6 : f32
    %151 = vector.broadcast %cst_58 : f32 to vector<32x1xf32>
    %152 = arith.addf %148, %151 : vector<32x1xf32>
    %153 = math.rsqrt %152 : vector<32x1xf32>
    %154 = vector.broadcast %153 : vector<32x1xf32> to vector<32x32xf32>
    %155 = arith.mulf %150, %154 : vector<32x32xf32>
    %156 = vector.broadcast %9 : vector<1x32xf32> to vector<32x32xf32>
    %157 = arith.mulf %155, %156 : vector<32x32xf32>
    %158 = vector.broadcast %10 : vector<1x32xf32> to vector<32x32xf32>
    %159 = arith.addf %157, %158 : vector<32x32xf32>
    %160 = arith.truncf %159 : vector<32x32xf32> to vector<32x32xbf16>
    %c0_59 = arith.constant 0 : index
    %c0_60 = arith.constant 0 : index
    %161 = vector.load %arg10[%c0_59, %c0_60] : memref<32x2048xbf16, #tpu.memory_space<vmem>>, vector<32x2048xbf16>
    %cst_61 = arith.constant dense<0.000000e+00> : vector<32x2048xf32>
    %162 = tpu.matmul %160, %161, %cst_61 {dimension_numbers = #tpu.dot_dimension_numbers<[1], [0], [0], [1], [0, 0, 1, 1], [], []>} : vector<32x32xbf16>, vector<32x2048xbf16>, vector<32x2048xf32> -> vector<32x2048xf32>
    %c0_62 = arith.constant 0 : index
    %c0_63 = arith.constant 0 : index
    %163 = vector.load %arg11[%c0_62, %c0_63] : memref<1x2048xf32, #tpu.memory_space<vmem>>, vector<1x2048xf32>
    %164 = vector.broadcast %163 : vector<1x2048xf32> to vector<32x2048xf32>
    %165 = arith.addf %162, %164 : vector<32x2048xf32>
    %cst_64 = arith.constant 0.000000e+00 : f32
    %166 = vector.broadcast %cst_64 : f32 to vector<32x2048xf32>
    %167 = arith.maximumf %165, %166 : vector<32x2048xf32>
    %168 = arith.truncf %167 : vector<32x2048xf32> to vector<32x2048xbf16>
    %c0_65 = arith.constant 0 : index
    %c0_66 = arith.constant 0 : index
    %169 = vector.load %arg12[%c0_65, %c0_66] : memref<2048x32xbf16, #tpu.memory_space<vmem>>, vector<2048x32xbf16>
    %cst_67 = arith.constant dense<0.000000e+00> : vector<32x32xf32>
    %170 = tpu.matmul %168, %169, %cst_67 {dimension_numbers = #tpu.dot_dimension_numbers<[1], [0], [0], [1], [0, 0, 1, 1], [], []>} : vector<32x2048xbf16>, vector<2048x32xbf16>, vector<32x32xf32> -> vector<32x32xf32>
    %171 = vector.broadcast %11 : vector<1x32xf32> to vector<32x32xf32>
    %172 = arith.addf %170, %171 : vector<32x32xf32>
    %173 = arith.addf %137, %172 : vector<32x32xf32>
    %174 = vector.extract_strided_slice %173 {offsets = [0, 0], sizes = [8, 32], strides = [1, 1]} : vector<32x32xf32> to vector<8x32xf32>
    %cst_68 = arith.constant dense<0xFF800000> : vector<32xf32>
    %175 = vector.multi_reduction <maximumf>, %174, %cst_68 [0] : vector<8x32xf32> to vector<32xf32>
    %176 = vector.shape_cast %175 : vector<32xf32> to vector<1x32xf32>
    %177 = vector.extract_strided_slice %173 {offsets = [8, 0], sizes = [8, 32], strides = [1, 1]} : vector<32x32xf32> to vector<8x32xf32>
    %cst_69 = arith.constant dense<0xFF800000> : vector<32xf32>
    %178 = vector.multi_reduction <maximumf>, %177, %cst_69 [0] : vector<8x32xf32> to vector<32xf32>
    %179 = vector.shape_cast %178 : vector<32xf32> to vector<1x32xf32>
    %180 = vector.extract_strided_slice %173 {offsets = [16, 0], sizes = [8, 32], strides = [1, 1]} : vector<32x32xf32> to vector<8x32xf32>
    %cst_70 = arith.constant dense<0xFF800000> : vector<32xf32>
    %181 = vector.multi_reduction <maximumf>, %180, %cst_70 [0] : vector<8x32xf32> to vector<32xf32>
    %182 = vector.shape_cast %181 : vector<32xf32> to vector<1x32xf32>
    %183 = vector.extract_strided_slice %173 {offsets = [24, 0], sizes = [8, 32], strides = [1, 1]} : vector<32x32xf32> to vector<8x32xf32>
    %cst_71 = arith.constant dense<0xFF800000> : vector<32xf32>
    %184 = vector.multi_reduction <maximumf>, %183, %cst_71 [0] : vector<8x32xf32> to vector<32xf32>
    %185 = vector.shape_cast %184 : vector<32xf32> to vector<1x32xf32>
    %186 = tpu.concatenate %176, %179, %182, %185 in 0 : vector<1x32xf32>, vector<1x32xf32>, vector<1x32xf32>, vector<1x32xf32> -> vector<4x32xf32>
    %c0_72 = arith.constant 0 : index
    %c0_73 = arith.constant 0 : index
    %c0_74 = arith.constant 0 : index
    %187 = vector.load %arg3[%c0_72, %c0_73, %c0_74] : memref<1x4x32xf32, #tpu.memory_space<vmem>>, vector<1x4x32xf32>
    %188 = vector.shape_cast %187 : vector<1x4x32xf32> to vector<4x32xf32>
    %189 = arith.addf %186, %188 : vector<4x32xf32>
    %c0_75 = arith.constant 0 : index
    %c0_76 = arith.constant 0 : index
    %c0_77 = arith.constant 0 : index
    %190 = vector.load %arg13[%c0_75, %c0_76, %c0_77] : memref<1x4x32xf32, #tpu.memory_space<vmem>>, vector<1x4x32xf32>
    %191 = vector.shape_cast %190 : vector<1x4x32xf32> to vector<4x32xf32>
    %192 = vector.shape_cast %189 : vector<4x32xf32> to vector<1x4x32xf32>
    tpu.vector_store %arg13[%c0_75, %c0_76, %c0_77], %192 {strides = array<i32>} : memref<1x4x32xf32, #tpu.memory_space<vmem>>, vector<1x4x32xf32>,
    return
  }
  func.func @transform_0(%arg0: i32) -> (i32, i32, i32) {
    %c0_i32 = arith.constant 0 : i32
    %c0_i32_0 = arith.constant 0 : i32
    %c0_i32_1 = arith.constant 0 : i32
    return %arg0, %c0_i32, %c0_i32_0 : i32, i32, i32
  }
  func.func @transform_1(%arg0: i32) -> (i32, i32, i32) {
    %c0_i32 = arith.constant 0 : i32
    %c0_i32_0 = arith.constant 0 : i32
    %c0_i32_1 = arith.constant 0 : i32
    return %arg0, %c0_i32, %c0_i32_0 : i32, i32, i32
  }
  func.func @transform_2(%arg0: i32) -> (i32, i32, i32) {
    %c0_i32 = arith.constant 0 : i32
    %c0_i32_0 = arith.constant 0 : i32
    %c0_i32_1 = arith.constant 0 : i32
    return %arg0, %c0_i32, %c0_i32_0 : i32, i32, i32
  }
  func.func @transform_3(%arg0: i32) -> (i32, i32) {
    %c0_i32 = arith.constant 0 : i32
    %c0_i32_0 = arith.constant 0 : i32
    %c0_i32_1 = arith.constant 0 : i32
    return %c0_i32, %c0_i32_0 : i32, i32
  }
  func.func @transform_4(%arg0: i32) -> (i32, i32) {
    %c0_i32 = arith.constant 0 : i32
    %c0_i32_0 = arith.constant 0 : i32
    %c0_i32_1 = arith.constant 0 : i32
    return %c0_i32, %c0_i32_0 : i32, i32
  }
  func.func @transform_5(%arg0: i32) -> (i32, i32) {
    %c0_i32 = arith.constant 0 : i32
    %c0_i32_0 = arith.constant 0 : i32
    %c0_i32_1 = arith.constant 0 : i32
    return %c0_i32, %c0_i32_0 : i32, i32
  }
  func.func @transform_6(%arg0: i32) -> (i32, i32) {
    %c0_i32 = arith.constant 0 : i32
    %c0_i32_0 = arith.constant 0 : i32
    %c0_i32_1 = arith.constant 0 : i32
    return %c0_i32, %c0_i32_0 : i32, i32
  }
  func.func @transform_7(%arg0: i32) -> (i32, i32) {
    %c0_i32 = arith.constant 0 : i32
    %c0_i32_0 = arith.constant 0 : i32
    %c0_i32_1 = arith.constant 0 : i32
    return %c0_i32, %c0_i32_0 : i32, i32
  }
  func.func @transform_8(%arg0: i32) -> (i32, i32) {
    %c0_i32 = arith.constant 0 : i32
    %c0_i32_0 = arith.constant 0 : i32
    %c0_i32_1 = arith.constant 0 : i32
    return %c0_i32, %c0_i32_0 : i32, i32
  }
  func.func @transform_9(%arg0: i32) -> (i32, i32) {
    %c0_i32 = arith.constant 0 : i32
    %c0_i32_0 = arith.constant 0 : i32
    %c0_i32_1 = arith.constant 0 : i32
    return %c0_i32, %c0_i32_0 : i32, i32
  }
  func.func @transform_10(%arg0: i32) -> (i32, i32) {
    %c0_i32 = arith.constant 0 : i32
    %c0_i32_0 = arith.constant 0 : i32
    %c0_i32_1 = arith.constant 0 : i32
    return %c0_i32, %c0_i32_0 : i32, i32
  }
  func.func @transform_11(%arg0: i32) -> (i32, i32) {
    %c0_i32 = arith.constant 0 : i32
    %c0_i32_0 = arith.constant 0 : i32
    %c0_i32_1 = arith.constant 0 : i32
    return %c0_i32, %c0_i32_0 : i32, i32
  }
  func.func @transform_12(%arg0: i32) -> (i32, i32, i32) {
    %c0_i32 = arith.constant 0 : i32
    %c0_i32_0 = arith.constant 0 : i32
    %c0_i32_1 = arith.constant 0 : i32
    return %arg0, %c0_i32, %c0_i32_0 : i32, i32, i32
  }
}

</mosaic_0001>

<bundles_post_ra>
// kernel: tpu_custom_call.1
= control target key start
LH: loop header
LB: loop body
LE: loop exit
PB: predicated region body
PF: predicated region fallthrough
CT: control target
= control target key end

     0   :  { %s6264_s0 = inlined_call_operand.vmem [shape: f32[2,32,8], index: 0, kind: input, shape index: {}]   ;;  %s6265_s1 = inlined_call_operand.vmem [shape: f32[2,32,1], index: 1, kind: input, shape index: {}]   ;;  %s6266_s2 = inlined_call_operand.vmem [shape: f32[2,4,32], index: 2, kind: input, shape index: {}]   ;;  %s6267_s3 = inlined_call_operand.vmem [shape: f32[32,32], index: 3, kind: input, shape index: {}]   ;;  %s6268_s4 = inlined_call_operand.vmem [shape: f32[8,32], index: 4, kind: input, shape index: {}]   ;;  %s6269_s5 = inlined_call_operand.vmem [shape: f32[32,96], index: 5, kind: input, shape index: {}]   ;;  %s6270_s6 = inlined_call_operand.vmem [shape: f32[1,96], index: 6, kind: input, shape index: {}]   ;;  %s6271_s7 = inlined_call_operand.vmem [shape: f32[32,32], index: 7, kind: input, shape index: {}]   ;;  %s6272_s8 = inlined_call_operand.vmem [shape: f32[7,32], index: 8, kind: input, shape index: {}]   ;;  %s6273_s9 = inlined_call_operand.vmem [shape: bf16[32,2048], index: 9, kind: input, shape index: {}]   ;;  %s6274_s10 = inlined_call_operand.vmem [shape: f32[1,2048], index: 10, kind: input, shape index: {}]   ;;  %s6275_s11 = inlined_call_operand.vmem [shape: bf16[2048,32], index: 11, kind: input, shape index: {}]   ;;  %s6276_s12 = inlined_call_operand.hbm [shape: f32[2,4,32], index: 12, kind: output, shape index: {}]  }
   0x1   :  { %6277 = sst [smem:[#allocation5_spill]] %s6264_s0 }
   0x2   :  { %6278 = sst [smem:[#allocation6_spill]] %s6265_s1 }
   0x3   :  { %6279 = sst [smem:[#allocation7_spill]] %s6267_s3 }
   0x4   :  { %6280 = sst [smem:[#allocation8_spill]] %s6268_s4 }
   0x5   :  { %17 = vsyncpa [#allocation3], 0 }
   0x6   :  { %19 = vsyncpa [#allocation3 + $0x1], 0  ;;  %s4968_s21 = smov 0   ;;  %s4970_s22 = smov 0  }
   0x7   :  { %s4972_s23 = smov 0   ;;  %s4974_s24 = smov 0  }
   0x8 LB: > { %s4989_s25 = sadd.s32 4294967295, %s4888_s24   ;;  %s3717_s26 = sadd.s32 4294967294, %s4888_s24   ;;  %s4888_s24 = sphi %s4974_s24, %s6292_s24   ;;  %s4884_s23 = sphi %s4972_s23, %s6291_s23   ;;  %s4880_s22 = sphi %s4970_s22, %s6290_s22   ;;  %s4876_s21 = sphi %s4968_s21, %s6289_s21  }
   0x9   : > { %s4993_s27 = sadd.s32 1, %s4888_s24   ;;  %s299_s28 = sadd.s32 1, %s4884_s23 }
   0xa   : > { %s296_s29 = ssub.s32 %s4888_s24, %s4993_s27  ;;  %p309_p0 = scmp.ne.s32.totalorder %s4884_s23, %s4880_s22 }
   0xb   : > { %p297_p1 = scmp.eq.s32.totalorder %s296_s29, 0  ;;  %p310_p2 = scmp.eq.s32.totalorder %s4989_s25, 1 }
   0xc   : > { %p315_p3 = scmp.ne.s32.totalorder %s4880_s22, %s4876_s21  ;;  %p316_p4 = scmp.eq.s32.totalorder %s3717_s26, 1 }
   0xd   : > { %s5004_s30 = scalar_select %p297_p1, %s4884_s23, %s299_s28  }
   0xe   : > { %p5006_p5 = por %p310_p2, %p309_p0  ;;  %p5010_p6 = por %p316_p4, %p315_p3 }
   0xf   : > { %p3720_p7 = scmp.ge.s32.totalorder %s4888_s24, 1  ;;  %p384_p8 = scmp.lt.s32.totalorder %s4888_s24, 3 }
  0x11   : > { %p385_p9 = pnand %p3720_p7, %p384_p8 }
  0x12   : > { %s6283_s4 = sld [smem:[#allocation8_spill]] (!%p385_p9)  ;;  %p435_p10 = scmp.lt.s32.totalorder (!%p385_p9), %s4989_s25, 1 }
  0x13   : > { %388 = sbr.rel (%p385_p9) target bundleno = 2687 (0xa7f), region = 68  ;;  %s6284_s0 = sld [smem:[#allocation5_spill]] (!%p385_p9) }
  0x14   : > { %s6285_s1 = sld [smem:[#allocation6_spill]] (!%p385_p9)  ;;  %s4892_s16 = smov (!%p385_p9), 96  }
  0x15   : > { %s6286_s3 = sld [smem:[#allocation7_spill]] (!%p385_p9)  ;;  %s4894_s19 = smov (!%p385_p9), 88  }
  0x16   : > { %s4895_s20 = smov (!%p385_p9), 120   ;;  %s4897_s28 = smov (!%p385_p9), 80  }
  0x17   : > { %s4898_s29 = smov (!%p385_p9), 104  }
  0x18   : > { %v469_v0 = vld [vmem:[%s6283_s4] sm:$0xff]  ;;  %s5021_s17 = scalar_select %p435_p10, %s4989_s25, 1  ;;  %v4890_v1 = vmov 0   ;;  %vm471_vm0 = vcmask 64512   ;;  %vm537_vm1 = vcmask 261120   ;;  %v4891_v31 = vmov 32.0  }
  0x19   : > { %499 = vmatpush.msra.mxu0 %v469_v0  ;;  %4637 = vmatpush.msra.mxu2 %v469_v0  ;;  %v4736_v10 = vld [vmem:[%s6272_s8] ss:$0 sm:$0xff]  ;;  %4744 = vrcp.f32 %v4891_v31  ;;  %v646_v58 = vld [vmem:[%s6269_s5 + $0x18] sm:$0xff]  ;;  %v645_v59 = vld [vmem:[%s6269_s5 + $0x10] sm:$0xff] }
  0x1a   : > { %4694 = vset.pattern.permute.xlu0 %v4890_v1  ;;  %4695 = vset.pattern.permute.xlu1 %v4890_v1  ;;  %s4475_s18 = sshll.u32 %s5021_s17, 5  ;;  %v644_v60 = vld [vmem:[%s6269_s5 + $0x8] sm:$0xff]  ;;  %v643_v61 = vld [vmem:[%s6269_s5] sm:$0xff] }
  0x1b   : > { %s439_s26 = scalar_lea.vmem %s6284_s0, %s4475_s18  ;;  %s444_s15 = scalar_lea.vmem %s6285_s1, %s4475_s18  ;;  %4638 = vmatpush.msra.mxu3 %v646_v58  ;;  %675 = vmatpush.msra.mxu1 %v646_v58 }
  0x1c   : > { %v450_v2 = vld [vmem:[%s439_s26] sm:$0xff]  ;;  %v452_v3 = vld [vmem:[%s439_s26 + $0x10] sm:$0xff]  ;;  %v451_v6 = vld [vmem:[%s439_s26 + $0x8] sm:$0xff]  ;;  %s4893_s18 = smov 64  }
  0x1d   : > { %3727 = vmatmul.msk.f32.vlgmr.msra.gmra.mxu0 %vm471_vm0, %v450_v2  ;;  %3729 = vmatmul.msk.f32.vlgmr.msra.gmra.mxu2 %vm471_vm0, %v452_v3  ;;  %v456_v4 = vld [vmem:[%s444_s15 + $0x10] sm:$0xff]  ;;  %v454_v5 = vld [vmem:[%s444_s15] sm:$0xff]  ;;  %v453_v7 = vld [vmem:[%s439_s26 + $0x18] sm:$0xff]  ;;  %s4896_s26 = smov 72  }
  0x1e   : > { %525 = vperm.xlu0 %4694, %v456_v4   ;;  %515 = vperm.xlu1 %4695, %v454_v5   ;;  %v457_v8 = vld [vmem:[%s444_s15 + $0x18] sm:$0xff]  ;;  %v455_v9 = vld [vmem:[%s444_s15 + $0x8] sm:$0xff]  ;;  %s4899_s15 = smov 112  }
  0x1f   : > { %v4745_v32 = vpop.eup %4744  ;;  %4639 = vmatpush.msra.mxu3 %v645_v59  ;;  %676 = vmatpush.msra.mxu1 %v645_v59 }
  0x20   : > { %v551_v33 = vmul.f32 32.0, %v4745_v32  ;;  %vm555_vm2 = vweird.f32 %v4745_v32 }
  0x21   : > { %4640 = vmatpush.msra.mxu3 %v644_v60  ;;  %677 = vmatpush.msra.mxu1 %v644_v60 }
  0x22   : > { %v552_v34 = vsub.f32 1.0, %v551_v33 }
  0x23   : > { %4641 = vmatpush.msra.mxu3 %v643_v61  ;;  %678 = vmatpush.msra.mxu1 %v643_v61 }
  0x24   : > { %v553_v35 = vmul.f32 %v4745_v32, %v552_v34 }
  0x25   : > { %3728 = vmatmul.msk.f32.gmra.mxu0 %vm471_vm0, %v451_v6  ;;  %3730 = vmatmul.msk.f32.gmra.mxu2 %vm471_vm0, %v453_v7 }
  0x26   : > { %530 = vperm.xlu0 %4694, %v457_v8   ;;  %520 = vperm.xlu1 %4695, %v455_v9   ;;  %v554_v36 = vadd.f32 %v4745_v32, %v553_v35 }
  0x28   : > { %v5053_v37 = vsel %vm555_vm2, %v4745_v32, %v554_v36 }
  0x90   : > { %v516_v11 = vpop.permute.xlu1 %515  ;;  %v526_v16 = vpop.permute.xlu0 %525 }
  0x98   : > { %v521_v20 = vpop.permute.xlu1 %520  ;;  %v531_v28 = vpop.permute.xlu0 %530 }
  0x9a   : > { %v501_v12 = vpop.f32.mrf.mxu0 }
  0x9b   : > { %v502_v13 = vadd.f32 %v4736_v10, %v501_v12 }
  0x9d   : > { %v5037_v14 = vmul.f32 %v516_v11, %v502_v13 }
  0x9f   : > { %v538_v15 = vsel %vm537_vm1, %v5037_v14, 0.0 }
  0xa0   : > { %v507_v17 = vpop.f32.mrf.mxu2  ;;  %539 = vadd.xlane.f32.xlu0 %v538_v15 }
  0xa1   : > { %v508_v18 = vadd.f32 %v4736_v10, %v507_v17 }
  0xa2   : > { %v504_v19 = vpop.f32.mrf.mxu0 }
  0xa3   : > { %v5041_v21 = vmul.f32 %v526_v16, %v508_v18  ;;  %v505_v22 = vadd.f32 %v4736_v10, %v504_v19  ;;  %v4737_v16 = vld [vmem:[%s6272_s8 + $0x1] ss:$0 sm:$0xff] }
  0xa5   : > { %v5043_v23 = vmul.f32 %v521_v20, %v505_v22  ;;  %v544_v24 = vsel %vm537_vm1, %v5041_v21, 0.0  ;;  %v4738_v20 = vld [vmem:[%s6272_s8 + $0x2] ss:$0 sm:$0xff] }
  0xa6   : > { %545 = vadd.xlane.f32.xlu2 %v544_v24 }
  0xa7   : > { %v541_v25 = vsel %vm537_vm1, %v5043_v23, 0.0 }
  0xa8   : > { %v510_v26 = vpop.f32.mrf.mxu2  ;;  %542 = vadd.xlane.f32.xlu1 %v541_v25 }
  0xa9   : > { %v511_v27 = vadd.f32 %v4736_v10, %v510_v26 }
  0xab   : > { %v5049_v29 = vmul.f32 %v531_v28, %v511_v27 }
  0xad   : > { %v547_v30 = vsel %vm537_vm1, %v5049_v29, 0.0 }
  0xae   : > { %548 = vadd.xlane.f32.xlu2 %v547_v30 }
 0x113   : > { %v540_v43 = vpop.xlane.xlu0 %539 }
 0x114   : > { %v557_v46 = vmul.f32 %v5053_v37, %v540_v43 }
 0x116   : > { %v5066_v49 = vsub.f32 %v5037_v14, %v557_v46 }
 0x118   : > { %v565_v53 = vmul.f32 %v5066_v49, %v5066_v49 }
 0x119   : > { %v546_v38 = vpop.xlane.xlu2 %545 }
 0x11a   : > { %v559_v39 = vmul.f32 %v5053_v37, %v546_v38  ;;  %v569_v55 = vsel %vm537_vm1, %v565_v53, 0.0 }
 0x11b   : > { %v543_v51 = vpop.xlane.xlu1 %542 }
 0x11c   : > { %v563_v40 = vsub.f32 %v5041_v21, %v559_v39  ;;  %v558_v52 = vmul.f32 %v5053_v37, %v543_v51 }
 0x11e   : > { %v567_v41 = vmul.f32 %v563_v40, %v563_v40  ;;  %v5073_v54 = vsub.f32 %v5043_v23, %v558_v52 }
 0x120   : > { %v575_v42 = vsel %vm537_vm1, %v567_v41, 0.0  ;;  %v566_v56 = vmul.f32 %v5073_v54, %v5073_v54 }
 0x121   : > { %576 = vadd.xlane.f32.xlu2 %v575_v42  ;;  %v549_v44 = vpop.xlane.xlu2 %548 }
 0x122   : > { %v560_v45 = vmul.f32 %v5053_v37, %v549_v44  ;;  %v572_v57 = vsel %vm537_vm1, %v566_v56, 0.0 }
 0x124   : > { %v5061_v47 = vsub.f32 %v5049_v29, %v560_v45 }
 0x126   : > { %v568_v48 = vmul.f32 %v5061_v47, %v5061_v47 }
 0x128   : > { %v578_v50 = vsel %vm537_vm1, %v568_v48, 0.0 }
 0x129   : > { %579 = vadd.xlane.f32.xlu2 %v578_v50 }
 0x131   : > { %570 = vadd.xlane.f32.xlu2 %v569_v55 }
 0x139   : > { %573 = vadd.xlane.f32.xlu2 %v572_v57 }
 0x194   : > { %v577_v62 = vpop.xlane.xlu2 %576 }
 0x195   : > { %v583_v63 = vmul.f32 %v577_v62, %v5053_v37 }
 0x197   : > { %v587_v0 = vadd.f32 1e-05, %v583_v63 }
 0x199   : > { %4746 = vrsqrt.f32 %v587_v0  ;;  %vm615_vm4 = vweird.f32 %v587_v0 }
 0x19c   : > { %v580_v1 = vpop.xlane.xlu2 %579 }
 0x19d   : > { %v584_v2 = vmul.f32 %v580_v1, %v5053_v37 }
 0x19f   : > { %v4747_v3 = vpop.eup %4746  ;;  %v588_v4 = vadd.f32 1e-05, %v584_v2 }
 0x1a0   : > { %v610_v5 = vmul.f32 %v4747_v3, %v587_v0  ;;  %vm616_vm3 = vweird.f32 %v4747_v3 }
 0x1a1   : > { %4748 = vrsqrt.f32 %v588_v4  ;;  %vm617_vm5 = vmor %vm615_vm4, %vm616_vm3  ;;  %vm625_vm7 = vweird.f32 %v588_v4 }
 0x1a2   : > { %v611_v6 = vmul.f32 %v4747_v3, %v610_v5 }
 0x1a4   : > { %v612_v7 = vmul.f32 0.5, %v611_v6  ;;  %v571_v8 = vpop.xlane.xlu2 %570 }
 0x1a5   : > { %v581_v9 = vmul.f32 %v571_v8, %v5053_v37 }
 0x1a6   : > { %v613_v10 = vsub.f32 1.5, %v612_v7 }
 0x1a7   : > { %v4749_v11 = vpop.eup %4748  ;;  %v585_v12 = vadd.f32 1e-05, %v581_v9 }
 0x1a8   : > { %v614_v13 = vmul.f32 %v4747_v3, %v613_v10  ;;  %v620_v15 = vmul.f32 %v4749_v11, %v588_v4  ;;  %vm626_vm6 = vweird.f32 %v4749_v11  ;;  %v5140_v10 = vld [vmem:[%s6286_s3] sm:$0xff] }
 0x1a9   : > { %4750 = vrsqrt.f32 %v585_v12  ;;  %vm627_vm8 = vmor %vm625_vm7, %vm626_vm6  ;;  %vm595_vm10 = vweird.f32 %v585_v12 }
 0x1aa   : > { %v618_v17 = vsel %vm617_vm5, %v4747_v3, %v614_v13  ;;  %v621_v18 = vmul.f32 %v4749_v11, %v620_v15  ;;  %v5147_v15 = vld [vmem:[%s6286_s3 + $0x8] sm:$0xff] }
 0x1ab   : > { %v631_v19 = vmul.f32 %v618_v17, %v563_v40 }
 0x1ac   : > { %v622_v22 = vmul.f32 0.5, %v621_v18  ;;  %v574_v24 = vpop.xlane.xlu2 %573 }
 0x1ad   : > { %v582_v25 = vmul.f32 %v574_v24, %v5053_v37  ;;  %v636_v26 = vmul.f32 %v4737_v16, %v631_v19  ;;  %v5154_v19 = vld [vmem:[%s6286_s3 + $0x10] sm:$0xff] }
 0x1ae   : > { %v623_v27 = vsub.f32 1.5, %v622_v22 }
 0x1af   : > { %v4751_v28 = vpop.eup %4750  ;;  %v586_v30 = vadd.f32 1e-05, %v582_v25  ;;  %v641_v31 = vadd.f32 %v4738_v20, %v636_v26  ;;  %v5161_v25 = vld [vmem:[%s6286_s3 + $0x18] sm:$0xff] }
 0x1b0   : > { %v624_v32 = vmul.f32 %v4749_v11, %v623_v27  ;;  %v590_v33 = vmul.f32 %v4751_v28, %v585_v12  ;;  %vm596_vm9 = vweird.f32 %v4751_v28 }
 0x1b1   : > { %4752 = vrsqrt.f32 %v586_v30  ;;  %3733 = vmatmul.msk.f32.vlgmr.msra.gmra.mxu3 %vm537_vm1, %v641_v31  ;;  %vm597_vm11 = vmor %vm595_vm10, %vm596_vm9  ;;  %vm605_vm13 = vweird.f32 %v586_v30 }
 0x1b2   : > { %v628_v34 = vsel %vm627_vm8, %v4749_v11, %v624_v32  ;;  %v591_v35 = vmul.f32 %v4751_v28, %v590_v33 }
 0x1b3   : > { %v632_v36 = vmul.f32 %v628_v34, %v5061_v47 }
 0x1b4   : > { %v592_v38 = vmul.f32 0.5, %v591_v35 }
 0x1b5   : > { %v637_v39 = vmul.f32 %v4737_v16, %v632_v36 }
 0x1b6   : > { %v593_v40 = vsub.f32 1.5, %v592_v38 }
 0x1b7   : > { %v4753_v41 = vpop.eup %4752  ;;  %v642_v42 = vadd.f32 %v4738_v20, %v637_v39 }
 0x1b8   : > { %v594_v43 = vmul.f32 %v4751_v28, %v593_v40  ;;  %v600_v44 = vmul.f32 %v4753_v41, %v586_v30  ;;  %vm606_vm12 = vweird.f32 %v4753_v41 }
 0x1b9   : > { %3734 = vmatmul.msk.f32.gmra.mxu3 %vm537_vm1, %v642_v42  ;;  %vm607_vm14 = vmor %vm605_vm13, %vm606_vm12  ;;  %vm3608_vm12 = vcmask 1040384   ;;  %vm3610_vm13 = vcmask 1041408  }
 0x1ba   : > { %v598_v45 = vsel %vm597_vm11, %v4751_v28, %v594_v43  ;;  %v601_v46 = vmul.f32 %v4753_v41, %v600_v44 }
 0x1bb   : > { %v629_v48 = vmul.f32 %v598_v45, %v5066_v49  ;;  %v4739_v49 = vld [vmem:[%s6270_s6] ss:$0 sm:$0xff] }
 0x1bc   : > { %v602_v50 = vmul.f32 0.5, %v601_v46 }
 0x1bd   : > { %v634_v51 = vmul.f32 %v4737_v16, %v629_v48 }
 0x1be   : > { %v603_v52 = vsub.f32 1.5, %v602_v50 }
 0x1bf   : > { %v639_v47 = vadd.f32 %v4738_v20, %v634_v51 }
 0x1c0   : > { %v604_v53 = vmul.f32 %v4753_v41, %v603_v52 }
 0x1c1   : > { %3731 = vmatmul.msk.f32.vlgmr.msra.gmra.mxu1 %vm537_vm1, %v639_v47 }
 0x1c2   : > { %v608_v55 = vsel %vm607_vm14, %v4753_v41, %v604_v53  ;;  %vm3616_vm14 = vcmask 257024  }
 0x1c3   : > { %v630_v56 = vmul.f32 %v608_v55, %v5073_v54  ;;  %v692_v55 = vld [vmem:[%s6271_s7] sm:$0xff] }
 0x1c5   : > { %v635_v57 = vmul.f32 %v4737_v16, %v630_v56 }
 0x1c7   : > { %v640_v58 = vadd.f32 %v4738_v20, %v635_v57 }
 0x1c9   : > { %3732 = vmatmul.msk.f32.gmra.mxu1 %vm537_vm1, %v640_v58 }
 0x234   : > { %v686_v59 = vpop.f32.mrf.mxu3 }
 0x235   : > { %v5111_v60 = vadd.f32 %v4739_v49, %v686_v59 }
 0x237   : > { %708 = vrot.lane.b32.xlu0 %v5111_v60, %s4892_s16  ;;  %v5132_v8 = vmul.f32 0.35355338, %v5111_v60 }
 0x23c   : > { %v689_v61 = vpop.f32.mrf.mxu3 }
 0x23d   : > { %v690_v62 = vadd.f32 %v4739_v49, %v689_v61 }
 0x23e   : > { %v680_v63 = vpop.f32.mrf.mxu1 }
 0x23f   : > { %710 = vrot.lane.b32.xlu2 %v690_v62, %s4892_s16  ;;  %v5114_v0 = vadd.f32 %v4739_v49, %v680_v63  ;;  %v699_v9 = vmul.f32 0.35355338, %v690_v62  ;;  %v5166_v30 = vpack.i.bf16 %v5111_v60, %v690_v62 }
 0x241   : > { %v696_v6 = vmul.f32 0.35355338, %v5114_v0 }
 0x246   : > { %v683_v54 = vpop.f32.mrf.mxu1 }
 0x247   : > { %v5116_v1 = vadd.f32 %v4739_v49, %v683_v54  ;;  %704 = vrot.lane.b32.xlu2 %v5114_v0, %s4892_s16 }
 0x249   : > { %706 = vrot.lane.b32.xlu1 %v5116_v1, %s4892_s16  ;;  %v5127_v7 = vmul.f32 0.35355338, %v5116_v1  ;;  %v5171_v31 = vpack.i.bf16 %v5114_v0, %v5116_v1 }
 0x299   : > { %v711_v2 = vpop.permute.xlu2 %710 }
 0x29a   : > { %3735 = vmatpush.xpose.msk.msrb.mxu2 %vm471_vm0, %v711_v2 }
 0x2a1   : > { %v705_v5 = vpop.permute.xlu2 %704 }
 0x2a9   : > { %v709_v3 = vpop.permute.xlu0 %708 }
 0x2aa   : > { %3736 = vmatpush.xpose.msk.msrb.mxu2 %vm471_vm0, %v709_v3 }
 0x2bb   : > { %v707_v4 = vpop.permute.xlu1 %706 }
 0x2bc   : > { %3737 = vmatpush.xpose.msk.msrb.mxu2 %vm471_vm0, %v707_v4 }
 0x2c0   : > { %3738 = vmatpush.xpose.msk.msrb.mxu2 %vm471_vm0, %v705_v5 }
 0x2c3   : > { %3739 = vmatmul.msk.f32.vlgmr.msrb.gmra.mxu2 %vm471_vm0, %v696_v6 }
 0x2c4   : > { %1084 = vmatpush.msra.mxu2 %v692_v55 }
 0x2cb   : > { %3740 = vmatmul.msk.f32.gmra.mxu2 %vm471_vm0, %v5127_v7 }
 0x2d3   : > { %3741 = vmatmul.msk.f32.gmra.mxu2 %vm471_vm0, %v5132_v8 }
 0x2db   : > { %3742 = vmatmul.msk.f32.gmra.mxu2 %vm471_vm0, %v699_v9 }
 0x346   : > { %v749_v11 = vpop.f32.mrf.mxu2 }
 0x347   : > { %v750_v12 = vadd.f32 %v749_v11, %v5140_v10 }
 0x349   : > { %v761_v13 = vsel %vm537_vm1, %v750_v12, -inf }
 0x34a   : > { %762 = vmax.xlane.f32.xlu0 %v761_v13 }
 0x34e   : > { %v752_v16 = vpop.f32.mrf.mxu2 }
 0x34f   : > { %v753_v17 = vadd.f32 %v752_v16, %v5147_v15 }
 0x351   : > { %v764_v18 = vsel %vm537_vm1, %v753_v17, -inf }
 0x352   : > { %765 = vmax.xlane.f32.xlu2 %v764_v18 }
 0x356   : > { %v755_v20 = vpop.f32.mrf.mxu2 }
 0x357   : > { %v756_v22 = vadd.f32 %v755_v20, %v5154_v19 }
 0x359   : > { %v767_v24 = vsel %vm537_vm1, %v756_v22, -inf }
 0x35a   : > { %768 = vmax.xlane.f32.xlu1 %v767_v24 }
 0x35e   : > { %v758_v26 = vpop.f32.mrf.mxu2 }
 0x35f   : > { %v759_v27 = vadd.f32 %v758_v26, %v5161_v25 }
 0x361   : > { %v770_v28 = vsel %vm537_vm1, %v759_v27, -inf }
 0x362   : > { %771 = vmax.xlane.f32.xlu0 %v770_v28 }
 0x373   : > { %4697 = vrot.lane.b32.xlu1 %v5166_v30, %s4893_s18 }
 0x376   : > { %4702 = vrot.lane.b32.xlu0 %v5171_v31, %s4893_s18 }
 0x37b   : > { %870 = vrot.lane.b32.xlu1 %v5111_v60, %s4894_s19 }
 0x37e   : > { %872 = vrot.lane.b32.xlu0 %v690_v62, %s4894_s19 }
 0x383   : > { %858 = vrot.lane.b32.xlu1 %v696_v6, %s4895_s20 }
 0x386   : > { %866 = vrot.lane.b32.xlu0 %v5114_v0, %s4894_s19 }
 0x38b   : > { %862 = vrot.lane.b32.xlu1 %v5132_v8, %s4895_s20 }
 0x38e   : > { %860 = vrot.lane.b32.xlu0 %v5127_v7, %s4895_s20 }
 0x393   : > { %1315 = vrot.lane.b32.xlu1 %v690_v62, %s4896_s26 }
 0x396   : > { %1112 = vrot.lane.b32.xlu0 %v690_v62, %s4897_s28 }
 0x39b   : > { %864 = vrot.lane.b32.xlu1 %v699_v9, %s4895_s20  ;;  %s4901_s20 = smov 48  }
 0x39e   : > { %1313 = vrot.lane.b32.xlu0 %v5111_v60, %s4896_s26 }
 0x3a3   : > { %1106 = vrot.lane.b32.xlu1 %v5114_v0, %s4897_s28 }
 0x3a6   : > { %1311 = vrot.lane.b32.xlu0 %v5116_v1, %s4896_s26 }
 0x3ab   : > { %1301 = vrot.lane.b32.xlu1 %v696_v6, %s4898_s29 }
 0x3ae   : > { %1098 = vrot.lane.b32.xlu0 %v696_v6, %s4899_s15 }
 0x3b3   : > { %1102 = vrot.lane.b32.xlu1 %v5132_v8, %s4899_s15 }
 0x3b6   : > { %1303 = vrot.lane.b32.xlu0 %v5127_v7, %s4898_s29 }
 0x3bb   : > { %1307 = vrot.lane.b32.xlu1 %v699_v9, %s4898_s29 }
 0x3bd   : > { %v763_v32 = vpop.xlane.xlu0 %762 }
 0x3be   : > { %v773_v33 = vsub.f32 %v750_v12, %v763_v32  ;;  %1104 = vrot.lane.b32.xlu0 %v699_v9, %s4899_s15 }
 0x3c0   : > { %v777_v34 = vmul.f32 1.442695, %v773_v33 }
 0x3c2   : > { %4754 = vpow2.f32 %v777_v34 }
 0x3c5   : > { %v766_v35 = vpop.xlane.xlu2 %765 }
 0x3c6   : > { %v774_v36 = vsub.f32 %v753_v17, %v766_v35 }
 0x3c8   : > { %v4755_v38 = vpop.eup %4754  ;;  %v779_v39 = vmul.f32 1.442695, %v774_v36 }
 0x3c9   : > { %v785_v40 = vsel %vm537_vm1, %v4755_v38, 0.0 }
 0x3ca   : > { %4756 = vpow2.f32 %v779_v39  ;;  %786 = vadd.xlane.f32.xlu2 %v785_v40 }
 0x3cd   : > { %v769_v41 = vpop.xlane.xlu1 %768 }
 0x3ce   : > { %v775_v42 = vsub.f32 %v756_v22, %v769_v41 }
 0x3d0   : > { %v4757_v43 = vpop.eup %4756  ;;  %v781_v44 = vmul.f32 1.442695, %v775_v42 }
 0x3d1   : > { %v788_v45 = vsel %vm537_vm1, %v4757_v43, 0.0 }
 0x3d2   : > { %4758 = vpow2.f32 %v781_v44  ;;  %789 = vadd.xlane.f32.xlu2 %v788_v45 }
 0x3d5   : > { %v772_v46 = vpop.xlane.xlu0 %771 }
 0x3d6   : > { %v776_v48 = vsub.f32 %v759_v27, %v772_v46 }
 0x3d8   : > { %v4759_v50 = vpop.eup %4758  ;;  %v783_v51 = vmul.f32 1.442695, %v776_v48 }
 0x3d9   : > { %v791_v52 = vsel %vm537_vm1, %v4759_v50, 0.0 }
 0x3da   : > { %4760 = vpow2.f32 %v783_v51  ;;  %792 = vadd.xlane.f32.xlu2 %v791_v52 }
 0x3e0   : > { %v4761_v47 = vpop.eup %4760 }
 0x3e1   : > { %v794_v53 = vsel %vm537_vm1, %v4761_v47, 0.0 }
 0x3e2   : > { %795 = vadd.xlane.f32.xlu2 %v794_v53 }
 0x3e5   : > { %v4698_v56 = vpop.permute.xlu1 %4697 }
 0x3e6   : > { %v4699_v57 = vunpack.i.l.bf16 %v4698_v56  ;;  %v4700_v49 = vunpack.i.h.bf16 %v4698_v56 }
 0x3e8   : > { %841 = vmatpush.msrb.mxu3 %v4699_v57  ;;  %v4703_v58 = vpop.permute.xlu0 %4702 }
 0x3e9   : > { %v4704_v59 = vunpack.i.l.bf16 %v4703_v58  ;;  %v4705_v61 = vunpack.i.h.bf16 %v4703_v58 }
 0x3ea   : > { %842 = vmatpush.msrb.mxu3 %v4700_v49 }
 0x3ec   : > { %843 = vmatpush.msrb.mxu3 %v4704_v59 }
 0x3ed   : > { %v871_v62 = vpop.permute.xlu1 %870 }
 0x3ee   : > { %844 = vmatpush.msrb.mxu3 %v4705_v61 }
 0x3f0   : > { %v873_v63 = vpop.permute.xlu0 %872 }
 0x3f1   : > { %3747 = vmatpush.xpose.msk.msrb.mxu0 %vm471_vm0, %v873_v63 }
 0x3f5   : > { %v859_v54 = vpop.permute.xlu1 %858  ;;  %3748 = vmatpush.xpose.msk.msrb.mxu0 %vm471_vm0, %v871_v62 }
 0x3f8   : > { %v867_v2 = vpop.permute.xlu0 %866 }
 0x3fa   : > { %868 = vrot.lane.b32.xlu2 %v5116_v1, %s4894_s19  ;;  %s4900_s19 = smov 56  }
 0x3fd   : > { %v863_v3 = vpop.permute.xlu1 %862 }
 0x400   : > { %v861_v4 = vpop.permute.xlu0 %860 }
 0x402   : > { %1110 = vrot.lane.b32.xlu2 %v5111_v60, %s4897_s28 }
 0x405   : > { %v1316_v5 = vpop.permute.xlu1 %1315 }
 0x406   : > { %3783 = vmatpush.xpose.msk.msrb.mxu2 %vm471_vm0, %v1316_v5 }
 0x408   : > { %v1113_v6 = vpop.permute.xlu0 %1112 }
 0x40a   : > { %1108 = vrot.lane.b32.xlu2 %v5116_v1, %s4897_s28  ;;  %s3726_s28 = sshll.u32 %s5021_s17, 2 }
 0x40b   : > { %s448_s18 = scalar_lea.vmem %s6266_s2, %s3726_s28 }
 0x40d   : > { %v865_v27 = vpop.permute.xlu1 %864 }
 0x410   : > { %v1314_v9 = vpop.permute.xlu0 %1313 }
 0x411   : > { %3784 = vmatpush.xpose.msk.msrb.mxu2 %vm471_vm0, %v1314_v9 }
 0x412   : > { %1309 = vrot.lane.b32.xlu2 %v5114_v0, %s4896_s26  ;;  %s4902_s26 = smov 40  }
 0x415   : > { %v1107_v32 = vpop.permute.xlu1 %1106 }
 0x418   : > { %v1312_v11 = vpop.permute.xlu0 %1311 }
 0x419   : > { %3785 = vmatpush.xpose.msk.msrb.mxu2 %vm471_vm0, %v1312_v11 }
 0x41a   : > { %1100 = vrot.lane.b32.xlu2 %v5127_v7, %s4899_s15 }
 0x41d   : > { %v1302_v35 = vpop.permute.xlu1 %1301 }
 0x420   : > { %v1099_v34 = vpop.permute.xlu0 %1098 }
 0x422   : > { %1305 = vrot.lane.b32.xlu2 %v5132_v8, %s4898_s29  ;;  %s4472_s29 = sshll.u32 %s4989_s25, 2 }
 0x425   : > { %v1103_v39 = vpop.permute.xlu1 %1102 }
 0x42d   : > { %v1308_v59 = vpop.permute.xlu1 %1307 }
 0x43d   : > { %v787_v60 = vpop.xlane.xlu2 %786 }
 0x43e   : > { %4762 = vrcp.f32 %v787_v60 }
 0x444   : > { %v4763_v12 = vpop.eup %4762 }
 0x445   : > { %v790_v13 = vpop.xlane.xlu2 %789  ;;  %v801_v1 = vmul.f32 %v4763_v12, %v4755_v38  ;;  %v1304_v38 = vpop.permute.xlu0 %1303 }
 0x446   : > { %4764 = vrcp.f32 %v790_v13 }
 0x447   : > { %3743 = vmatmul.msk.f32.vlgmr.msrb.gmra.mxu3 %vm537_vm1, %v801_v1 }
 0x44c   : > { %v4765_v16 = vpop.eup %4764 }
 0x44d   : > { %v793_v17 = vpop.xlane.xlu2 %792  ;;  %v802_v0 = vmul.f32 %v4765_v16, %v4757_v43  ;;  %v1105_v40 = vpop.permute.xlu0 %1104 }
 0x44e   : > { %4766 = vrcp.f32 %v793_v17 }
 0x44f   : > { %3744 = vmatmul.msk.f32.gmra.mxu3 %vm537_vm1, %v802_v0 }
 0x454   : > { %v4767_v18 = vpop.eup %4766 }
 0x455   : > { %v796_v20 = vpop.xlane.xlu2 %795  ;;  %v803_v7 = vmul.f32 %v4767_v18, %v4759_v50 }
 0x456   : > { %4768 = vrcp.f32 %v796_v20 }
 0x457   : > { %3745 = vmatmul.msk.f32.gmra.mxu3 %vm537_vm1, %v803_v7 }
 0x45c   : > { %v4769_v8 = vpop.eup %4768 }
 0x45d   : > { %v869_v22 = vpop.permute.xlu2 %868  ;;  %v804_v24 = vmul.f32 %v4769_v8, %v4761_v47 }
 0x45e   : > { %3749 = vmatpush.xpose.msk.msrb.mxu0 %vm471_vm0, %v869_v22 }
 0x45f   : > { %3746 = vmatmul.msk.f32.gmra.mxu3 %vm537_vm1, %v804_v24 }
 0x462   : > { %3750 = vmatpush.xpose.msk.msrb.mxu0 %vm471_vm0, %v867_v2 }
 0x465   : > { %v1111_v26 = vpop.permute.xlu2 %1110  ;;  %3751 = vmatmul.msk.f32.vlgmr.msrb.gmra.mxu0 %vm471_vm0, %v859_v54 }
 0x466   : > { %3767 = vmatpush.xpose.msk.msra.mxu0 %vm471_vm0, %v1113_v6 }
 0x46a   : > { %3768 = vmatpush.xpose.msk.msra.mxu0 %vm471_vm0, %v1111_v26 }
 0x46d   : > { %v1109_v28 = vpop.permute.xlu2 %1108  ;;  %3752 = vmatmul.msk.f32.gmra.mxu0 %vm471_vm0, %v861_v4 }
 0x46e   : > { %3769 = vmatpush.xpose.msk.msra.mxu0 %vm471_vm0, %v1109_v28 }
 0x472   : > { %3770 = vmatpush.xpose.msk.msra.mxu0 %vm471_vm0, %v1107_v32 }
 0x475   : > { %v1310_v33 = vpop.permute.xlu2 %1309  ;;  %3753 = vmatmul.msk.f32.gmra.mxu0 %vm471_vm0, %v863_v3 }
 0x476   : > { %3786 = vmatpush.xpose.msk.msrb.mxu2 %vm471_vm0, %v1310_v33 }
 0x47d   : > { %3754 = vmatmul.msk.f32.gmra.mxu0 %vm471_vm0, %v865_v27  ;;  %v1101_v36 = vpop.permute.xlu2 %1100 }
 0x485   : > { %3771 = vmatmul.msk.f32.vlgmr.msra.gmra.mxu0 %vm471_vm0, %v1099_v34  ;;  %v1306_v56 = vpop.permute.xlu2 %1305 }
 0x48d   : > { %3772 = vmatmul.msk.f32.gmra.mxu0 %vm471_vm0, %v1101_v36 }
 0x495   : > { %3773 = vmatmul.msk.f32.gmra.mxu0 %vm471_vm0, %v1103_v39 }
 0x49d   : > { %3774 = vmatmul.msk.f32.gmra.mxu0 %vm471_vm0, %v1105_v40 }
 0x4ca   : > { %v846_v41 = vpop.f32.mrf.mxu3 }
 0x4cb   : > { %3763 = vmatmul.msk.f32.vlgmr.msra.gmra.mxu2 %vm471_vm0, %v846_v41 }
 0x4d2   : > { %v849_v42 = vpop.f32.mrf.mxu3 }
 0x4d3   : > { %3764 = vmatmul.msk.f32.gmra.mxu2 %vm471_vm0, %v849_v42 }
 0x4da   : > { %v852_v43 = vpop.f32.mrf.mxu3 }
 0x4db   : > { %3765 = vmatmul.msk.f32.gmra.mxu2 %vm471_vm0, %v852_v43 }
 0x4e2   : > { %v855_v44 = vpop.f32.mrf.mxu3  ;;  %v907_v45 = vpop.f32.mrf.mxu0 }
 0x4e3   : > { %v908_v46 = vadd.f32 %v907_v45, %v5140_v10  ;;  %3766 = vmatmul.msk.f32.gmra.mxu2 %vm471_vm0, %v855_v44 }
 0x4e5   : > { %v919_v48 = vsel %vm537_vm1, %v908_v46, -inf }
 0x4e6   : > { %920 = vmax.xlane.f32.xlu2 %v919_v48 }
 0x4ea   : > { %v910_v50 = vpop.f32.mrf.mxu0 }
 0x4eb   : > { %v911_v51 = vadd.f32 %v910_v50, %v5147_v15  ;;  %3787 = vmatmul.msk.f32.vlgmr.msrb.gmra.mxu2 %vm471_vm0, %v1302_v35 }
 0x4ed   : > { %v922_v52 = vsel %vm537_vm1, %v911_v51, -inf }
 0x4ee   : > { %923 = vmax.xlane.f32.xlu0 %v922_v52 }
 0x4f2   : > { %v913_v47 = vpop.f32.mrf.mxu0 }
 0x4f3   : > { %v914_v53 = vadd.f32 %v913_v47, %v5154_v19  ;;  %3788 = vmatmul.msk.f32.gmra.mxu2 %vm471_vm0, %v1304_v38 }
 0x4f5   : > { %v925_v55 = vsel %vm537_vm1, %v914_v53, -inf }
 0x4f6   : > { %926 = vmax.xlane.f32.xlu1 %v925_v55 }
 0x4fa   : > { %v916_v57 = vpop.f32.mrf.mxu0 }
 0x4fb   : > { %v917_v58 = vadd.f32 %v916_v57, %v5161_v25  ;;  %3789 = vmatmul.msk.f32.gmra.mxu2 %vm471_vm0, %v1306_v56 }
 0x4fd   : > { %v928_v49 = vsel %vm537_vm1, %v917_v58, -inf }
 0x4fe   : > { %929 = vmax.xlane.f32.xlu2 %v928_v49 }
 0x502   : > { %v1147_v61 = vpop.f32.mrf.mxu0 }
 0x503   : > { %v1148_v62 = vadd.f32 %v1147_v61, %v5140_v10  ;;  %3790 = vmatmul.msk.f32.gmra.mxu2 %vm471_vm0, %v1308_v59 }
 0x505   : > { %v1159_v63 = vsel %vm537_vm1, %v1148_v62, -inf }
 0x506   : > { %1160 = vmax.xlane.f32.xlu0 %v1159_v63 }
 0x50a   : > { %v1150_v54 = vpop.f32.mrf.mxu0 }
 0x50b   : > { %v1151_v2 = vadd.f32 %v1150_v54, %v5147_v15 }
 0x50d   : > { %v1162_v3 = vsel %vm537_vm1, %v1151_v2, -inf }
 0x50e   : > { %1163 = vmax.xlane.f32.xlu1 %v1162_v3 }
 0x512   : > { %v1153_v4 = vpop.f32.mrf.mxu0 }
 0x513   : > { %v5261_v5 = vadd.f32 %v1153_v4, %v5154_v19 }
 0x515   : > { %v1165_v6 = vsel %vm537_vm1, %v5261_v5, -inf }
 0x516   : > { %1166 = vmax.xlane.f32.xlu0 %v1165_v6 }
 0x51a   : > { %v1156_v9 = vpop.f32.mrf.mxu0 }
 0x51b   : > { %v5266_v11 = vadd.f32 %v1156_v9, %v5161_v25 }
 0x51d   : > { %v1168_v60 = vsel %vm537_vm1, %v5266_v11, -inf }
 0x51e   : > { %1169 = vmax.xlane.f32.xlu1 %v1168_v60 }
 0x52a   : > { %4707 = vrot.lane.b32.xlu0 %v5166_v30, %s4900_s19 }
 0x537   : > { %4712 = vrot.lane.b32.xlu1 %v5171_v31, %s4900_s19  ;;  %s3629_s19 = scalar_lea.hbm %s6276_s12, %s4472_s29 }
 0x538   : > { %s3633_s4 = sshll.u32 %s3629_s19, 4  ;;  %s3634_s4 = int_to_ptr.hbm [resolvable:$true] %s3633_s4 }
 0x539   : > { %s4840_s28 = sshra.s32 %s3634_s4, 4  ;;  %s4841_s28 = int_to_ptr.hbm [resolvable:$true] %s4840_s28 }
 0x53a   : > { %s4842_s15 = scalar_lea.hbm %s4841_s28, 4  ;;  %p4847_p0 = scmp.lt.s32.totalorder %s4841_s28, %s6276_s12 }
 0x53b   : > { %p4843_p11 = scmp.ne.s32.totalorder %s4841_s28, %s4842_s15 }
 0x53d   : > { %p4844_p12 = pnand %p4843_p11, %p5006_p5 }
 0x53f   : > { %p4845_p13 = pneg %p4844_p12 }
 0x54e   : > { %v5272_v12 = vpop.f32.mrf.mxu2 }
 0x556   : > { %v5274_v13 = vpop.f32.mrf.mxu2 }
 0x559   : > { %v921_v1 = vpop.xlane.xlu2 %920 }
 0x55a   : > { %v931_v16 = vsub.f32 %v908_v46, %v921_v1 }
 0x55c   : > { %v935_v17 = vmul.f32 1.442695, %v931_v16 }
 0x55e   : > { %4770 = vpow2.f32 %v935_v17  ;;  %v5276_v0 = vpop.f32.mrf.mxu2 }
 0x561   : > { %v924_v18 = vpop.xlane.xlu0 %923 }
 0x562   : > { %v932_v20 = vsub.f32 %v911_v51, %v924_v18 }
 0x564   : > { %v5278_v7 = vpop.eup %4770  ;;  %v937_v8 = vmul.f32 1.442695, %v932_v20 }
 0x565   : > { %v943_v22 = vsel %vm537_vm1, %v5278_v7, 0.0 }
 0x566   : > { %4772 = vpow2.f32 %v937_v8  ;;  %944 = vadd.xlane.f32.xlu2 %v943_v22  ;;  %v5282_v24 = vpop.f32.mrf.mxu2 }
 0x569   : > { %v927_v26 = vpop.xlane.xlu1 %926 }
 0x56a   : > { %v933_v27 = vsub.f32 %v914_v53, %v927_v26 }
 0x56c   : > { %v5284_v28 = vpop.eup %4772  ;;  %v939_v32 = vmul.f32 1.442695, %v933_v27 }
 0x56d   : > { %v946_v33 = vsel %vm537_vm1, %v5284_v28, 0.0 }
 0x56e   : > { %4774 = vpow2.f32 %v939_v32  ;;  %947 = vadd.xlane.f32.xlu2 %v946_v33  ;;  %v1350_v34 = vpop.f32.mrf.mxu2 }
 0x56f   : > { %v1351_v6 = vadd.f32 %v1350_v34, %v5140_v10 }
 0x571   : > { %v930_v35 = vpop.xlane.xlu2 %929  ;;  %v1362_v9 = vsel %vm537_vm1, %v1351_v6, -inf }
 0x572   : > { %v934_v36 = vsub.f32 %v917_v58, %v930_v35 }
 0x574   : > { %v5288_v38 = vpop.eup %4774  ;;  %v941_v39 = vmul.f32 1.442695, %v934_v36 }
 0x575   : > { %v949_v40 = vsel %vm537_vm1, %v5288_v38, 0.0 }
 0x576   : > { %4776 = vpow2.f32 %v941_v39  ;;  %950 = vadd.xlane.f32.xlu2 %v949_v40  ;;  %v1353_v42 = vpop.f32.mrf.mxu2 }
 0x577   : > { %v5301_v55 = vadd.f32 %v1353_v42, %v5147_v15 }
 0x579   : > { %v1161_v41 = vpop.xlane.xlu0 %1160  ;;  %v1365_v58 = vsel %vm537_vm1, %v5301_v55, -inf }
 0x57a   : > { %v1171_v43 = vsub.f32 %v1148_v62, %v1161_v41 }
 0x57c   : > { %v5292_v44 = vpop.eup %4776  ;;  %v1175_v45 = vmul.f32 1.442695, %v1171_v43 }
 0x57d   : > { %v952_v46 = vsel %vm537_vm1, %v5292_v44, 0.0 }
 0x57e   : > { %4778 = vpow2.f32 %v1175_v45  ;;  %953 = vadd.xlane.f32.xlu2 %v952_v46  ;;  %v1356_v52 = vpop.f32.mrf.mxu2 }
 0x57f   : > { %v5323_v60 = vadd.f32 %v1356_v52, %v5154_v19 }
 0x581   : > { %v1164_v48 = vpop.xlane.xlu1 %1163  ;;  %v1368_v17 = vsel %vm537_vm1, %v5323_v60, -inf }
 0x582   : > { %v1172_v50 = vsub.f32 %v1151_v2, %v1164_v48 }
 0x584   : > { %v5296_v51 = vpop.eup %4778  ;;  %v1177_v47 = vmul.f32 1.442695, %v1172_v50 }
 0x585   : > { %v1183_v53 = vsel %vm537_vm1, %v5296_v51, 0.0 }
 0x586   : > { %4780 = vpow2.f32 %v1177_v47  ;;  %1184 = vadd.xlane.f32.xlu1 %v1183_v53  ;;  %v1359_v49 = vpop.f32.mrf.mxu2 }
 0x587   : > { %v5310_v59 = vadd.f32 %v1359_v49, %v5161_v25 }
 0x589   : > { %v1167_v61 = vpop.xlane.xlu0 %1166  ;;  %v1371_v62 = vsel %vm537_vm1, %v5310_v59, -inf }
 0x58a   : > { %v1173_v1 = vsub.f32 %v5261_v5, %v1167_v61 }
 0x58c   : > { %v5303_v56 = vpop.eup %4780  ;;  %v1179_v16 = vmul.f32 1.442695, %v1173_v1 }
 0x58d   : > { %v1186_v57 = vsel %vm537_vm1, %v5303_v56, 0.0 }
 0x58e   : > { %1187 = vadd.xlane.f32.xlu0 %v1186_v57  ;;  %1366 = vmax.xlane.f32.xlu1 %v1365_v58  ;;  %4782 = vpow2.f32 %v1179_v16 }
 0x591   : > { %v5316_v2 = vpop.xlane.xlu1 %1169 }
 0x592   : > { %v1174_v57 = vsub.f32 %v5266_v11, %v5316_v2 }
 0x594   : > { %v1181_v49 = vmul.f32 1.442695, %v1174_v57 }
 0x596   : > { %4717 = vrot.lane.b32.xlu2 %v5166_v30, %s4901_s20  ;;  %1372 = vmax.xlane.f32.xlu0 %v1371_v62 }
 0x59c   : > { %v4708_v15 = vpop.permute.xlu0 %4707 }
 0x59d   : > { %v4709_v63 = vunpack.i.l.bf16 %v4708_v15  ;;  %v4710_v54 = vunpack.i.h.bf16 %v4708_v15 }
 0x59f   : > { %999 = vmatpush.msrb.mxu1 %v4709_v63 }
 0x5a1   : > { %1000 = vmatpush.msrb.mxu1 %v4710_v54  ;;  %v693_v54 = vld [vmem:[%s6271_s7 + $0x8] sm:$0xff] }
 0x5a2   : > { %1043 = vmatpush.msra.mxu3 %v693_v54 }
 0x5a7   : > { %4732 = vrot.lane.b32.xlu1 %v5171_v31, %s4902_s26 }
 0x5a9   : > { %v4713_v25 = vpop.permute.xlu1 %4712 }
 0x5aa   : > { %4727 = vrot.lane.b32.xlu0 %v5166_v30, %s4902_s26  ;;  %v4714_v3 = vunpack.i.l.bf16 %v4713_v25  ;;  %v4715_v4 = vunpack.i.h.bf16 %v4713_v25  ;;  %v5328_v30 = vpop.eup %4782  ;;  %s432_s26 = sand.u32 1, %s4880_s22  }
 0x5ab   : > { %v1189_v18 = vsel %vm537_vm1, %v5328_v30, 0.0  ;;  %s3721_s3 = sshll.u32 %s432_s26, 2  ;;  %s3619_s25 = scalar_lea.sflag [#allocation3], %s432_s26 }
 0x5ac   : > { %1001 = vmatpush.msrb.mxu1 %v4714_v3 }
 0x5ae   : > { %1002 = vmatpush.msrb.mxu1 %v4715_v4 }
 0x5bf   : > { %1363 = vmax.xlane.f32.xlu2 %v1362_v9 }
 0x5c7   : > { %1369 = vmax.xlane.f32.xlu2 %v1368_v17 }
 0x5d4   : > { %1190 = vadd.xlane.f32.xlu0 %v1189_v18 }
 0x5d9   : > { %v945_v10 = vpop.xlane.xlu2 %944 }
 0x5da   : > { %4784 = vrcp.f32 %v945_v10 }
 0x5df   : > { %4722 = vrot.lane.b32.xlu2 %v5171_v31, %s4901_s20  ;;  %s434_s20 = scalar_lea.vmem [#allocation2], %s3721_s3  ;;  %s4846_s3 = scalar_lea.hbm %s6276_s12, 8 }
 0x5e0   : > { %v4785_v19 = vpop.eup %4784  ;;  %s3631_s17 = sshll.u32 %s434_s20, 4  ;;  %p4848_p1 = scmp.lt.s32.totalorder %s4846_s3, %s4842_s15  ;;  %s3632_s17 = int_to_ptr.vmem [resolvable:$true] %s3631_s17 }
 0x5e1   : > { %v948_v20 = vpop.xlane.xlu2 %947  ;;  %v959_v5 = vmul.f32 %v4785_v19, %v5278_v7 }
 0x5e2   : > { %4786 = vrcp.f32 %v948_v20  ;;  %p4849_p2 = por %p4848_p1, %p4847_p0 }
 0x5e3   : > { %3755 = vmatmul.msk.f32.vlgmr.msrb.gmra.mxu1 %vm537_vm1, %v959_v5 }
 0x5e4   : > { %p4850_p3 = pnand %p4849_p2, %p4845_p13 }
 0x5e8   : > { %v4787_v8 = vpop.eup %4786 }
 0x5e9   : > { %v951_v22 = vpop.xlane.xlu2 %950  ;;  %v960_v26 = vmul.f32 %v4787_v8, %v5284_v28 }
 0x5ea   : > { %4788 = vrcp.f32 %v951_v22 }
 0x5eb   : > { %3756 = vmatmul.msk.f32.gmra.mxu1 %vm537_vm1, %v960_v26 }
 0x5f0   : > { %v4789_v27 = vpop.eup %4788 }
 0x5f1   : > { %v954_v32 = vpop.xlane.xlu2 %953  ;;  %v961_v33 = vmul.f32 %v4789_v27, %v5288_v38 }
 0x5f2   : > { %4790 = vrcp.f32 %v954_v32  ;;  %v694_v32 = vld [vmem:[%s6271_s7 + $0x10] sm:$0xff] }
 0x5f3   : > { %3757 = vmatmul.msk.f32.gmra.mxu1 %vm537_vm1, %v961_v33  ;;  %1283 = vmatpush.msrb.mxu3 %v694_v32 }
 0x5f8   : > { %v4791_v31 = vpop.eup %4790 }
 0x5f9   : > { %v4718_v34 = vpop.permute.xlu2 %4717  ;;  %v1185_v7 = vpop.xlane.xlu1 %1184  ;;  %v962_v35 = vmul.f32 %v4791_v31, %v5292_v44 }
 0x5fa   : > { %v4719_v36 = vunpack.i.l.bf16 %v4718_v34  ;;  %v4720_v39 = vunpack.i.h.bf16 %v4718_v34 }
 0x5fb   : > { %3758 = vmatmul.msk.f32.gmra.mxu1 %vm537_vm1, %v962_v35 }
 0x5fc   : > { %1239 = vmatpush.msra.mxu1 %v4719_v36 }
 0x5fe   : > { %1240 = vmatpush.msra.mxu1 %v4720_v39 }
 0x601   : > { %v1367_v28 = vpop.xlane.xlu1 %1366  ;;  %v1188_v38 = vpop.xlane.xlu0 %1187 }
 0x602   : > { %v1375_v40 = vsub.f32 %v5301_v55, %v1367_v28 }
 0x604   : > { %v1380_v41 = vmul.f32 1.442695, %v1375_v40 }
 0x606   : > { %4792 = vpow2.f32 %v1380_v41 }
 0x609   : > { %v1373_v45 = vpop.xlane.xlu0 %1372 }
 0x60c   : > { %v5343_v42 = vpop.eup %4792 }
 0x60d   : > { %v1389_v43 = vsel %vm537_vm1, %v5343_v42, 0.0 }
 0x60e   : > { %1390 = vadd.xlane.f32.xlu1 %v1389_v43 }
 0x619   : > { %v4733_v48 = vpop.permute.xlu1 %4732 }
 0x61a   : > { %v4734_v52 = vunpack.i.l.bf16 %v4733_v48  ;;  %v4735_v47 = vunpack.i.h.bf16 %v4733_v48 }
 0x61c   : > { %v4728_v44 = vpop.permute.xlu0 %4727 }
 0x61d   : > { %v4729_v46 = vunpack.i.l.bf16 %v4728_v44  ;;  %v4730_v50 = vunpack.i.h.bf16 %v4728_v44 }
 0x61f   : > { %1442 = vmatpush.msrb.mxu0 %v4729_v46 }
 0x621   : > { %1443 = vmatpush.msrb.mxu0 %v4730_v50  ;;  %v695_v50 = vld [vmem:[%s6271_s7 + $0x18] sm:$0xff] }
 0x623   : > { %1444 = vmatpush.msrb.mxu0 %v4734_v52 }
 0x625   : > { %1445 = vmatpush.msrb.mxu0 %v4735_v47 }
 0x632   : > { %v1364_v53 = vpop.xlane.xlu2 %1363 }
 0x633   : > { %v1374_v55 = vsub.f32 %v1351_v6, %v1364_v53  ;;  %v1377_v6 = vsub.f32 %v5310_v59, %v1373_v45 }
 0x635   : > { %v1378_v58 = vmul.f32 1.442695, %v1374_v55  ;;  %v1384_v16 = vmul.f32 1.442695, %v1377_v6 }
 0x637   : > { %4794 = vpow2.f32 %v1378_v58 }
 0x638   : > { %4796 = vpow2.f32 %v1181_v49 }
 0x639   : > { %4798 = vrcp.f32 %v1185_v7 }
 0x63a   : > { %v1370_v61 = vpop.xlane.xlu2 %1369  ;;  %4800 = vrcp.f32 %v1188_v38 }
 0x63b   : > { %v1376_v15 = vsub.f32 %v5323_v60, %v1370_v61 }
 0x63d   : > { %v4795_v62 = vpop.eup %4794  ;;  %v1382_v25 = vmul.f32 1.442695, %v1376_v15 }
 0x63e   : > { %v1386_v63 = vsel %vm537_vm1, %v4795_v62, 0.0  ;;  %v4797_v3 = vpop.eup %4796 }
 0x63f   : > { %1387 = vadd.xlane.f32.xlu2 %v1386_v63  ;;  %v4799_v2 = vpop.eup %4798  ;;  %4802 = vpow2.f32 %v1382_v25  ;;  %v1192_v1 = vsel %vm537_vm1, %v4797_v3, 0.0 }
 0x640   : > { %v1199_v60 = vmul.f32 %v4799_v2, %v5296_v51  ;;  %v4801_v17 = vpop.eup %4800  ;;  %4804 = vpow2.f32 %v1384_v16 }
 0x641   : > { %v1200_v59 = vmul.f32 %v4801_v17, %v5303_v56 }
 0x642   : > { %v4723_v11 = vpop.permute.xlu2 %4722 }
 0x643   : > { %v4724_v4 = vunpack.i.l.bf16 %v4723_v11  ;;  %v4725_v9 = vunpack.i.h.bf16 %v4723_v11  ;;  %v4740_v11 = vld [vmem:[%s6272_s8 + $0x3] ss:$0 sm:$0xff] }
 0x645   : > { %1241 = vmatpush.msra.mxu1 %v4724_v4  ;;  %v4803_v10 = vpop.eup %4802 }
 0x646   : > { %v1392_v19 = vsel %vm537_vm1, %v4803_v10, 0.0  ;;  %v4805_v51 = vpop.eup %4804 }
 0x647   : > { %1193 = vadd.xlane.f32.xlu2 %v1192_v1  ;;  %1242 = vmatpush.msra.mxu1 %v4725_v9  ;;  %v1191_v18 = vpop.xlane.xlu0 %1190  ;;  %v1395_v5 = vsel %vm537_vm1, %v4805_v51, 0.0 }
 0x648   : > { %3775 = vmatmul.msk.f32.vlgmr.msra.gmra.mxu1 %vm537_vm1, %v1199_v60  ;;  %4806 = vrcp.f32 %v1191_v18 }
 0x649   : > { %1486 = vmatpush.msrb.mxu1 %v695_v50  ;;  %v3865_v50 = vld [vmem:[%s6273_s9 + $0x80] sm:$0xf] }
 0x64e   : > { %v4807_v20 = vpop.eup %4806 }
 0x64f   : > { %1393 = vadd.xlane.f32.xlu2 %v1392_v19  ;;  %v1201_v8 = vmul.f32 %v4807_v20, %v5328_v30 }
 0x650   : > { %3776 = vmatmul.msk.f32.gmra.mxu1 %vm537_vm1, %v1200_v59 }
 0x657   : > { %1396 = vadd.xlane.f32.xlu2 %v1395_v5 }
 0x658   : > { %3777 = vmatmul.msk.f32.gmra.mxu1 %vm537_vm1, %v1201_v8 }
 0x660   : > { %v1004_v22 = vpop.f32.mrf.mxu1 }
 0x661   : > { %3759 = vmatmul.msk.f32.vlgmr.msra.gmra.mxu3 %vm471_vm0, %v1004_v22 }
 0x668   : > { %v1007_v26 = vpop.f32.mrf.mxu1 }
 0x669   : > { %3760 = vmatmul.msk.f32.gmra.mxu3 %vm471_vm0, %v1007_v26 }
 0x670   : > { %v1010_v27 = vpop.f32.mrf.mxu1 }
 0x671   : > { %3761 = vmatmul.msk.f32.gmra.mxu3 %vm471_vm0, %v1010_v27 }
 0x678   : > { %v1013_v56 = vpop.f32.mrf.mxu1 }
 0x679   : > { %3762 = vmatmul.msk.f32.gmra.mxu3 %vm471_vm0, %v1013_v56 }
 0x681   : > { %v1391_v33 = vpop.xlane.xlu1 %1390 }
 0x6b2   : > { %v1388_v30 = vpop.xlane.xlu2 %1387 }
 0x6b3   : > { %4808 = vrcp.f32 %v1388_v30 }
 0x6b4   : > { %4810 = vrcp.f32 %v1391_v33 }
 0x6b9   : > { %v4809_v31 = vpop.eup %4808 }
 0x6ba   : > { %v1402_v34 = vmul.f32 %v4809_v31, %v4795_v62  ;;  %v1194_v7 = vpop.xlane.xlu2 %1193  ;;  %v4811_v35 = vpop.eup %4810 }
 0x6bb   : > { %4812 = vrcp.f32 %v1194_v7  ;;  %v1403_v40 = vmul.f32 %v4811_v35, %v5343_v42 }
 0x6bc   : > { %3791 = vmatmul.msk.f32.vlgmr.msrb.gmra.mxu0 %vm537_vm1, %v1402_v34 }
 0x6c1   : > { %v4813_v36 = vpop.eup %4812 }
 0x6c2   : > { %v1394_v39 = vpop.xlane.xlu2 %1393  ;;  %v1202_v28 = vmul.f32 %v4813_v36, %v4797_v3 }
 0x6c3   : > { %4814 = vrcp.f32 %v1394_v39 }
 0x6c4   : > { %3778 = vmatmul.msk.f32.gmra.mxu1 %vm537_vm1, %v1202_v28  ;;  %3792 = vmatmul.msk.f32.gmra.mxu0 %vm537_vm1, %v1403_v40 }
 0x6c5   : > { %v1244_v41 = vpop.f32.mrf.mxu1 }
 0x6c6   : > { %3779 = vmatmul.msk.f32.vlgmr.msrb.gmra.mxu3 %vm471_vm0, %v1244_v41 }
 0x6c9   : > { %v4815_v38 = vpop.eup %4814 }
 0x6ca   : > { %v1397_v43 = vpop.xlane.xlu2 %1396  ;;  %v1404_v45 = vmul.f32 %v4815_v38, %v4803_v10 }
 0x6cb   : > { %4816 = vrcp.f32 %v1397_v43 }
 0x6cc   : > { %3793 = vmatmul.msk.f32.gmra.mxu0 %vm537_vm1, %v1404_v45 }
 0x6cd   : > { %v1247_v44 = vpop.f32.mrf.mxu1 }
 0x6ce   : > { %3780 = vmatmul.msk.f32.gmra.mxu3 %vm471_vm0, %v1247_v44 }
 0x6d1   : > { %v4817_v46 = vpop.eup %4816 }
 0x6d2   : > { %v1405_v48 = vmul.f32 %v4817_v46, %v4805_v51 }
 0x6d4   : > { %3794 = vmatmul.msk.f32.gmra.mxu0 %vm537_vm1, %v1405_v48 }
 0x6d5   : > { %v1250_v42 = vpop.f32.mrf.mxu1 }
 0x6d6   : > { %3781 = vmatmul.msk.f32.gmra.mxu3 %vm471_vm0, %v1250_v42 }
 0x6e4   : > { %v1045_v58 = vpop.f32.mrf.mxu3 }
 0x6e5   : > { %v1087_v63 = vadd.f32 %v5272_v12, %v1045_v58 }
 0x6ec   : > { %v1048_v49 = vpop.f32.mrf.mxu3 }
 0x6ed   : > { %v1090_v6 = vadd.f32 %v5274_v13, %v1048_v49  ;;  %v4502_v49 = vld [vmem:[%s6273_s9 + $0xc4] sm:$0xf0] }
 0x6f4   : > { %v1051_v61 = vpop.f32.mrf.mxu3 }
 0x6f5   : > { %v1093_v10 = vadd.f32 %v5276_v0, %v1051_v61  ;;  %v4494_v61 = vld [vmem:[%s6273_s9 + $0x8c] sm:$0xf] }
 0x6fc   : > { %v1054_v62 = vpop.f32.mrf.mxu3 }
 0x6fd   : > { %v1096_v8 = vadd.f32 %v5282_v24, %v1054_v62  ;;  %v3875_v62 = vld [vmem:[%s6273_s9 + $0xc8] sm:$0xf0] }
 0x739   : > { %v1447_v52 = vpop.f32.mrf.mxu0 }
 0x73a   : > { %3795 = vmatmul.msk.f32.vlgmr.msrb.gmra.mxu1 %vm471_vm0, %v1447_v52  ;;  %v4501_v52 = vld [vmem:[%s6273_s9 + $0xbc] sm:$0xf0] }
 0x741   : > { %v1253_v47 = vpop.f32.mrf.mxu1  ;;  %v1450_v53 = vpop.f32.mrf.mxu0 }
 0x742   : > { %3782 = vmatmul.msk.f32.gmra.mxu3 %vm471_vm0, %v1253_v47  ;;  %3796 = vmatmul.msk.f32.gmra.mxu1 %vm471_vm0, %v1450_v53  ;;  %v3866_v47 = vor.u32 %v4501_v52, %v3865_v50  ;;  %v4493_v53 = vld [vmem:[%s6273_s9 + $0x84] sm:$0xf] }
 0x744   : > { %1853 = vmatpush.bf16.msra.mxu3 %v3866_v47  ;;  %v3889_v47 = vld [vmem:[%s6273_s9 + $0x98] sm:$0xf] }
 0x749   : > { %v1453_v55 = vpop.f32.mrf.mxu0  ;;  %v1285_v15 = vpop.f32.mrf.mxu3 }
 0x74a   : > { %3797 = vmatmul.msk.f32.gmra.mxu1 %vm471_vm0, %v1453_v55  ;;  %v1297_v54 = vadd.f32 %v1285_v15, %v1087_v63  ;;  %v3867_v55 = vld [vmem:[%s6273_s9 + $0xc0] sm:$0xf0] }
 0x74b   : > { %v3870_v58 = vor.u32 %v4493_v53, %v3867_v55  ;;  %v4504_v53 = vld [vmem:[%s6273_s9 + $0xd4] sm:$0xf0]  ;;  %v4479_v55 = vld [vmem:[%s6273_s9 + $0x14] sm:$0xf] }
 0x74d   : > { %1872 = vmatpush.bf16.msra.mxu2 %v3870_v58  ;;  %v3890_v58 = vor.u32 %v4504_v53, %v3889_v47  ;;  %v3835_v47 = vld [vmem:[%s6273_s9 + $0x60] sm:$0xf0] }
 0x751   : > { %v1456_v57 = vpop.f32.mrf.mxu0  ;;  %v1288_v2 = vpop.f32.mrf.mxu3 }
 0x752   : > { %3798 = vmatmul.msk.f32.gmra.mxu1 %vm471_vm0, %v1456_v57  ;;  %v1298_v60 = vadd.f32 %v1288_v2, %v1090_v6  ;;  %v3873_v57 = vld [vmem:[%s6273_s9 + $0x88] sm:$0xf]  ;;  %v4477_v2 = vld [vmem:[%s6273_s9 + $0x4] sm:$0xf] }
 0x753   : > { %v3874_v63 = vor.u32 %v4502_v49, %v3873_v57  ;;  %v4496_v49 = vld [vmem:[%s6273_s9 + $0x9c] sm:$0xf] }
 0x755   : > { %1891 = vmatpush.bf16.msra.mxu0 %v3874_v63 }
 0x759   : > { %v1291_v18 = vpop.f32.mrf.mxu3 }
 0x75a   : > { %v1299_v59 = vadd.f32 %v1291_v18, %v1093_v10  ;;  %v3811_v18 = vld [vmem:[%s6273_s9 + $0x48] sm:$0xf0] }
 0x7b7   : > { %v1488_v25 = vpop.f32.mrf.mxu1 }
 0x7b8   : > { %v1500_v3 = vadd.f32 %v1488_v25, %v1297_v54  ;;  %v3878_v54 = vor.u32 %v4494_v61, %v3875_v62 }
 0x7ba   : > { %v1504_v4 = vadd.f32 %v1500_v3, %v5037_v14  ;;  %v3801_v3 = vld [vmem:[%s6273_s9] sm:$0xf]  ;;  %1910 = vmatpush.bf16.msra.mxu1 %v3878_v54  ;;  %v3891_v54 = vld [vmem:[%s6273_s9 + $0xd8] sm:$0xf0] }
 0x7bc   : > { %v5394_v9 = vadd.f32 %v4740_v11, %v1504_v4 }
 0x7be   : > { %v1513_v1 = vsel %vm537_vm1, %v5394_v9, 0.0 }
 0x7bf   : > { %v1491_v16 = vpop.f32.mrf.mxu1  ;;  %1514 = vadd.xlane.f32.xlu0 %v1513_v1  ;;  %v3809_v1 = vld [vmem:[%s6273_s9 + $0x8] sm:$0xf] }
 0x7c0   : > { %v1501_v12 = vadd.f32 %v1491_v16, %v1298_v60  ;;  %v3803_v60 = vld [vmem:[%s6273_s9 + $0x40] sm:$0xf0] }
 0x7c1   : > { %v3806_v16 = vor.u32 %v4477_v2, %v3803_v60  ;;  %v3894_v2 = vor.u32 %v4496_v49, %v3891_v54 }
 0x7c2   : > { %v1505_v17 = vadd.f32 %v1501_v12, %v5043_v23  ;;  %v4486_v12 = vld [vmem:[%s6273_s9 + $0x44] sm:$0xf0] }
 0x7c3   : > { %v3810_v10 = vor.u32 %v4486_v12, %v3809_v1  ;;  %1873 = vmatpush.bf16.msra.mxu2 %v3806_v16 }
 0x7c4   : > { %v5400_v19 = vadd.f32 %v4740_v11, %v1505_v17  ;;  %v4478_v17 = vld [vmem:[%s6273_s9 + $0xc] sm:$0xf] }
 0x7c5   : > { %v1294_v5 = vpop.f32.mrf.mxu3  ;;  %1892 = vmatpush.bf16.msra.mxu0 %v3810_v10 }
 0x7c6   : > { %v1516_v14 = vsel %vm537_vm1, %v5400_v19, 0.0  ;;  %v1300_v23 = vadd.f32 %v1294_v5, %v1096_v8 }
 0x7c7   : > { %v1494_v13 = vpop.f32.mrf.mxu1  ;;  %1517 = vadd.xlane.f32.xlu2 %v1516_v14 }
 0x7c8   : > { %v1502_v51 = vadd.f32 %v1494_v13, %v1299_v59  ;;  %v3814_v59 = vor.u32 %v4478_v17, %v3811_v18  ;;  %v4742_v17 = vld [vmem:[%s6272_s8 + $0x5] ss:$0 sm:$0xff] }
 0x7c9   : > { %1967 = vmatpush.bf16.msrb.mxu0 %v3890_v58  ;;  %v3907_v58 = vld [vmem:[%s6273_s9 + $0xe8] sm:$0xf0] }
 0x7ca   : > { %v1506_v20 = vadd.f32 %v1502_v51, %v5041_v21  ;;  %1911 = vmatpush.bf16.msra.mxu1 %v3814_v59 }
 0x7cc   : > { %v5406_v22 = vadd.f32 %v4740_v11, %v1506_v20 }
 0x7ce   : > { %v1519_v0 = vsel %vm537_vm1, %v5406_v22, 0.0  ;;  %1986 = vmatpush.bf16.msrb.mxu1 %v3894_v2 }
 0x7cf   : > { %v1497_v26 = vpop.f32.mrf.mxu1  ;;  %1520 = vadd.xlane.f32.xlu0 %v1519_v0 }
 0x7d0   : > { %v1503_v27 = vadd.f32 %v1497_v26, %v1300_v23 }
 0x7d2   : > { %v1507_v56 = vadd.f32 %v1503_v27, %v5049_v29 }
 0x7d4   : > { %v5411_v32 = vadd.f32 %v4740_v11, %v1507_v56  ;;  %v4485_v11 = vld [vmem:[%s6273_s9 + $0x3c] sm:$0xf0] }
 0x7d5   : > { %v3802_v6 = vor.u32 %v4485_v11, %v3801_v3 }
 0x7d6   : > { %v1522_v30 = vsel %vm537_vm1, %v5411_v32, 0.0 }
 0x7d7   : > { %1523 = vadd.xlane.f32.xlu2 %v1522_v30  ;;  %1854 = vmatpush.bf16.msra.mxu3 %v3802_v6  ;;  %v3827_v6 = vld [vmem:[%s6273_s9 + $0x58] sm:$0xf0] }
 0x832   : > { %v1515_v21 = vpop.xlane.xlu0 %1514 }
 0x833   : > { %v1525_v24 = vmul.f32 %v1515_v21, %v5053_v37 }
 0x835   : > { %v5417_v33 = vsub.f32 %v5394_v9, %v1525_v24 }
 0x837   : > { %v1533_v31 = vmul.f32 %v5417_v33, %v5417_v33 }
 0x839   : > { %v1537_v34 = vsel %vm537_vm1, %v1533_v31, 0.0  ;;  %v3881_v31 = vld [vmem:[%s6273_s9 + $0x90] sm:$0xf] }
 0x83a   : > { %1538 = vadd.xlane.f32.xlu1 %v1537_v34  ;;  %v1518_v7 = vpop.xlane.xlu2 %1517  ;;  %v4503_v34 = vld [vmem:[%s6273_s9 + $0xcc] sm:$0xf0] }
 0x83b   : > { %v1526_v29 = vmul.f32 %v1518_v7, %v5053_v37 }
 0x83d   : > { %v5424_v35 = vsub.f32 %v5400_v19, %v1526_v29  ;;  %v3882_v29 = vor.u32 %v4503_v34, %v3881_v31  ;;  %v3899_v31 = vld [vmem:[%s6273_s9 + $0xe0] sm:$0xf0] }
 0x83f   : > { %v1534_v36 = vmul.f32 %v5424_v35, %v5424_v35  ;;  %1929 = vmatpush.bf16.msrb.mxu3 %v3882_v29 }
 0x841   : > { %v1540_v39 = vsel %vm537_vm1, %v1534_v36, 0.0  ;;  %v4495_v36 = vld [vmem:[%s6273_s9 + $0x94] sm:$0xf] }
 0x842   : > { %1541 = vadd.xlane.f32.xlu0 %v1540_v39  ;;  %v1521_v28 = vpop.xlane.xlu0 %1520  ;;  %v3883_v39 = vld [vmem:[%s6273_s9 + $0xd0] sm:$0xf0] }
 0x843   : > { %v1527_v40 = vmul.f32 %v1521_v28, %v5053_v37 }
 0x845   : > { %v5431_v41 = vsub.f32 %v5406_v22, %v1527_v40  ;;  %v3886_v40 = vor.u32 %v4495_v36, %v3883_v39 }
 0x847   : > { %v1535_v38 = vmul.f32 %v5431_v41, %v5431_v41  ;;  %1948 = vmatpush.bf16.msrb.mxu2 %v3886_v40 }
 0x849   : > { %v1543_v43 = vsel %vm537_vm1, %v1535_v38, 0.0 }
 0x84a   : > { %1544 = vadd.xlane.f32.xlu2 %v1543_v43  ;;  %v1524_v45 = vpop.xlane.xlu2 %1523 }
 0x84b   : > { %v1528_v44 = vmul.f32 %v1524_v45, %v5053_v37 }
 0x84d   : > { %v5438_v46 = vsub.f32 %v5411_v32, %v1528_v44  ;;  %v3817_v44 = vld [vmem:[%s6273_s9 + $0x10] sm:$0xf] }
 0x84f   : > { %v1536_v48 = vmul.f32 %v5438_v46, %v5438_v46 }
 0x851   : > { %v1546_v42 = vsel %vm537_vm1, %v1536_v48, 0.0  ;;  %v4487_v48 = vld [vmem:[%s6273_s9 + $0x4c] sm:$0xf0] }
 0x852   : > { %1547 = vadd.xlane.f32.xlu1 %v1546_v42  ;;  %v5524_v42 = vld [vmem:[%s6272_s8 + $0x4] ss:$0 sm:$0xff]  ;;  %v3818_v52 = vor.u32 %v4487_v48, %v3817_v44  ;;  %v3905_v48 = vld [vmem:[%s6273_s9 + $0xa8] sm:$0xf] }
 0x854   : > { %1930 = vmatpush.bf16.msrb.mxu3 %v3818_v52  ;;  %v4481_v52 = vld [vmem:[%s6273_s9 + $0x24] sm:$0xf] }
 0x8ad   : > { %v1539_v15 = vpop.xlane.xlu1 %1538 }
 0x8ae   : > { %v1549_v25 = vmul.f32 %v1539_v15, %v5053_v37 }
 0x8b0   : > { %v1553_v4 = vadd.f32 1e-05, %v1549_v25  ;;  %v3825_v25 = vld [vmem:[%s6273_s9 + $0x18] sm:$0xf] }
 0x8b2   : > { %4818 = vrsqrt.f32 %v1553_v4  ;;  %vm1563_vm0 = vweird.f32 %v1553_v4 }
 0x8b5   : > { %v1542_v14 = vpop.xlane.xlu0 %1541 }
 0x8b6   : > { %v1550_v13 = vmul.f32 %v1542_v14, %v5053_v37 }
 0x8b8   : > { %v4819_v51 = vpop.eup %4818  ;;  %v1554_v20 = vadd.f32 1e-05, %v1550_v13 }
 0x8b9   : > { %v1558_v5 = vmul.f32 %v4819_v51, %v1553_v4  ;;  %vm1564_vm15 = vweird.f32 %v4819_v51  ;;  %v4480_v4 = vld [vmem:[%s6273_s9 + $0x1c] sm:$0xf] }
 0x8ba   : > { %4820 = vrsqrt.f32 %v1554_v20  ;;  %vm5509_vm2 = vmor %vm1563_vm0, %vm1564_vm15  ;;  %vm1573_vm4 = vweird.f32 %v1554_v20  ;;  %v3830_v12 = vor.u32 %v4480_v4, %v3827_v6  ;;  %v3849_v6 = vld [vmem:[%s6273_s9 + $0x30] sm:$0xf] }
 0x8bb   : > { %v1559_v8 = vmul.f32 %v4819_v51, %v1558_v5 }
 0x8bc   : > { %1987 = vmatpush.bf16.msrb.mxu1 %v3830_v12  ;;  %v4508_v12 = vld [vmem:[%s6273_s9 + $0xf4] sm:$0xf0] }
 0x8bd   : > { %v1560_v23 = vmul.f32 0.5, %v1559_v8  ;;  %v1545_v0 = vpop.xlane.xlu2 %1544 }
 0x8be   : > { %v1551_v26 = vmul.f32 %v1545_v0, %v5053_v37 }
 0x8bf   : > { %v1561_v27 = vsub.f32 1.5, %v1560_v23 }
 0x8c0   : > { %v4821_v56 = vpop.eup %4820  ;;  %v5494_v30 = vadd.f32 1e-05, %v1551_v26 }
 0x8c1   : > { %v1562_v21 = vmul.f32 %v4819_v51, %v1561_v27  ;;  %v1568_v24 = vmul.f32 %v4821_v56, %v1554_v20  ;;  %vm1574_vm3 = vweird.f32 %v4821_v56 }
 0x8c2   : > { %4822 = vrsqrt.f32 %v5494_v30  ;;  %vm1575_vm5 = vmor %vm1573_vm4, %vm1574_vm3  ;;  %vm1583_vm7 = vweird.f32 %v5494_v30 }
 0x8c3   : > { %v1569_v7 = vmul.f32 %v4821_v56, %v1568_v24  ;;  %v1566_v38 = vsel %vm5509_vm2, %v4819_v51, %v1562_v21  ;;  %v4497_v24 = vld [vmem:[%s6273_s9 + $0xa4] sm:$0xf] }
 0x8c4   : > { %v1597_v62 = vmul.f32 %v1566_v38, %v5417_v33  ;;  %v4488_v33 = vld [vmem:[%s6273_s9 + $0x54] sm:$0xf0] }
 0x8c5   : > { %v1570_v43 = vmul.f32 0.5, %v1569_v7  ;;  %v1548_v45 = vpop.xlane.xlu1 %1547  ;;  %v3826_v60 = vor.u32 %v4488_v33, %v3825_v25  ;;  %v3902_v7 = vor.u32 %v4497_v24, %v3899_v31  ;;  %v3913_v25 = vld [vmem:[%s6273_s9 + $0xb0] sm:$0xf]  ;;  %v3915_v33 = vld [vmem:[%s6273_s9 + $0xf0] sm:$0xf0]  ;;  %v4516_v24 = vld [vmem:[%s6275_s11 + $0x38] sm:$0xff] }
 0x8c6   : > { %v1552_v50 = vmul.f32 %v1548_v45, %v5053_v37  ;;  %v3819_v37 = vld [vmem:[%s6273_s9 + $0x50] sm:$0xf0]  ;;  %v1602_v18 = vmul.f32 %v5524_v42, %v1597_v62  ;;  %v4482_v62 = vld [vmem:[%s6273_s9 + $0x2c] sm:$0xf]  ;;  %v4524_v31 = vld [vmem:[%s6275_s11 + $0x78] sm:$0xff] }
 0x8c7   : > { %v1571_v57 = vsub.f32 1.5, %v1570_v43  ;;  %v3822_v63 = vor.u32 %v4479_v55, %v3819_v37  ;;  %1968 = vmatpush.bf16.msrb.mxu0 %v3826_v60  ;;  %v3838_v55 = vor.u32 %v4481_v52, %v3835_v47  ;;  %v3841_v37 = vld [vmem:[%s6273_s9 + $0x28] sm:$0xf]  ;;  %v4491_v60 = vld [vmem:[%s6273_s9 + $0x6c] sm:$0xf0]  ;;  %v4520_v52 = vld [vmem:[%s6275_s11 + $0x58] sm:$0xff] }
 0x8c8   : > { %v4823_v61 = vpop.eup %4822  ;;  %v1556_v15 = vadd.f32 1e-05, %v1552_v50  ;;  %v1607_v20 = vadd.f32 %v4742_v17, %v1602_v18  ;;  %v4506_v50 = vld [vmem:[%s6273_s9 + $0xe4] sm:$0xf0]  ;;  %v3851_v18 = vld [vmem:[%s6273_s9 + $0x70] sm:$0xf0] }
 0x8c9   : > { %v1572_v3 = vmul.f32 %v4821_v56, %v1571_v57  ;;  %v1578_v11 = vmul.f32 %v4823_v61, %v5494_v30  ;;  %1949 = vmatpush.bf16.msrb.mxu2 %v3822_v63  ;;  %vm1584_vm6 = vweird.f32 %v4823_v61  ;;  %v4505_v30 = vld [vmem:[%s6273_s9 + $0xdc] sm:$0xf0]  ;;  %v3906_v53 = vor.u32 %v4506_v50, %v3905_v48  ;;  %v4498_v57 = vld [vmem:[%s6273_s9 + $0xac] sm:$0xf]  ;;  %v4527_v48 = vld [vmem:[%s6275_s11 + $0x90] sm:$0xff] }
 0x8ca   : > { %4824 = vrsqrt.f32 %v1556_v15  ;;  %vm1585_vm8 = vmor %vm1583_vm7, %vm1584_vm6  ;;  %vm1593_vm10 = vweird.f32 %v1556_v15  ;;  %v3910_v49 = vor.u32 %v4498_v57, %v3907_v58  ;;  %v4512_v50 = vld [vmem:[%s6275_s11 + $0x18] sm:$0xff]  ;;  %v4526_v47 = vld [vmem:[%s6275_s11 + $0x88] sm:$0xff] }
 0x8cb   : > { %v1576_v1 = vsel %vm1575_vm5, %v4821_v56, %v1572_v3  ;;  %v1579_v16 = vmul.f32 %v4823_v61, %v1578_v11  ;;  %v3897_v56 = vld [vmem:[%s6273_s9 + $0xa0] sm:$0xf]  ;;  %v4507_v3 = vld [vmem:[%s6273_s9 + $0xec] sm:$0xf0]  ;;  %v4499_v11 = vld [vmem:[%s6273_s9 + $0xb4] sm:$0xf] }
 0x8cc   : > { %v1598_v10 = vmul.f32 %v1576_v1, %v5424_v35  ;;  %v3898_v21 = vor.u32 %v4505_v30, %v3897_v56  ;;  %v3914_v2 = vor.u32 %v4507_v3, %v3913_v25  ;;  %v3918_v4 = vor.u32 %v4499_v11, %v3915_v33  ;;  %v3921_v1 = vld [vmem:[%s6273_s9 + $0xb8] sm:$0xf]  ;;  %v4531_v30 = vld [vmem:[%s6275_s11 + $0xb0] sm:$0xff]  ;;  %v4525_v57 = vld [vmem:[%s6275_s11 + $0x80] sm:$0xff] }
 0x8cd   : > { %v1580_v59 = vmul.f32 0.5, %v1579_v16  ;;  %v3850_v16 = vor.u32 %v4491_v60, %v3849_v6  ;;  %v4540_v56 = vld [vmem:[%s6275_s11 + $0xf8] sm:$0xff]  ;;  %v4533_v58 = vld [vmem:[%s6275_s11 + $0xc0] sm:$0xff]  ;;  %v4571_v25 = vld [vmem:[%s6275_s11 + $0x1f0] sm:$0xff] }
 0x8ce   : > { %v1603_v14 = vmul.f32 %v5524_v42, %v1598_v10  ;;  %v3922_v10 = vor.u32 %v4508_v12, %v3921_v1  ;;  %v4548_v3 = vld [vmem:[%s6275_s11 + $0x138] sm:$0xff]  ;;  %v4547_v33 = vld [vmem:[%s6275_s11 + $0x130] sm:$0xff]  ;;  %v4561_v6 = vld [vmem:[%s6275_s11 + $0x1a0] sm:$0xff] }
 0x8cf   : > { %v1581_v13 = vsub.f32 1.5, %v1580_v59  ;;  %v4556_v11 = vld [vmem:[%s6275_s11 + $0x178] sm:$0xff]  ;;  %v4569_v60 = vld [vmem:[%s6275_s11 + $0x1e0] sm:$0xff]  ;;  %v4546_v1 = vld [vmem:[%s6275_s11 + $0x128] sm:$0xff] }
 0x8d0   : > { %v4825_v51 = vpop.eup %4824  ;;  %v1608_v5 = vadd.f32 %v4742_v17, %v1603_v14  ;;  %v4500_v14 = vld [vmem:[%s6273_s9 + $0xbc] sm:$0xf] }
 0x8d1   : > { %v1582_v8 = vmul.f32 %v4823_v61, %v1581_v13  ;;  %v1588_v23 = vmul.f32 %v4825_v51, %v1556_v15  ;;  %vm1594_vm9 = vweird.f32 %v4825_v51  ;;  %v3843_v15 = vld [vmem:[%s6273_s9 + $0x68] sm:$0xf0]  ;;  %v3923_v13 = vld [vmem:[%s6273_s9 + $0xf8] sm:$0xf0] }
 0x8d2   : > { %v5566_v0 = vpack.c.bf16 %v1608_v5, %v1607_v20  ;;  %vm1595_vm11 = vmor %vm1593_vm10, %vm1594_vm9  ;;  %v3846_v54 = vor.u32 %v4482_v62, %v3843_v15  ;;  %v3926_v20 = vor.u32 %v4500_v14, %v3923_v13  ;;  %v4492_v5 = vld [vmem:[%s6273_s9 + $0x74] sm:$0xf0]  ;;  %v4509_v15 = vld [vmem:[%s6275_s11] sm:$0xff] }
 0x8d3   : > { %v1589_v26 = vmul.f32 %v4825_v51, %v1588_v23  ;;  %v1586_v35 = vsel %vm1585_vm8, %v4823_v61, %v1582_v8  ;;  %v4490_v61 = vld [vmem:[%s6273_s9 + $0x64] sm:$0xf0]  ;;  %v4484_v8 = vld [vmem:[%s6273_s9 + $0x3c] sm:$0xf]  ;;  %v4545_v14 = vld [vmem:[%s6275_s11 + $0x120] sm:$0xff] }
 0x8d4   : > { %3927 = vmatmul.msk.bf16.vlgmr.msra.gmra.mxu3 %vm537_vm1, %v5566_v0  ;;  %3929 = vmatmul.msk.bf16.vlgmr.msra.gmra.mxu2 %vm537_vm1, %v5566_v0  ;;  %v1599_v29 = vmul.f32 %v1586_v35, %v5431_v41  ;;  %v3833_v41 = vld [vmem:[%s6273_s9 + $0x20] sm:$0xf]  ;;  %v3842_v63 = vor.u32 %v4490_v61, %v3841_v37  ;;  %v3859_v23 = vld [vmem:[%s6273_s9 + $0x78] sm:$0xf0]  ;;  %v4510_v37 = vld [vmem:[%s6275_s11 + $0x8] sm:$0xff] }
 0x8d5   : > { %v1590_v27 = vmul.f32 0.5, %v1589_v26  ;;  %3931 = vmatmul.msk.bf16.vlgmr.msra.gmra.mxu0 %vm537_vm1, %v5566_v0  ;;  %3933 = vmatmul.msk.bf16.vlgmr.msra.gmra.mxu1 %vm537_vm1, %v5566_v0  ;;  %v3862_v35 = vor.u32 %v4484_v8, %v3859_v23  ;;  %v4564_v61 = vld [vmem:[%s6275_s11 + $0x1b8] sm:$0xff]  ;;  %v4553_v13 = vld [vmem:[%s6275_s11 + $0x160] sm:$0xff] }
 0x8d6   : > { %2005 = vmatpush.bf16.msra.mxu3 %v3898_v21  ;;  %2024 = vmatpush.bf16.msra.mxu2 %v3902_v7  ;;  %v1604_v28 = vmul.f32 %v5524_v42, %v1599_v29  ;;  %v4539_v21 = vld [vmem:[%s6275_s11 + $0xf0] sm:$0xff]  ;;  %v4538_v7 = vld [vmem:[%s6275_s11 + $0xe8] sm:$0xff]  ;;  %v4572_v62 = vld [vmem:[%s6275_s11 + $0x1f8] sm:$0xff] }
 0x8d7   : > { %v1591_v34 = vsub.f32 1.5, %v1590_v27  ;;  %2043 = vmatpush.bf16.msra.mxu0 %v3906_v53  ;;  %2062 = vmatpush.bf16.msra.mxu1 %v3910_v49  ;;  %v4532_v27 = vld [vmem:[%s6275_s11 + $0xb8] sm:$0xff]  ;;  %v4515_v29 = vld [vmem:[%s6275_s11 + $0x30] sm:$0xff]  ;;  %v4518_v49 = vld [vmem:[%s6275_s11 + $0x48] sm:$0xff] }
 0x8d8   : > { %v1609_v43 = vadd.f32 %v4742_v17, %v1604_v28  ;;  %v4537_v28 = vld [vmem:[%s6275_s11 + $0xe0] sm:$0xff]  ;;  %v4511_v53 = vld [vmem:[%s6275_s11 + $0x10] sm:$0xff]  ;;  %v4560_v12 = vld [vmem:[%s6275_s11 + $0x198] sm:$0xff] }
 0x8d9   : > { %v1592_v36 = vmul.f32 %v4825_v51, %v1591_v34  ;;  %v4530_v34 = vld [vmem:[%s6275_s11 + $0xa8] sm:$0xff]  ;;  %v4544_v23 = vld [vmem:[%s6275_s11 + $0x118] sm:$0xff] }
 0x8da   : > { %2025 = vmatpush.bf16.msra.mxu2 %v3838_v55  ;;  %v4519_v55 = vld [vmem:[%s6275_s11 + $0x50] sm:$0xff] }
 0x8db   : > { %v1596_v39 = vsel %vm1595_vm11, %v4825_v51, %v1592_v36  ;;  %2044 = vmatpush.bf16.msra.mxu0 %v3842_v63  ;;  %2063 = vmatpush.bf16.msra.mxu1 %v3846_v54  ;;  %v3857_v51 = vld [vmem:[%s6273_s9 + $0x38] sm:$0xf]  ;;  %v4523_v36 = vld [vmem:[%s6275_s11 + $0x70] sm:$0xff]  ;;  %v4517_v63 = vld [vmem:[%s6275_s11 + $0x40] sm:$0xff] }
 0x8dc   : > { %v1600_v40 = vmul.f32 %v1596_v39, %v5438_v46  ;;  %v4489_v46 = vld [vmem:[%s6273_s9 + $0x5c] sm:$0xf0]  ;;  %v3858_v26 = vor.u32 %v4492_v5, %v3857_v51  ;;  %v4563_v54 = vld [vmem:[%s6275_s11 + $0x1b0] sm:$0xff] }
 0x8dd   : > { %v4529_v39 = vld [vmem:[%s6275_s11 + $0xa0] sm:$0xff]  ;;  %v4559_v51 = vld [vmem:[%s6275_s11 + $0x190] sm:$0xff] }
 0x8de   : > { %v1605_v38 = vmul.f32 %v5524_v42, %v1600_v40  ;;  %v3834_v42 = vor.u32 %v4489_v46, %v3833_v41  ;;  %v4514_v40 = vld [vmem:[%s6275_s11 + $0x28] sm:$0xff]  ;;  %v4513_v41 = vld [vmem:[%s6275_s11 + $0x20] sm:$0xff] }
 0x8df   : > { %v4521_v46 = vld [vmem:[%s6275_s11 + $0x60] sm:$0xff] }
 0x8e0   : > { %v1610_v45 = vadd.f32 %v4742_v17, %v1605_v38  ;;  %2006 = vmatpush.bf16.msra.mxu3 %v3834_v42  ;;  %v4483_v17 = vld [vmem:[%s6273_s9 + $0x34] sm:$0xf]  ;;  %v4522_v38 = vld [vmem:[%s6275_s11 + $0x68] sm:$0xff] }
 0x8e1   : > { %v3854_v59 = vor.u32 %v4483_v17, %v3851_v18  ;;  %v4535_v42 = vld [vmem:[%s6275_s11 + $0xd0] sm:$0xff]  ;;  %v4568_v17 = vld [vmem:[%s6275_s11 + $0x1d8] sm:$0xff]  ;;  %v5882_v18 = vld [vmem:[%s6274_s10] sm:$0xff] }
 0x8e2   : > { %v5593_v44 = vpack.c.bf16 %v1610_v45, %v1609_v43  ;;  %v4528_v43 = vld [vmem:[%s6275_s11 + $0x98] sm:$0xff]  ;;  %v5897_v5 = vperm.slane %v5882_v18, 2  ;;  %v5900_v8 = vperm.slane %v5882_v18, 3 }
 0x8e3   : > { %v4536_v45 = vld [vmem:[%s6275_s11 + $0xd8] sm:$0xff] }
 0x8e4   : > { %3928 = vmatmul.msk.bf16.gmra.mxu3 %vm537_vm1, %v5593_v44  ;;  %3930 = vmatmul.msk.bf16.gmra.mxu2 %vm537_vm1, %v5593_v44 }
 0x8e5   : > { %3932 = vmatmul.msk.bf16.gmra.mxu0 %vm537_vm1, %v5593_v44  ;;  %3934 = vmatmul.msk.bf16.gmra.mxu1 %vm537_vm1, %v5593_v44 }
 0x8f4   : > { %3935 = vmatmul.msk.bf16.vlgmr.msrb.gmra.mxu3 %vm537_vm1, %v5566_v0  ;;  %3937 = vmatmul.msk.bf16.vlgmr.msrb.gmra.mxu2 %vm537_vm1, %v5566_v0 }
 0x8f5   : > { %3939 = vmatmul.msk.bf16.vlgmr.msrb.gmra.mxu0 %vm537_vm1, %v5566_v0  ;;  %3941 = vmatmul.msk.bf16.vlgmr.msrb.gmra.mxu1 %vm537_vm1, %v5566_v0 }
 0x8f6   : > { %2081 = vmatpush.bf16.msrb.mxu3 %v3914_v2  ;;  %2100 = vmatpush.bf16.msrb.mxu2 %v3918_v4  ;;  %v4562_v2 = vld [vmem:[%s6275_s11 + $0x1a8] sm:$0xff]  ;;  %v4555_v4 = vld [vmem:[%s6275_s11 + $0x170] sm:$0xff] }
 0x8f7   : > { %2119 = vmatpush.bf16.msrb.mxu0 %v3922_v10  ;;  %2138 = vmatpush.bf16.msrb.mxu1 %v3926_v20  ;;  %v4567_v20 = vld [vmem:[%s6275_s11 + $0x1d0] sm:$0xff] }
 0x8fa   : > { %2082 = vmatpush.bf16.msrb.mxu3 %v3850_v16  ;;  %2101 = vmatpush.bf16.msrb.mxu2 %v3854_v59  ;;  %v4554_v16 = vld [vmem:[%s6275_s11 + $0x168] sm:$0xff] }
 0x8fb   : > { %2120 = vmatpush.bf16.msrb.mxu0 %v3858_v26  ;;  %2139 = vmatpush.bf16.msrb.mxu1 %v3862_v35  ;;  %v4552_v26 = vld [vmem:[%s6275_s11 + $0x158] sm:$0xff] }
 0x904   : > { %3936 = vmatmul.msk.bf16.gmra.mxu3 %vm537_vm1, %v5593_v44  ;;  %3938 = vmatmul.msk.bf16.gmra.mxu2 %vm537_vm1, %v5593_v44 }
 0x905   : > { %3940 = vmatmul.msk.bf16.gmra.mxu0 %vm537_vm1, %v5593_v44  ;;  %3942 = vmatmul.msk.bf16.gmra.mxu1 %vm537_vm1, %v5593_v44 }
 0x914   : > { %3943 = vmatmul.msk.bf16.vlgmr.msra.gmra.mxu3 %vm537_vm1, %v5566_v0  ;;  %3945 = vmatmul.msk.bf16.vlgmr.msra.gmra.mxu2 %vm537_vm1, %v5566_v0 }
 0x915   : > { %3947 = vmatmul.msk.bf16.vlgmr.msra.gmra.mxu0 %vm537_vm1, %v5566_v0  ;;  %3949 = vmatmul.msk.bf16.vlgmr.msra.gmra.mxu1 %vm537_vm1, %v5566_v0 }
 0x916   : > { %3310 = vmatpush.bf16.msra.mxu0 %v4532_v27  ;;  %3329 = vmatpush.bf16.msra.mxu1 %v4540_v56  ;;  %v4558_v56 = vld [vmem:[%s6275_s11 + $0x188] sm:$0xff] }
 0x917   : > { %3272 = vmatpush.bf16.msra.mxu3 %v4516_v24  ;;  %3291 = vmatpush.bf16.msra.mxu2 %v4524_v31  ;;  %v5917_v31 = vperm.slane %v5882_v18, 0 }
 0x91a   : > { %3311 = vmatpush.bf16.msra.mxu0 %v4531_v30  ;;  %3330 = vmatpush.bf16.msra.mxu1 %v4539_v21  ;;  %v4566_v30 = vld [vmem:[%s6275_s11 + $0x1c8] sm:$0xff] }
 0x91b   : > { %3273 = vmatpush.bf16.msra.mxu3 %v4515_v29  ;;  %3292 = vmatpush.bf16.msra.mxu2 %v4523_v36  ;;  %v4543_v36 = vld [vmem:[%s6275_s11 + $0x110] sm:$0xff] }
 0x91e   : > { %3312 = vmatpush.bf16.msra.mxu0 %v4530_v34  ;;  %3331 = vmatpush.bf16.msra.mxu1 %v4538_v7  ;;  %v5920_v34 = vperm.slane %v5882_v18, 1 }
 0x91f   : > { %3274 = vmatpush.bf16.msra.mxu3 %v4514_v40  ;;  %3293 = vmatpush.bf16.msra.mxu2 %v4522_v38  ;;  %v4557_v38 = vld [vmem:[%s6275_s11 + $0x180] sm:$0xff] }
 0x922   : > { %3313 = vmatpush.bf16.msra.mxu0 %v4529_v39  ;;  %3332 = vmatpush.bf16.msra.mxu1 %v4537_v28  ;;  %v4551_v39 = vld [vmem:[%s6275_s11 + $0x150] sm:$0xff] }
 0x923   : > { %3275 = vmatpush.bf16.msra.mxu3 %v4513_v41  ;;  %3294 = vmatpush.bf16.msra.mxu2 %v4521_v46 }
 0x924   : > { %3944 = vmatmul.msk.bf16.gmra.mxu3 %vm537_vm1, %v5593_v44  ;;  %3946 = vmatmul.msk.bf16.gmra.mxu2 %vm537_vm1, %v5593_v44 }
 0x925   : > { %3948 = vmatmul.msk.bf16.gmra.mxu0 %vm537_vm1, %v5593_v44  ;;  %3950 = vmatmul.msk.bf16.gmra.mxu1 %vm537_vm1, %v5593_v44 }
 0x926   : > { %3314 = vmatpush.bf16.msra.mxu0 %v4528_v43  ;;  %3333 = vmatpush.bf16.msra.mxu1 %v4536_v45  ;;  %v4565_v43 = vld [vmem:[%s6275_s11 + $0x1c0] sm:$0xff] }
 0x927   : > { %3276 = vmatpush.bf16.msra.mxu3 %v4512_v50  ;;  %3295 = vmatpush.bf16.msra.mxu2 %v4520_v52  ;;  %v4542_v52 = vld [vmem:[%s6275_s11 + $0x108] sm:$0xff] }
 0x92a   : > { %3315 = vmatpush.bf16.msra.mxu0 %v4527_v48  ;;  %3334 = vmatpush.bf16.msra.mxu1 %v4535_v42 }
 0x92b   : > { %3277 = vmatpush.bf16.msra.mxu3 %v4511_v53  ;;  %3296 = vmatpush.bf16.msra.mxu2 %v4519_v55 }
 0x92e   : > { %3316 = vmatpush.bf16.msra.mxu0 %v4526_v47  ;;  %v4550_v47 = vld [vmem:[%s6275_s11 + $0x148] sm:$0xff] }
 0x92f   : > { %3278 = vmatpush.bf16.msra.mxu3 %v4510_v37  ;;  %3297 = vmatpush.bf16.msra.mxu2 %v4518_v49  ;;  %v4596_v49 = vld [vmem:[%s6275_s11 + $0x2b8] sm:$0xff] }
 0x932   : > { %3317 = vmatpush.bf16.msra.mxu0 %v4525_v57 }
 0x933   : > { %3279 = vmatpush.bf16.msra.mxu3 %v4509_v15  ;;  %3298 = vmatpush.bf16.msra.mxu2 %v4517_v63 }
 0x934   : > { %3951 = vmatmul.msk.bf16.vlgmr.msrb.gmra.mxu3 %vm537_vm1, %v5566_v0  ;;  %3953 = vmatmul.msk.bf16.vlgmr.msrb.gmra.mxu2 %vm537_vm1, %v5566_v0 }
 0x935   : > { %3955 = vmatmul.msk.bf16.vlgmr.msrb.gmra.mxu0 %vm537_vm1, %v5566_v0  ;;  %3957 = vmatmul.msk.bf16.vlgmr.msrb.gmra.mxu1 %vm537_vm1, %v5566_v0  ;;  %v4534_v0 = vld [vmem:[%s6275_s11 + $0xc8] sm:$0xff] }
 0x936   : > { %3335 = vmatpush.bf16.msra.mxu1 %v4534_v0  ;;  %3386 = vmatpush.bf16.msrb.mxu0 %v4564_v61  ;;  %v4604_v61 = vld [vmem:[%s6275_s11 + $0x2f8] sm:$0xff] }
 0x937   : > { %3348 = vmatpush.bf16.msrb.mxu3 %v4548_v3  ;;  %3367 = vmatpush.bf16.msrb.mxu2 %v4556_v11  ;;  %v4541_v11 = vld [vmem:[%s6275_s11 + $0x100] sm:$0xff] }
 0x93a   : > { %3336 = vmatpush.bf16.msra.mxu1 %v4533_v58  ;;  %3387 = vmatpush.bf16.msrb.mxu0 %v4563_v54 }
 0x93b   : > { %3349 = vmatpush.bf16.msrb.mxu3 %v4547_v33  ;;  %3368 = vmatpush.bf16.msrb.mxu2 %v4555_v4  ;;  %v4595_v4 = vld [vmem:[%s6275_s11 + $0x2b0] sm:$0xff] }
 0x93e   : > { %3405 = vmatpush.bf16.msrb.mxu1 %v4572_v62  ;;  %3388 = vmatpush.bf16.msrb.mxu0 %v4562_v2  ;;  %v4549_v2 = vld [vmem:[%s6275_s11 + $0x140] sm:$0xff] }
 0x93f   : > { %3350 = vmatpush.bf16.msrb.mxu3 %v4546_v1  ;;  %3369 = vmatpush.bf16.msrb.mxu2 %v4554_v16  ;;  %v4588_v1 = vld [vmem:[%s6275_s11 + $0x278] sm:$0xff] }
 0x942   : > { %3406 = vmatpush.bf16.msrb.mxu1 %v4571_v25  ;;  %3389 = vmatpush.bf16.msrb.mxu0 %v4561_v6  ;;  %v4603_v6 = vld [vmem:[%s6275_s11 + $0x2f0] sm:$0xff] }
 0x943   : > { %3351 = vmatpush.bf16.msrb.mxu3 %v4545_v14  ;;  %3370 = vmatpush.bf16.msrb.mxu2 %v4553_v13 }
 0x944   : > { %3952 = vmatmul.msk.bf16.gmra.mxu3 %vm537_vm1, %v5593_v44  ;;  %3954 = vmatmul.msk.bf16.gmra.mxu2 %vm537_vm1, %v5593_v44 }
 0x945   : > { %3956 = vmatmul.msk.bf16.gmra.mxu0 %vm537_vm1, %v5593_v44  ;;  %3958 = vmatmul.msk.bf16.gmra.mxu1 %vm537_vm1, %v5593_v44  ;;  %v4570_v44 = vld [vmem:[%s6275_s11 + $0x1e8] sm:$0xff] }
 0x946   : > { %3407 = vmatpush.bf16.msrb.mxu1 %v4570_v44  ;;  %3390 = vmatpush.bf16.msrb.mxu0 %v4560_v12 }
 0x947   : > { %3352 = vmatpush.bf16.msrb.mxu3 %v4544_v23  ;;  %3371 = vmatpush.bf16.msrb.mxu2 %v4552_v26  ;;  %v4587_v23 = vld [vmem:[%s6275_s11 + $0x270] sm:$0xff] }
 0x94a   : > { %3408 = vmatpush.bf16.msrb.mxu1 %v4569_v60  ;;  %3391 = vmatpush.bf16.msrb.mxu0 %v4559_v51  ;;  %v4580_v60 = vld [vmem:[%s6275_s11 + $0x238] sm:$0xff] }
 0x94b   : > { %3353 = vmatpush.bf16.msrb.mxu3 %v4543_v36  ;;  %3372 = vmatpush.bf16.msrb.mxu2 %v4551_v39  ;;  %v4586_v36 = vld [vmem:[%s6275_s11 + $0x268] sm:$0xff] }
 0x94e   : > { %3409 = vmatpush.bf16.msrb.mxu1 %v4568_v17  ;;  %3392 = vmatpush.bf16.msrb.mxu0 %v4558_v56  ;;  %v4594_v17 = vld [vmem:[%s6275_s11 + $0x2a8] sm:$0xff]  ;;  %v4601_v56 = vld [vmem:[%s6275_s11 + $0x2e0] sm:$0xff] }
 0x94f   : > { %3354 = vmatpush.bf16.msrb.mxu3 %v4542_v52  ;;  %3373 = vmatpush.bf16.msrb.mxu2 %v4550_v47 }
 0x952   : > { %v1894_v10 = vpop.f32.mrf.mxu0  ;;  %v1913_v59 = vpop.f32.mrf.mxu1  ;;  %3410 = vmatpush.bf16.msrb.mxu1 %v4567_v20  ;;  %3393 = vmatpush.bf16.msrb.mxu0 %v4557_v38  ;;  %v4579_v20 = vld [vmem:[%s6275_s11 + $0x230] sm:$0xff] }
 0x953   : > { %v1895_v21 = vadd.f32 %v1894_v10, %v5897_v5  ;;  %v1914_v24 = vadd.f32 %v1913_v59, %v5900_v8  ;;  %3355 = vmatpush.bf16.msrb.mxu3 %v4541_v11  ;;  %3374 = vmatpush.bf16.msrb.mxu2 %v4549_v2  ;;  %v4602_v10 = vld [vmem:[%s6275_s11 + $0x2e8] sm:$0xff]  ;;  %v6041_v2 = vperm.slane %v5882_v18, 4 }
 0x955   : > { %v2153_v45 = vmax.f32 %v1895_v21, 0.0  ;;  %v2154_v41 = vmax.f32 %v1914_v24, 0.0 }
 0x956   : > { %3411 = vmatpush.bf16.msrb.mxu1 %v4566_v30 }
 0x957   : > { %v1856_v35 = vpop.f32.mrf.mxu3  ;;  %v1875_v27 = vpop.f32.mrf.mxu2 }
 0x958   : > { %v1857_v42 = vadd.f32 %v1856_v35, %v5917_v31  ;;  %v1876_v50 = vadd.f32 %v1875_v27, %v5920_v34  ;;  %v4593_v27 = vld [vmem:[%s6275_s11 + $0x2a0] sm:$0xff] }
 0x95a   : > { %v1896_v7 = vpop.f32.mrf.mxu0  ;;  %v1915_v29 = vpop.f32.mrf.mxu1  ;;  %3412 = vmatpush.bf16.msrb.mxu1 %v4565_v43  ;;  %v2151_v62 = vmax.f32 %v1857_v42, 0.0  ;;  %v2152_v15 = vmax.f32 %v1876_v50, 0.0 }
 0x95b   : > { %v1897_v28 = vadd.f32 %v1896_v7, %v5897_v5  ;;  %v1916_v40 = vadd.f32 %v1915_v29, %v5900_v8  ;;  %v4578_v29 = vld [vmem:[%s6275_s11 + $0x228] sm:$0xff] }
 0x95d   : > { %v2169_v46 = vmax.f32 %v1897_v28, 0.0  ;;  %v2170_v48 = vmax.f32 %v1916_v40, 0.0 }
 0x95f   : > { %v2217_v0 = vpack.c.bf16 %v2169_v46, %v2153_v45  ;;  %v2218_v53 = vpack.c.bf16 %v2170_v48, %v2154_v41  ;;  %v1858_v55 = vpop.f32.mrf.mxu3  ;;  %v1877_v57 = vpop.f32.mrf.mxu2  ;;  %v4592_v41 = vld [vmem:[%s6275_s11 + $0x298] sm:$0xff] }
 0x960   : > { %v1859_v58 = vadd.f32 %v1858_v55, %v5917_v31  ;;  %v1878_v37 = vadd.f32 %v1877_v57, %v5920_v34  ;;  %v4600_v46 = vld [vmem:[%s6275_s11 + $0x2d8] sm:$0xff]  ;;  %v4591_v57 = vld [vmem:[%s6275_s11 + $0x290] sm:$0xff] }
 0x961   : > { %3318 = vmatmul.bf16.vlgmr.msra.gmra.mxu0 %v2217_v0  ;;  %3337 = vmatmul.bf16.vlgmr.msra.gmra.mxu1 %v2218_v53  ;;  %v4585_v0 = vld [vmem:[%s6275_s11 + $0x260] sm:$0xff] }
 0x962   : > { %v2167_v63 = vmax.f32 %v1859_v58, 0.0  ;;  %v2168_v54 = vmax.f32 %v1878_v37, 0.0  ;;  %v1899_v25 = vpop.f32.mrf.mxu0  ;;  %v1918_v3 = vpop.f32.mrf.mxu1  ;;  %3462 = vmatpush.bf16.msra.mxu0 %v4596_v49  ;;  %3481 = vmatpush.bf16.msra.mxu1 %v4604_v61  ;;  %v4599_v58 = vld [vmem:[%s6275_s11 + $0x2d0] sm:$0xff]  ;;  %v6021_v37 = vperm.slane %v5882_v18, 6  ;;  %v6024_v49 = vperm.slane %v5882_v18, 7  ;;  %v4576_v61 = vld [vmem:[%s6275_s11 + $0x218] sm:$0xff] }
 0x963   : > { %v1900_v59 = vadd.f32 %v1899_v25, %v5897_v5  ;;  %v1919_v14 = vadd.f32 %v1918_v3, %v5900_v8  ;;  %v4598_v25 = vld [vmem:[%s6275_s11 + $0x2c8] sm:$0xff] }
 0x964   : > { %v2215_v44 = vpack.c.bf16 %v2167_v63, %v2151_v62  ;;  %v2216_v33 = vpack.c.bf16 %v2168_v54, %v2152_v15  ;;  %v4584_v62 = vld [vmem:[%s6275_s11 + $0x258] sm:$0xff]  ;;  %v4590_v54 = vld [vmem:[%s6275_s11 + $0x288] sm:$0xff] }
 0x965   : > { %v2185_v30 = vmax.f32 %v1900_v59, 0.0  ;;  %v2186_v21 = vmax.f32 %v1919_v14, 0.0 }
 0x966   : > { %3280 = vmatmul.bf16.vlgmr.msra.gmra.mxu3 %v2215_v44  ;;  %3299 = vmatmul.bf16.vlgmr.msra.gmra.mxu2 %v2216_v33  ;;  %v6044_v44 = vperm.slane %v5882_v18, 5  ;;  %v4589_v18 = vld [vmem:[%s6275_s11 + $0x280] sm:$0xff] }
 0x967   : > { %v1861_v16 = vpop.f32.mrf.mxu3  ;;  %v1880_v12 = vpop.f32.mrf.mxu2  ;;  %3463 = vmatpush.bf16.msra.mxu0 %v4595_v4  ;;  %3482 = vmatpush.bf16.msra.mxu1 %v4603_v6  ;;  %v4575_v6 = vld [vmem:[%s6275_s11 + $0x210] sm:$0xff] }
 0x968   : > { %3424 = vmatpush.bf16.msra.mxu3 %v4580_v60  ;;  %3443 = vmatpush.bf16.msra.mxu2 %v4588_v1  ;;  %v4583_v60 = vld [vmem:[%s6275_s11 + $0x250] sm:$0xff] }
 0x96a   : > { %v1901_v13 = vpop.f32.mrf.mxu0  ;;  %v1920_v51 = vpop.f32.mrf.mxu1 }
 0x96b   : > { %v1902_v26 = vadd.f32 %v1901_v13, %v5897_v5  ;;  %v1921_v35 = vadd.f32 %v1920_v51, %v5900_v8  ;;  %3464 = vmatpush.bf16.msra.mxu0 %v4594_v17  ;;  %3483 = vmatpush.bf16.msra.mxu1 %v4602_v10  ;;  %v1862_v5 = vadd.f32 %v1861_v16, %v5917_v31 }
 0x96c   : > { %3425 = vmatpush.bf16.msra.mxu3 %v4579_v20  ;;  %3444 = vmatpush.bf16.msra.mxu2 %v4587_v23  ;;  %v1881_v8 = vadd.f32 %v1880_v12, %v5920_v34  ;;  %v4597_v12 = vld [vmem:[%s6275_s11 + $0x2c0] sm:$0xff]  ;;  %v4574_v20 = vld [vmem:[%s6275_s11 + $0x208] sm:$0xff] }
 0x96d   : > { %v2201_v24 = vmax.f32 %v1902_v26, 0.0  ;;  %v2202_v7 = vmax.f32 %v1921_v35, 0.0  ;;  %v2183_v48 = vmax.f32 %v1862_v5, 0.0  ;;  %v4582_v23 = vld [vmem:[%s6275_s11 + $0x248] sm:$0xff] }
 0x96e   : > { %v2184_v42 = vmax.f32 %v1881_v8, 0.0 }
 0x96f   : > { %v1863_v39 = vpop.f32.mrf.mxu3  ;;  %v1882_v28 = vpop.f32.mrf.mxu2  ;;  %v2233_v40 = vpack.c.bf16 %v2201_v24, %v2185_v30  ;;  %v2234_v38 = vpack.c.bf16 %v2202_v7, %v2186_v21  ;;  %3465 = vmatpush.bf16.msra.mxu0 %v4593_v27  ;;  %3484 = vmatpush.bf16.msra.mxu1 %v4601_v56  ;;  %v4628_v24 = vld [vmem:[%s6275_s11 + $0x3b8] sm:$0xff] }
 0x970   : > { %v1864_v43 = vadd.f32 %v1863_v39, %v5917_v31  ;;  %v1883_v45 = vadd.f32 %v1882_v28, %v5920_v34  ;;  %3426 = vmatpush.bf16.msra.mxu3 %v4578_v29  ;;  %3445 = vmatpush.bf16.msra.mxu2 %v4586_v36  ;;  %v4577_v34 = vld [vmem:[%s6275_s11 + $0x220] sm:$0xff]  ;;  %v4636_v7 = vld [vmem:[%s6275_s11 + $0x3f8] sm:$0xff] }
 0x971   : > { %3323 = vmatmul.bf16.gmra.mxu0 %v2233_v40  ;;  %3342 = vmatmul.bf16.gmra.mxu1 %v2234_v38  ;;  %v4573_v40 = vld [vmem:[%s6275_s11 + $0x200] sm:$0xff] }
 0x972   : > { %v2199_v50 = vmax.f32 %v1864_v43, 0.0  ;;  %v2200_v52 = vmax.f32 %v1883_v45, 0.0  ;;  %v1970_v47 = vpop.f32.mrf.mxu0  ;;  %v1989_v31 = vpop.f32.mrf.mxu1  ;;  %v4581_v38 = vld [vmem:[%s6275_s11 + $0x240] sm:$0xff] }
 0x973   : > { %3466 = vmatpush.bf16.msra.mxu0 %v4592_v41  ;;  %3485 = vmatpush.bf16.msra.mxu1 %v4600_v46  ;;  %v1971_v3 = vadd.f32 %v1970_v47, %v6021_v37  ;;  %v1990_v11 = vadd.f32 %v1989_v31, %v6024_v49  ;;  %v4627_v41 = vld [vmem:[%s6275_s11 + $0x3b0] sm:$0xff]  ;;  %v4626_v47 = vld [vmem:[%s6275_s11 + $0x3a8] sm:$0xff] }
 0x974   : > { %v2231_v53 = vpack.c.bf16 %v2199_v50, %v2183_v48  ;;  %v2232_v55 = vpack.c.bf16 %v2200_v52, %v2184_v42  ;;  %3427 = vmatpush.bf16.msra.mxu3 %v4577_v34  ;;  %3446 = vmatpush.bf16.msra.mxu2 %v4585_v0  ;;  %v4635_v46 = vld [vmem:[%s6275_s11 + $0x3f0] sm:$0xff]  ;;  %v4612_v48 = vld [vmem:[%s6275_s11 + $0x338] sm:$0xff]  ;;  %v4634_v31 = vld [vmem:[%s6275_s11 + $0x3e8] sm:$0xff] }
 0x975   : > { %v2157_v17 = vmax.f32 %v1971_v3, 0.0  ;;  %v2158_v10 = vmax.f32 %v1990_v11, 0.0  ;;  %v4620_v42 = vld [vmem:[%s6275_s11 + $0x378] sm:$0xff] }
 0x976   : > { %3285 = vmatmul.bf16.gmra.mxu3 %v2231_v53  ;;  %3304 = vmatmul.bf16.gmra.mxu2 %v2232_v55 }
 0x977   : > { %v1932_v15 = vpop.f32.mrf.mxu3  ;;  %v1951_v63 = vpop.f32.mrf.mxu2  ;;  %3467 = vmatpush.bf16.msra.mxu0 %v4591_v57  ;;  %3486 = vmatpush.bf16.msra.mxu1 %v4599_v58  ;;  %v4611_v57 = vld [vmem:[%s6275_s11 + $0x330] sm:$0xff] }
 0x978   : > { %3428 = vmatpush.bf16.msra.mxu3 %v4576_v61  ;;  %3447 = vmatpush.bf16.msra.mxu2 %v4584_v62  ;;  %v1933_v13 = vadd.f32 %v1932_v15, %v6041_v2  ;;  %v1952_v51 = vadd.f32 %v1951_v63, %v6044_v44  ;;  %v4619_v58 = vld [vmem:[%s6275_s11 + $0x370] sm:$0xff]  ;;  %v4625_v15 = vld [vmem:[%s6275_s11 + $0x3a0] sm:$0xff] }
 0x979   : > { %v4633_v63 = vld [vmem:[%s6275_s11 + $0x3e0] sm:$0xff] }
 0x97a   : > { %v1972_v33 = vpop.f32.mrf.mxu0  ;;  %v1991_v4 = vpop.f32.mrf.mxu1  ;;  %v2155_v5 = vmax.f32 %v1933_v13, 0.0  ;;  %v2156_v8 = vmax.f32 %v1952_v51, 0.0 }
 0x97b   : > { %v1973_v1 = vadd.f32 %v1972_v33, %v6021_v37  ;;  %v1992_v16 = vadd.f32 %v1991_v4, %v6024_v49  ;;  %3468 = vmatpush.bf16.msra.mxu0 %v4590_v54  ;;  %3487 = vmatpush.bf16.msra.mxu1 %v4598_v25  ;;  %v4610_v33 = vld [vmem:[%s6275_s11 + $0x328] sm:$0xff] }
 0x97c   : > { %3429 = vmatpush.bf16.msra.mxu3 %v4575_v6  ;;  %3448 = vmatpush.bf16.msra.mxu2 %v4583_v60  ;;  %v4618_v4 = vld [vmem:[%s6275_s11 + $0x368] sm:$0xff] }
 0x97d   : > { %v2173_v59 = vmax.f32 %v1973_v1, 0.0  ;;  %v2174_v14 = vmax.f32 %v1992_v16, 0.0 }
 0x97f   : > { %v2221_v26 = vpack.c.bf16 %v2173_v59, %v2157_v17  ;;  %v2222_v35 = vpack.c.bf16 %v2174_v14, %v2158_v10  ;;  %v1934_v27 = vpop.f32.mrf.mxu3  ;;  %v1953_v56 = vpop.f32.mrf.mxu2  ;;  %3469 = vmatpush.bf16.msra.mxu0 %v4589_v18  ;;  %3488 = vmatpush.bf16.msra.mxu1 %v4597_v12  ;;  %v4624_v17 = vld [vmem:[%s6275_s11 + $0x398] sm:$0xff]  ;;  %v6135_v59 = vld [vmem:[%s6274_s10 + $0x8] sm:$0xff] }
 0x980   : > { %v1935_v30 = vadd.f32 %v1934_v27, %v6041_v2  ;;  %v1954_v21 = vadd.f32 %v1953_v56, %v6044_v44  ;;  %3430 = vmatpush.bf16.msra.mxu3 %v4574_v20  ;;  %3449 = vmatpush.bf16.msra.mxu2 %v4582_v23  ;;  %v4632_v10 = vld [vmem:[%s6275_s11 + $0x3d8] sm:$0xff]  ;;  %v4609_v23 = vld [vmem:[%s6275_s11 + $0x320] sm:$0xff]  ;;  %v4623_v56 = vld [vmem:[%s6275_s11 + $0x390] sm:$0xff] }
 0x981   : > { %3394 = vmatmul.bf16.vlgmr.msrb.gmra.mxu0 %v2221_v26  ;;  %3413 = vmatmul.bf16.vlgmr.msrb.gmra.mxu1 %v2222_v35  ;;  %v4617_v26 = vld [vmem:[%s6275_s11 + $0x360] sm:$0xff] }
 0x982   : > { %v2171_v29 = vmax.f32 %v1935_v30, 0.0  ;;  %v2172_v36 = vmax.f32 %v1954_v21, 0.0  ;;  %v1975_v39 = vpop.f32.mrf.mxu0  ;;  %v1994_v28 = vpop.f32.mrf.mxu1  ;;  %v4631_v30 = vld [vmem:[%s6275_s11 + $0x3d0] sm:$0xff]  ;;  %v6150_v21 = vperm.slane %v6135_v59, 2 }
 0x983   : > { %3538 = vmatpush.bf16.msrb.mxu0 %v4628_v24  ;;  %3557 = vmatpush.bf16.msrb.mxu1 %v4636_v7  ;;  %v1976_v34 = vadd.f32 %v1975_v39, %v6021_v37  ;;  %v1995_v0 = vadd.f32 %v1994_v28, %v6024_v49  ;;  %v6153_v24 = vperm.slane %v6135_v59, 3  ;;  %v4608_v7 = vld [vmem:[%s6275_s11 + $0x318] sm:$0xff]  ;;  %v4630_v39 = vld [vmem:[%s6275_s11 + $0x3c8] sm:$0xff] }
 0x984   : > { %v2219_v43 = vpack.c.bf16 %v2171_v29, %v2155_v5  ;;  %v2220_v45 = vpack.c.bf16 %v2172_v36, %v2156_v8  ;;  %3431 = vmatpush.bf16.msra.mxu3 %v4573_v40  ;;  %3450 = vmatpush.bf16.msra.mxu2 %v4581_v38  ;;  %v4616_v5 = vld [vmem:[%s6275_s11 + $0x358] sm:$0xff]  ;;  %v4622_v36 = vld [vmem:[%s6275_s11 + $0x388] sm:$0xff]  ;;  %v6170_v38 = vperm.slane %v6135_v59, 0 }
 0x985   : > { %v2189_v54 = vmax.f32 %v1976_v34, 0.0  ;;  %v2190_v25 = vmax.f32 %v1995_v0, 0.0 }
 0x986   : > { %3356 = vmatmul.bf16.vlgmr.msrb.gmra.mxu3 %v2219_v43  ;;  %3375 = vmatmul.bf16.vlgmr.msrb.gmra.mxu2 %v2220_v45  ;;  %v6173_v43 = vperm.slane %v6135_v59, 1 }
 0x987   : > { %v1937_v50 = vpop.f32.mrf.mxu3  ;;  %v1956_v52 = vpop.f32.mrf.mxu2  ;;  %3539 = vmatpush.bf16.msrb.mxu0 %v4627_v41  ;;  %3558 = vmatpush.bf16.msrb.mxu1 %v4635_v46  ;;  %v4607_v46 = vld [vmem:[%s6275_s11 + $0x310] sm:$0xff] }
 0x988   : > { %3500 = vmatpush.bf16.msrb.mxu3 %v4612_v48  ;;  %3519 = vmatpush.bf16.msrb.mxu2 %v4620_v42  ;;  %v4615_v48 = vld [vmem:[%s6275_s11 + $0x350] sm:$0xff] }
 0x98a   : > { %v1977_v53 = vpop.f32.mrf.mxu0  ;;  %v1996_v55 = vpop.f32.mrf.mxu1 }
 0x98b   : > { %v1978_v61 = vadd.f32 %v1977_v53, %v6021_v37  ;;  %v1997_v62 = vadd.f32 %v1996_v55, %v6024_v49  ;;  %3540 = vmatpush.bf16.msrb.mxu0 %v4626_v47  ;;  %3559 = vmatpush.bf16.msrb.mxu1 %v4634_v31  ;;  %v1938_v37 = vadd.f32 %v1937_v50, %v6041_v2  ;;  %v4629_v47 = vld [vmem:[%s6275_s11 + $0x3c0] sm:$0xff] }
 0x98c   : > { %3501 = vmatpush.bf16.msrb.mxu3 %v4611_v57  ;;  %3520 = vmatpush.bf16.msrb.mxu2 %v4619_v58  ;;  %v1957_v49 = vadd.f32 %v1956_v52, %v6044_v44  ;;  %v4621_v52 = vld [vmem:[%s6275_s11 + $0x380] sm:$0xff]  ;;  %v4606_v58 = vld [vmem:[%s6275_s11 + $0x308] sm:$0xff] }
 0x98d   : > { %v2205_v3 = vmax.f32 %v1978_v61, 0.0  ;;  %v2206_v11 = vmax.f32 %v1997_v62, 0.0  ;;  %v4614_v61 = vld [vmem:[%s6275_s11 + $0x348] sm:$0xff] }
 0x98e   : > { %v2188_v14 = vmax.f32 %v1957_v49, 0.0 }
 0x98f   : > { %v1939_v6 = vpop.f32.mrf.mxu3  ;;  %v1958_v60 = vpop.f32.mrf.mxu2  ;;  %v2237_v1 = vpack.c.bf16 %v2205_v3, %v2189_v54  ;;  %v2238_v16 = vpack.c.bf16 %v2206_v11, %v2190_v25  ;;  %3541 = vmatpush.bf16.msrb.mxu0 %v4625_v15  ;;  %3560 = vmatpush.bf16.msrb.mxu1 %v4633_v63 }
 0x990   : > { %v1940_v18 = vadd.f32 %v1939_v6, %v6041_v2  ;;  %v1959_v12 = vadd.f32 %v1958_v60, %v6044_v44  ;;  %3502 = vmatpush.bf16.msrb.mxu3 %v4610_v33  ;;  %3521 = vmatpush.bf16.msrb.mxu2 %v4618_v4  ;;  %v2187_v2 = vmax.f32 %v1938_v37, 0.0  ;;  %v4605_v60 = vld [vmem:[%s6275_s11 + $0x300] sm:$0xff] }
 0x991   : > { %3399 = vmatmul.bf16.gmra.mxu0 %v2237_v1  ;;  %3418 = vmatmul.bf16.gmra.mxu1 %v2238_v16  ;;  %v4613_v1 = vld [vmem:[%s6275_s11 + $0x340] sm:$0xff] }
 0x992   : > { %v2203_v44 = vmax.f32 %v1940_v18, 0.0  ;;  %v2204_v13 = vmax.f32 %v1959_v12, 0.0  ;;  %v2046_v51 = vpop.f32.mrf.mxu0  ;;  %v2065_v20 = vpop.f32.mrf.mxu1 }
 0x993   : > { %3542 = vmatpush.bf16.msrb.mxu0 %v4624_v17  ;;  %3561 = vmatpush.bf16.msrb.mxu1 %v4632_v10  ;;  %v2047_v28 = vadd.f32 %v2046_v51, %v6150_v21  ;;  %v2066_v40 = vadd.f32 %v2065_v20, %v6153_v24 }
 0x994   : > { %v2235_v35 = vpack.c.bf16 %v2203_v44, %v2187_v2  ;;  %v2236_v27 = vpack.c.bf16 %v2204_v13, %v2188_v14  ;;  %3503 = vmatpush.bf16.msrb.mxu3 %v4609_v23  ;;  %3522 = vmatpush.bf16.msrb.mxu2 %v4617_v26 }
 0x995   : > { %v2161_v31 = vmax.f32 %v2047_v28, 0.0  ;;  %v2162_v34 = vmax.f32 %v2066_v40, 0.0 }
 0x996   : > { %3361 = vmatmul.bf16.gmra.mxu3 %v2235_v35  ;;  %3380 = vmatmul.bf16.gmra.mxu2 %v2236_v27 }
 0x997   : > { %v2008_v8 = vpop.f32.mrf.mxu3  ;;  %v2027_v29 = vpop.f32.mrf.mxu2  ;;  %3543 = vmatpush.bf16.msrb.mxu0 %v4623_v56  ;;  %3562 = vmatpush.bf16.msrb.mxu1 %v4631_v30 }
 0x998   : > { %3504 = vmatpush.bf16.msrb.mxu3 %v4608_v7  ;;  %3523 = vmatpush.bf16.msrb.mxu2 %v4616_v5  ;;  %v2009_v55 = vadd.f32 %v2008_v8, %v6170_v38  ;;  %v2028_v57 = vadd.f32 %v2027_v29, %v6173_v43 }
 0x99a   : > { %v2048_v45 = vpop.f32.mrf.mxu0  ;;  %v2067_v41 = vpop.f32.mrf.mxu1  ;;  %v2159_v11 = vmax.f32 %v2009_v55, 0.0  ;;  %v2160_v37 = vmax.f32 %v2028_v57, 0.0 }
 0x99b   : > { %v2049_v42 = vadd.f32 %v2048_v45, %v6150_v21  ;;  %v2068_v50 = vadd.f32 %v2067_v41, %v6153_v24  ;;  %3544 = vmatpush.bf16.msrb.mxu0 %v4622_v36  ;;  %3563 = vmatpush.bf16.msrb.mxu1 %v4630_v39 }
 0x99c   : > { %3505 = vmatpush.bf16.msrb.mxu3 %v4607_v46  ;;  %3524 = vmatpush.bf16.msrb.mxu2 %v4615_v48  ;;  %v1663_v48 = vperm.slane %v6135_v59, 6 }
 0x99d   : > { %v2177_v0 = vmax.f32 %v2049_v42, 0.0  ;;  %v2178_v53 = vmax.f32 %v2068_v50, 0.0  ;;  %v1664_v42 = vperm.slane %v6135_v59, 7 }
 0x99f   : > { %v2225_v62 = vpack.c.bf16 %v2177_v0, %v2161_v31  ;;  %v2226_v15 = vpack.c.bf16 %v2178_v53, %v2162_v34  ;;  %v2010_v63 = vpop.f32.mrf.mxu3  ;;  %v2029_v54 = vpop.f32.mrf.mxu2  ;;  %3545 = vmatpush.bf16.msrb.mxu0 %v4621_v52  ;;  %3564 = vmatpush.bf16.msrb.mxu1 %v4629_v47  ;;  %v1661_v47 = vperm.slane %v6135_v59, 4  ;;  %v1662_v31 = vperm.slane %v6135_v59, 5 }
 0x9a0   : > { %v2011_v25 = vadd.f32 %v2010_v63, %v6170_v38  ;;  %v2030_v3 = vadd.f32 %v2029_v54, %v6173_v43  ;;  %3506 = vmatpush.bf16.msrb.mxu3 %v4606_v58  ;;  %3525 = vmatpush.bf16.msrb.mxu2 %v4614_v61 }
 0x9a1   : > { %3470 = vmatmul.bf16.vlgmr.msra.gmra.mxu0 %v2225_v62  ;;  %3489 = vmatmul.bf16.vlgmr.msra.gmra.mxu1 %v2226_v15 }
 0x9a2   : > { %v2175_v49 = vmax.f32 %v2011_v25, 0.0  ;;  %v2176_v33 = vmax.f32 %v2030_v3, 0.0  ;;  %v2051_v4 = vpop.f32.mrf.mxu0  ;;  %v2070_v6 = vpop.f32.mrf.mxu1 }
 0x9a3   : > { %v2052_v10 = vadd.f32 %v2051_v4, %v6150_v21  ;;  %v2071_v2 = vadd.f32 %v2070_v6, %v6153_v24 }
 0x9a4   : > { %v2223_v16 = vpack.c.bf16 %v2175_v49, %v2159_v11  ;;  %v2224_v18 = vpack.c.bf16 %v2176_v33, %v2160_v37  ;;  %3507 = vmatpush.bf16.msrb.mxu3 %v4605_v60  ;;  %3526 = vmatpush.bf16.msrb.mxu2 %v4613_v1 }
 0x9a5   : > { %v2193_v20 = vmax.f32 %v2052_v10, 0.0  ;;  %v2194_v23 = vmax.f32 %v2071_v2, 0.0 }
 0x9a6   : > { %3432 = vmatmul.bf16.vlgmr.msra.gmra.mxu3 %v2223_v16  ;;  %3451 = vmatmul.bf16.vlgmr.msra.gmra.mxu2 %v2224_v18 }
 0x9a7   : > { %v2013_v12 = vpop.f32.mrf.mxu3  ;;  %v2032_v17 = vpop.f32.mrf.mxu2 }
 0x9a8   : > { %v2014_v27 = vadd.f32 %v2013_v12, %v6170_v38  ;;  %v2033_v56 = vadd.f32 %v2032_v17, %v6173_v43 }
 0x9aa   : > { %v2053_v14 = vpop.f32.mrf.mxu0  ;;  %v2072_v44 = vpop.f32.mrf.mxu1 }
 0x9ab   : > { %v2054_v13 = vadd.f32 %v2053_v14, %v6150_v21  ;;  %v2073_v51 = vadd.f32 %v2072_v44, %v6153_v24  ;;  %v2191_v21 = vmax.f32 %v2014_v27, 0.0  ;;  %v2192_v24 = vmax.f32 %v2033_v56, 0.0 }
 0x9ad   : > { %v2209_v26 = vmax.f32 %v2054_v13, 0.0  ;;  %v2210_v35 = vmax.f32 %v2073_v51, 0.0 }
 0x9af   : > { %v2241_v30 = vpack.c.bf16 %v2209_v26, %v2193_v20  ;;  %v2242_v7 = vpack.c.bf16 %v2210_v35, %v2194_v23  ;;  %v2015_v5 = vpop.f32.mrf.mxu3  ;;  %v2034_v8 = vpop.f32.mrf.mxu2 }
 0x9b0   : > { %v2016_v29 = vadd.f32 %v2015_v5, %v6170_v38  ;;  %v2035_v36 = vadd.f32 %v2034_v8, %v6173_v43 }
 0x9b1   : > { %3475 = vmatmul.bf16.gmra.mxu0 %v2241_v30  ;;  %3494 = vmatmul.bf16.gmra.mxu1 %v2242_v7 }
 0x9b2   : > { %v2207_v39 = vmax.f32 %v2016_v29, 0.0  ;;  %v2208_v28 = vmax.f32 %v2035_v36, 0.0  ;;  %v2122_v40 = vpop.f32.mrf.mxu0  ;;  %v2141_v45 = vpop.f32.mrf.mxu1 }
 0x9b3   : > { %v2123_v52 = vadd.f32 %v2122_v40, %v1663_v48  ;;  %v2142_v43 = vadd.f32 %v2141_v45, %v1664_v42 }
 0x9b4   : > { %v2239_v41 = vpack.c.bf16 %v2207_v39, %v2191_v21  ;;  %v2240_v46 = vpack.c.bf16 %v2208_v28, %v2192_v24 }
 0x9b5   : > { %v2165_v57 = vmax.f32 %v2123_v52, 0.0  ;;  %v2166_v58 = vmax.f32 %v2142_v43, 0.0 }
 0x9b6   : > { %3437 = vmatmul.bf16.gmra.mxu3 %v2239_v41  ;;  %3456 = vmatmul.bf16.gmra.mxu2 %v2240_v46 }
 0x9b7   : > { %v2084_v50 = vpop.f32.mrf.mxu3  ;;  %v2103_v38 = vpop.f32.mrf.mxu2 }
 0x9b8   : > { %v2085_v15 = vadd.f32 %v2084_v50, %v1661_v47  ;;  %v2104_v63 = vadd.f32 %v2103_v38, %v1662_v31  ;;  %v4743_v50 = vld [vmem:[%s6272_s8 + $0x6] ss:$0 sm:$0xff] }
 0x9ba   : > { %v2124_v34 = vpop.f32.mrf.mxu0  ;;  %v2143_v0 = vpop.f32.mrf.mxu1  ;;  %v2163_v33 = vmax.f32 %v2085_v15, 0.0  ;;  %v2164_v59 = vmax.f32 %v2104_v63, 0.0 }
 0x9bb   : > { %v2125_v53 = vadd.f32 %v2124_v34, %v1663_v48  ;;  %v2144_v55 = vadd.f32 %v2143_v0, %v1664_v42 }
 0x9bd   : > { %v2181_v61 = vmax.f32 %v2125_v53, 0.0  ;;  %v2182_v62 = vmax.f32 %v2144_v55, 0.0 }
 0x9bf   : > { %v2229_v54 = vpack.c.bf16 %v2181_v61, %v2165_v57  ;;  %v2230_v25 = vpack.c.bf16 %v2182_v62, %v2166_v58  ;;  %v2086_v3 = vpop.f32.mrf.mxu3  ;;  %v2105_v11 = vpop.f32.mrf.mxu2 }
 0x9c0   : > { %v2087_v37 = vadd.f32 %v2086_v3, %v1661_v47  ;;  %v2106_v49 = vadd.f32 %v2105_v11, %v1662_v31 }
 0x9c1   : > { %3546 = vmatmul.bf16.vlgmr.msrb.gmra.mxu0 %v2229_v54  ;;  %3565 = vmatmul.bf16.vlgmr.msrb.gmra.mxu1 %v2230_v25 }
 0x9c2   : > { %v2179_v4 = vmax.f32 %v2087_v37, 0.0  ;;  %v2180_v6 = vmax.f32 %v2106_v49, 0.0  ;;  %v2127_v60 = vpop.f32.mrf.mxu0  ;;  %v2146_v1 = vpop.f32.mrf.mxu1 }
 0x9c3   : > { %v2128_v10 = vadd.f32 %v2127_v60, %v1663_v48  ;;  %v2147_v2 = vadd.f32 %v2146_v1, %v1664_v42 }
 0x9c4   : > { %v2227_v16 = vpack.c.bf16 %v2179_v4, %v2163_v33  ;;  %v2228_v18 = vpack.c.bf16 %v2180_v6, %v2164_v59 }
 0x9c5   : > { %v2197_v20 = vmax.f32 %v2128_v10, 0.0  ;;  %v2198_v23 = vmax.f32 %v2147_v2, 0.0 }
 0x9c6   : > { %3508 = vmatmul.bf16.vlgmr.msrb.gmra.mxu3 %v2227_v16  ;;  %3527 = vmatmul.bf16.vlgmr.msrb.gmra.mxu2 %v2228_v18 }
 0x9c7   : > { %v2089_v12 = vpop.f32.mrf.mxu3  ;;  %v2108_v17 = vpop.f32.mrf.mxu2 }
 0x9c8   : > { %v2090_v27 = vadd.f32 %v2089_v12, %v1661_v47  ;;  %v2109_v56 = vadd.f32 %v2108_v17, %v1662_v31 }
 0x9ca   : > { %v2129_v14 = vpop.f32.mrf.mxu0  ;;  %v2148_v44 = vpop.f32.mrf.mxu1  ;;  %v2195_v21 = vmax.f32 %v2090_v27, 0.0  ;;  %v2196_v24 = vmax.f32 %v2109_v56, 0.0 }
 0x9cb   : > { %v2130_v13 = vadd.f32 %v2129_v14, %v1663_v48  ;;  %v2149_v51 = vadd.f32 %v2148_v44, %v1664_v42 }
 0x9cd   : > { %v2213_v26 = vmax.f32 %v2130_v13, 0.0  ;;  %v2214_v35 = vmax.f32 %v2149_v51, 0.0 }
 0x9cf   : > { %v2245_v30 = vpack.c.bf16 %v2213_v26, %v2197_v20  ;;  %v2246_v7 = vpack.c.bf16 %v2214_v35, %v2198_v23  ;;  %v2091_v5 = vpop.f32.mrf.mxu3  ;;  %v2110_v8 = vpop.f32.mrf.mxu2 }
 0x9d0   : > { %v2092_v29 = vadd.f32 %v2091_v5, %v1661_v47  ;;  %v2111_v36 = vadd.f32 %v2110_v8, %v1662_v31 }
 0x9d1   : > { %3551 = vmatmul.bf16.gmra.mxu0 %v2245_v30  ;;  %3570 = vmatmul.bf16.gmra.mxu1 %v2246_v7 }
 0x9d2   : > { %v2211_v39 = vmax.f32 %v2092_v29, 0.0  ;;  %v2212_v28 = vmax.f32 %v2111_v36, 0.0 }
 0x9d4   : > { %v2243_v40 = vpack.c.bf16 %v2211_v39, %v2195_v21  ;;  %v2244_v45 = vpack.c.bf16 %v2212_v28, %v2196_v24 }
 0x9d6   : > { %3513 = vmatmul.bf16.gmra.mxu3 %v2243_v40  ;;  %3532 = vmatmul.bf16.gmra.mxu2 %v2244_v45 }
 0x9de   : > { %v3319_v41 = vpop.f32.mrf.mxu0  ;;  %v3338_v46 = vpop.f32.mrf.mxu1 }
 0x9e6   : > { %v3321_v48 = vpop.f32.mrf.mxu0  ;;  %v3340_v42 = vpop.f32.mrf.mxu1 }
 0x9e9   : > { %v3281_v38 = vpop.f32.mrf.mxu3  ;;  %v3300_v52 = vpop.f32.mrf.mxu2 }
 0x9ea   : > { %v3282_v43 = vadd.f32 %v4743_v50, %v3281_v38 }
 0x9ec   : > { %v3301_v47 = vadd.f32 %v3300_v52, %v3282_v43 }
 0x9ee   : > { %v3320_v31 = vadd.f32 %v3319_v41, %v3301_v47  ;;  %v3324_v34 = vpop.f32.mrf.mxu0  ;;  %v3343_v0 = vpop.f32.mrf.mxu1 }
 0x9f0   : > { %v3339_v53 = vadd.f32 %v3338_v46, %v3320_v31 }
 0x9f1   : > { %v3283_v55 = vpop.f32.mrf.mxu3  ;;  %v3302_v57 = vpop.f32.mrf.mxu2 }
 0x9f2   : > { %v3284_v58 = vadd.f32 %v4743_v50, %v3283_v55 }
 0x9f4   : > { %v3303_v61 = vadd.f32 %v3302_v57, %v3284_v58 }
 0x9f6   : > { %v3322_v62 = vadd.f32 %v3321_v48, %v3303_v61  ;;  %v3326_v15 = vpop.f32.mrf.mxu0  ;;  %v3345_v63 = vpop.f32.mrf.mxu1 }
 0x9f8   : > { %v3341_v54 = vadd.f32 %v3340_v42, %v3322_v62 }
 0x9f9   : > { %v3286_v25 = vpop.f32.mrf.mxu3  ;;  %v3305_v3 = vpop.f32.mrf.mxu2 }
 0x9fa   : > { %v3287_v11 = vadd.f32 %v4743_v50, %v3286_v25 }
 0x9fc   : > { %v3306_v37 = vadd.f32 %v3305_v3, %v3287_v11 }
 0x9fe   : > { %v3325_v49 = vadd.f32 %v3324_v34, %v3306_v37  ;;  %v3395_v33 = vpop.f32.mrf.mxu0  ;;  %v3414_v59 = vpop.f32.mrf.mxu1 }
 0xa00   : > { %v3344_v4 = vadd.f32 %v3343_v0, %v3325_v49 }
 0xa01   : > { %v3288_v6 = vpop.f32.mrf.mxu3  ;;  %v3307_v60 = vpop.f32.mrf.mxu2 }
 0xa02   : > { %v3289_v1 = vadd.f32 %v4743_v50, %v3288_v6 }
 0xa04   : > { %v3308_v16 = vadd.f32 %v3307_v60, %v3289_v1 }
 0xa06   : > { %v3327_v18 = vadd.f32 %v3326_v15, %v3308_v16  ;;  %v3397_v12 = vpop.f32.mrf.mxu0  ;;  %v3416_v17 = vpop.f32.mrf.mxu1 }
 0xa08   : > { %v3346_v10 = vadd.f32 %v3345_v63, %v3327_v18 }
 0xa09   : > { %v3357_v2 = vpop.f32.mrf.mxu3  ;;  %v3376_v14 = vpop.f32.mrf.mxu2 }
 0xa0a   : > { %v3358_v44 = vadd.f32 %v3357_v2, %v3339_v53 }
 0xa0c   : > { %v3377_v13 = vadd.f32 %v3376_v14, %v3358_v44 }
 0xa0e   : > { %v3396_v51 = vadd.f32 %v3395_v33, %v3377_v13  ;;  %v3400_v20 = vpop.f32.mrf.mxu0  ;;  %v3419_v23 = vpop.f32.mrf.mxu1 }
 0xa10   : > { %v3415_v26 = vadd.f32 %v3414_v59, %v3396_v51 }
 0xa11   : > { %v3359_v35 = vpop.f32.mrf.mxu3  ;;  %v3378_v27 = vpop.f32.mrf.mxu2 }
 0xa12   : > { %v3360_v42 = vadd.f32 %v3359_v35, %v3341_v54 }
 0xa14   : > { %v3379_v52 = vadd.f32 %v3378_v27, %v3360_v42 }
 0xa16   : > { %v3402_v56 = vpop.f32.mrf.mxu0  ;;  %v3421_v30 = vpop.f32.mrf.mxu1  ;;  %v3398_v31 = vadd.f32 %v3397_v12, %v3379_v52 }
 0xa18   : > { %v3417_v61 = vadd.f32 %v3416_v17, %v3398_v31 }
 0xa19   : > { %v3362_v7 = vpop.f32.mrf.mxu3  ;;  %v3381_v5 = vpop.f32.mrf.mxu2 }
 0xa1a   : > { %v3363_v34 = vadd.f32 %v3362_v7, %v3344_v4 }
 0xa1c   : > { %v3382_v58 = vadd.f32 %v3381_v5, %v3363_v34 }
 0xa1e   : > { %v3471_v8 = vpop.f32.mrf.mxu0  ;;  %v3490_v29 = vpop.f32.mrf.mxu1  ;;  %v3401_v63 = vadd.f32 %v3400_v20, %v3382_v58 }
 0xa20   : > { %v3420_v6 = vadd.f32 %v3419_v23, %v3401_v63 }
 0xa21   : > { %v3364_v36 = vpop.f32.mrf.mxu3  ;;  %v3383_v21 = vpop.f32.mrf.mxu2 }
 0xa22   : > { %v3365_v25 = vadd.f32 %v3364_v36, %v3346_v10 }
 0xa24   : > { %v3384_v59 = vadd.f32 %v3383_v21, %v3365_v25 }
 0xa26   : > { %v3473_v24 = vpop.f32.mrf.mxu0  ;;  %v3492_v40 = vpop.f32.mrf.mxu1  ;;  %v3403_v18 = vadd.f32 %v3402_v56, %v3384_v59 }
 0xa28   : > { %v3422_v51 = vadd.f32 %v3421_v30, %v3403_v18 }
 0xa29   : > { %v3433_v39 = vpop.f32.mrf.mxu3  ;;  %v3452_v28 = vpop.f32.mrf.mxu2 }
 0xa2a   : > { %v3434_v43 = vadd.f32 %v3433_v39, %v3415_v26 }
 0xa2c   : > { %v3453_v53 = vadd.f32 %v3452_v28, %v3434_v43 }
 0xa2e   : > { %v3476_v46 = vpop.f32.mrf.mxu0  ;;  %v3495_v48 = vpop.f32.mrf.mxu1  ;;  %v3472_v62 = vadd.f32 %v3471_v8, %v3453_v53 }
 0xa30   : > { %v3491_v37 = vadd.f32 %v3490_v29, %v3472_v62 }
 0xa31   : > { %v3435_v45 = vpop.f32.mrf.mxu3  ;;  %v3454_v41 = vpop.f32.mrf.mxu2 }
 0xa32   : > { %v3436_v15 = vadd.f32 %v3435_v45, %v3417_v61 }
 0xa34   : > { %v3455_v11 = vadd.f32 %v3454_v41, %v3436_v15 }
 0xa36   : > { %v3478_v47 = vpop.f32.mrf.mxu0  ;;  %v3497_v0 = vpop.f32.mrf.mxu1  ;;  %v3474_v4 = vadd.f32 %v3473_v24, %v3455_v11 }
 0xa38   : > { %v3493_v44 = vadd.f32 %v3492_v40, %v3474_v4 }
 0xa39   : > { %v3438_v50 = vpop.f32.mrf.mxu3  ;;  %v3457_v38 = vpop.f32.mrf.mxu2 }
 0xa3a   : > { %v3439_v1 = vadd.f32 %v3438_v50, %v3420_v6 }
 0xa3c   : > { %v3458_v2 = vadd.f32 %v3457_v38, %v3439_v1 }
 0xa3e   : > { %v3547_v3 = vpop.f32.mrf.mxu0  ;;  %v3566_v54 = vpop.f32.mrf.mxu1  ;;  %v3477_v27 = vadd.f32 %v3476_v46, %v3458_v2 }
 0xa40   : > { %v3496_v24 = vadd.f32 %v3495_v48, %v3477_v27 }
 0xa41   : > { %v3440_v55 = vpop.f32.mrf.mxu3  ;;  %v3459_v57 = vpop.f32.mrf.mxu2 }
 0xa42   : > { %v3441_v7 = vadd.f32 %v3440_v55, %v3422_v51 }
 0xa44   : > { %v3460_v36 = vadd.f32 %v3459_v57, %v3441_v7 }
 0xa46   : > { %v3549_v17 = vpop.f32.mrf.mxu0  ;;  %v3568_v35 = vpop.f32.mrf.mxu1  ;;  %v3479_v41 = vadd.f32 %v3478_v47, %v3460_v36 }
 0xa48   : > { %v3498_v53 = vadd.f32 %v3497_v0, %v3479_v41 }
 0xa49   : > { %v3509_v49 = vpop.f32.mrf.mxu3  ;;  %v3528_v33 = vpop.f32.mrf.mxu2 }
 0xa4a   : > { %v3510_v60 = vadd.f32 %v3509_v49, %v3491_v37 }
 0xa4c   : > { %v3529_v16 = vadd.f32 %v3528_v33, %v3510_v60 }
 0xa4e   : > { %v3548_v12 = vadd.f32 %v3547_v3, %v3529_v16  ;;  %v3571_v50 = vpop.f32.mrf.mxu1 }
 0xa50   : > { %v3567_v14 = vadd.f32 %v3566_v54, %v3548_v12 }
 0xa51   : > { %v3511_v13 = vpop.f32.mrf.mxu3  ;;  %v3530_v10 = vpop.f32.mrf.mxu2 }
 0xa52   : > { %v3576_v20 = vadd.f32 %v3567_v14, %v5394_v9  ;;  %v3512_v26 = vadd.f32 %v3511_v13, %v3493_v44  ;;  %v3552_v9 = vpop.f32.mrf.mxu0  ;;  %v3614_v13 = vld [vmem:[%s448_s18] sm:$0xf] }
 0xa54   : > { %v3580_v23 = vsel %vm537_vm1, %v3576_v20, -inf  ;;  %v3531_v5 = vadd.f32 %v3530_v10, %v3512_v26 }
 0xa55   : > { %v3581_v8 = vrot.slane %v3580_v23, 4 }
 0xa56   : > { %v3550_v29 = vadd.f32 %v3549_v17, %v3531_v5  ;;  %v3573_v37 = vpop.f32.mrf.mxu1 }
 0xa57   : > { %v3582_v56 = vmax.f32 %v3580_v23, %v3581_v8 }
 0xa58   : > { %v3569_v21 = vadd.f32 %v3568_v35, %v3550_v29 }
 0xa59   : > { %v3514_v39 = vpop.f32.mrf.mxu3  ;;  %v3533_v28 = vpop.f32.mrf.mxu2  ;;  %v3583_v45 = vrot.slane %v3582_v56, 2 }
 0xa5a   : > { %v3577_v40 = vadd.f32 %v3569_v21, %v5400_v19  ;;  %v3515_v30 = vadd.f32 %v3514_v39, %v3496_v24  ;;  %v3554_v25 = vpop.f32.mrf.mxu0 }
 0xa5b   : > { %v3584_v43 = vmax.f32 %v3582_v56, %v3583_v45 }
 0xa5c   : > { %v3587_v46 = vsel %vm537_vm1, %v3577_v40, -inf  ;;  %v3534_v42 = vadd.f32 %v3533_v28, %v3515_v30 }
 0xa5d   : > { %v3588_v38 = vrot.slane %v3587_v46, 4  ;;  %v3585_v19 = vrot.slane %v3584_v43, 1 }
 0xa5e   : > { %v3553_v52 = vadd.f32 %v3552_v9, %v3534_v42 }
 0xa5f   : > { %v3589_v31 = vmax.f32 %v3587_v46, %v3588_v38  ;;  %v3586_v54 = vmax.f32 %v3584_v43, %v3585_v19 }
 0xa60   : > { %v3572_v34 = vadd.f32 %v3571_v50, %v3553_v52 }
 0xa61   : > { %v3590_v55 = vrot.slane %v3589_v31, 2  ;;  %v3516_v48 = vpop.f32.mrf.mxu3  ;;  %v3535_v62 = vpop.f32.mrf.mxu2 }
 0xa62   : > { %v3578_v57 = vadd.f32 %v3572_v34, %v5406_v22  ;;  %v3517_v58 = vadd.f32 %v3516_v48, %v3498_v53 }
 0xa63   : > { %v3591_v61 = vmax.f32 %v3589_v31, %v3590_v55 }
 0xa64   : > { %v3594_v47 = vsel %vm537_vm1, %v3578_v57, -inf  ;;  %v3536_v15 = vadd.f32 %v3535_v62, %v3517_v58 }
 0xa65   : > { %v3592_v63 = vrot.slane %v3591_v61, 1  ;;  %v3595_v3 = vrot.slane %v3594_v47, 4 }
 0xa66   : > { %v3555_v11 = vadd.f32 %v3554_v25, %v3536_v15 }
 0xa67   : > { %v3593_v0 = vmax.f32 %v3591_v61, %v3592_v63  ;;  %v3596_v49 = vmax.f32 %v3594_v47, %v3595_v3 }
 0xa68   : > { %v3574_v33 = vadd.f32 %v3573_v37, %v3555_v11 }
 0xa69   : > { %v3597_v22 = vrot.slane %v3596_v49, 2  ;;  %v3609_v59 = vsel %vm3608_vm12, %v3586_v54, %v3593_v0 }
 0xa6a   : > { %v3579_v6 = vadd.f32 %v3574_v33, %v5411_v32 }
 0xa6b   : > { %v3598_v60 = vmax.f32 %v3596_v49, %v3597_v22 }
 0xa6c   : > { %v3601_v4 = vsel %vm537_vm1, %v3579_v6, -inf  ;;  %vm3612_vm1 = vcmask 1042432  }
 0xa6d   : > { %v3599_v1 = vrot.slane %v3598_v60, 1  ;;  %v3602_v16 = vrot.slane %v3601_v4, 4 }
 0xa6f   : > { %v3600_v18 = vmax.f32 %v3598_v60, %v3599_v1  ;;  %v3603_v12 = vmax.f32 %v3601_v4, %v3602_v16 }
 0xa71   : > { %v3604_v2 = vrot.slane %v3603_v12, 2  ;;  %v3611_v17 = vsel %vm3610_vm13, %v3609_v59, %v3600_v18 }
 0xa73   : > { %v3605_v14 = vmax.f32 %v3603_v12, %v3604_v2 }
 0xa75   : > { %v3606_v32 = vrot.slane %v3605_v14, 1 }
 0xa77   : > { %v3607_v44 = vmax.f32 %v3605_v14, %v3606_v32 }
 0xa79   : > { %v3613_v10 = vsel %vm3612_vm1, %v3611_v17, %v3607_v44 }
 0xa7a   : > { %v3615_v51 = vadd.f32 %v3614_v13, %v3613_v10 }
 0xa7c   : > { %3617 = vst.msk [vmem:[%s434_s20] sm:$0xf] %vm3616_vm14, %v3615_v51 }
 0xa7d   : > { %4853 = shalt.err (!%p4850_p3)
}
 0xa7e   : > { %4642 = dma.vmem_to_hbm [thread:$0]  (%p5006_p5), %s3632_s17, 64, %s3634_s4, %s3619_s25  }
 0xa7f PF: > { %p4648_p4 = scmp.ge.s32.totalorder %s4888_s24, 2  ;;  %s3645_s26 = sand.u32 1, %s4876_s21  }
 0xa80   : > { %s3646_s1 = scalar_lea.sflag [#allocation3], %s3645_s26 }
 0xa81   : > { %p4645_p7 = pnand %p4648_p4, %p5010_p6 }
 0xa83   : > { %p4646_p8 = pneg %p4645_p7 }
 0xa85   : > { %4871 = dma.done.wait (%p4646_p8), %s3646_s1, 64  }
 0xa86   : > { %4873 = vsyncadd (%p4646_p8), %s3646_s1, 4294967232  ;;  %p22_p9 = scmp.ge.s32.totalorder %s4993_s27, 4   ;;  %s6289_s21 = smov %s4880_s22 }
 0xa87   : > { %s6290_s22 = smov %s4884_s23  ;;  %s6291_s23 = smov %s5004_s30 }
 0xa88   : > { %s6292_s24 = smov %s4993_s27  ;;  %24 = sbr.rel (!%p22_p9) target bundleno = 8 (0x8), region = 109 }
 0xa8d   :  { %3652 = vsyncpa [#allocation3], 1 }
 0xa8e   :  { %3654 = vsyncpa [#allocation3 + $0x1], 1 }

</bundles_post_ra>
